<compile_context>
chip_gen: v7x
topology: tpu7x:2x2x1
jax: 0.10.0
libtpu: 0.0.40
codegen_flags: <defaults>
</compile_context>

<pallas_src>
from functools import partial

import jax
import jax.numpy as jnp
from jax import lax
from jax.experimental import pallas as pl
from jax.experimental.pallas import tpu as pltpu


def sam_kernel(h_ref, m_ref,
               wq_ref, bq_ref, wkh_ref, bkh_ref, wpm_ref, bpm_ref,
               wmh_ref, beff_ref,
               new_h_ref, new_m_ref, *, hid, exp_dtype):
    C = h_ref.shape[1]          # input_dim
    TQ = new_h_ref.shape[2]     # query-row tile (lane-dense)

    qb = pl.program_id(1)
    q0 = pl.multiple_of(qb * TQ, TQ)

    h_full = h_ref[0]                          # (C, N) channels-first, lane-dense
    m_full = m_ref[0]                          # (C, N)
    hq = h_ref[0, :, pl.ds(q0, TQ)]            # (C, TQ) query columns
    mq = m_ref[0, :, pl.ds(q0, TQ)]            # (C, TQ)

    # Fused 1x1-conv projections (channels-first: weight @ activation).
    ph = jnp.dot(wkh_ref[...], h_full, preferred_element_type=jnp.float32) + bkh_ref[...]  # (hid+CP, N)
    pm = jnp.dot(wpm_ref[...], m_full, preferred_element_type=jnp.float32) + bpm_ref[...]  # (hid+CP, N)
    q = jnp.dot(wq_ref[...], hq, preferred_element_type=jnp.float32) + bq_ref[...]         # (hid, TQ)

    # bf16 MXU operands, f32 accumulate.
    q16 = q.astype(jnp.bfloat16)
    k = ph[:hid].astype(jnp.bfloat16)          # (hid, N)
    vwh = ph[hid:].astype(jnp.bfloat16)        # (CP, N)  folded V_h -> layer_m rows
    k2 = pm[:hid].astype(jnp.bfloat16)         # (hid, N)
    vwm = pm[hid:].astype(jnp.bfloat16)        # (CP, N)  folded V_m -> layer_m rows

    # Logits: contract over hid of both operands (no materialized transpose).
    dn_qk = (((0,), (0,)), ((), ()))
    lh = lax.dot_general(q16, k, dn_qk, preferred_element_type=jnp.float32)    # (TQ, N)
    lm = lax.dot_general(q16, k2, dn_qk, preferred_element_type=jnp.float32)   # (TQ, N)

    def softmax_rows(s):
        s = s - jnp.max(s, axis=-1, keepdims=True)
        e = jnp.exp(s.astype(exp_dtype))       # bf16 exp on v6e/v7x, f32 on v5e
        inv = pl.reciprocal(
            jnp.sum(e.astype(jnp.float32), axis=-1, keepdims=True), approx=True)
        return (e.astype(jnp.float32) * inv).astype(jnp.bfloat16)

    ah = softmax_rows(lh)                      # (TQ, N) bf16
    am = softmax_rows(lm)                      # (TQ, N) bf16

    # att = vwh @ A_h^T + vwm @ A_m^T, contracting the key axis of both.
    dn_att = (((1,), (1,)), ((), ()))
    att = (lax.dot_general(vwh, ah, dn_att, preferred_element_type=jnp.float32)
           + lax.dot_general(vwm, am, dn_att, preferred_element_type=jnp.float32))  # (CP, TQ)

    combined = (att
                + jnp.dot(wmh_ref[...], hq, preferred_element_type=jnp.float32)
                + beff_ref[...])               # (CP, TQ), rows = [mo; mi; mg; pad]

    sg = jax.nn.sigmoid(combined[:2 * C])      # one EUP launch for mo and mi
    mo = sg[:C]
    mi = sg[C:2 * C]
    mg = jnp.tanh(combined[2 * C:3 * C])

    new_m = (1.0 - mi) * mq + mi * mg          # (C, TQ) lane-dense
    new_h = mo * new_m

    new_h_ref[0] = new_h.astype(new_h_ref.dtype)
    new_m_ref[0] = new_m.astype(new_m_ref.dtype)


def _fold_params(params, C):
    """Wrapper-side (free) algebraic folding / reordering / padding.

    Weights are channels-first (out, in); biases (out,). Gate rows of every
    layer_m-shaped block are permuted [mo; mg; mi] -> [mo; mi; mg] and
    zero-padded to a multiple of 8 rows. Biases returned as (out, 1) columns
    so they broadcast over the lane/N axis.
    """
    wq, bq = params["wq"], params["bq"]
    wk, bk = params["wk"], params["bk"]
    wk2, bk2 = params["wk2"], params["bk2"]
    wv, bv = params["wv"], params["bv"]
    wv2, bv2 = params["wv2"], params["bv2"]
    wz, bz = params["wz"], params["bz"]
    wm, bm = params["wm"], params["bm"]

    weff = wm[:, :2 * C] @ wz                  # (3C, 2C)  layer_z folded into layer_m
    wvh = weff[:, :C] @ wv                     # (3C, C)   V_h folded in
    bvh = weff[:, :C] @ bv                     # (3C,)
    wvm = weff[:, C:] @ wv2                    # (3C, C)   V_m folded in
    bvm = weff[:, C:] @ bv2                    # (3C,)
    wmh = wm[:, 2 * C:]                        # (3C, C)
    beff = wm[:, :2 * C] @ bz + bm             # (3C,)

    # Reorder gate rows [mo; mg; mi] -> [mo; mi; mg]; pad to sublane multiple.
    perm = jnp.array(list(range(0, C)) + list(range(2 * C, 3 * C)) + list(range(C, 2 * C)))
    cp = ((3 * C + 7) // 8) * 8
    pad = cp - 3 * C

    def rp(x):
        x = x[perm]
        if pad:
            x = jnp.concatenate([x, jnp.zeros((pad,) + x.shape[1:], x.dtype)], axis=0)
        return x

    wvh, bvh, wvm, bvm, wmh, beff = (rp(a) for a in (wvh, bvh, wvm, bvm, wmh, beff))

    wkh = jnp.concatenate([wk, wvh], axis=0)             # (hid + CP, C)
    bkh = jnp.concatenate([bk, bvh], axis=0)[:, None]    # (hid + CP, 1)
    wpm = jnp.concatenate([wk2, wvm], axis=0)            # (hid + CP, C)
    bpm = jnp.concatenate([bk2, bvm], axis=0)[:, None]   # (hid + CP, 1)
    return (wq, bq[:, None], wkh, bkh, wpm, bpm, wmh, beff[:, None])


def _pick_tq(N):
    """Query-row tile: lane-dense (multiple of 128) divisor of N, capped ~512."""
    if N <= 512:
        return N
    for tq in (512, 384, 256, 128):
        if N % tq == 0:
            return tq
    return N


def _exp_dtype_for_backend():
    """bf16 exp only where the EUP has a bf16 path (v6e / v7x); f32 elsewhere."""
    try:
        kind = jax.devices()[0].device_kind.lower()
    except Exception:
        return jnp.float32
    if "v6" in kind or "v7" in kind:
        return jnp.bfloat16
    return jnp.float32


def sam_forward(h_nchw, m_nchw, params):
    """h_nchw, m_nchw: (B, C, H, W). Returns (new_h, new_m) in NCHW."""
    B, C, H, W = h_nchw.shape
    N = H * W
    hid = params["wq"].shape[0]
    TQ = _pick_tq(N)
    nq = N // TQ

    # Free reshapes only — no NCHW transposes through HBM.
    h_bcn = h_nchw.reshape(B, C, N)
    m_bcn = m_nchw.reshape(B, C, N)

    weights = _fold_params(params, C)

    act_in_spec = pl.BlockSpec((1, C, N), lambda b, qb: (b, 0, 0))
    act_out_spec = pl.BlockSpec((1, C, TQ), lambda b, qb: (b, 0, qb))

    def w_spec(arr):
        nd = arr.ndim
        return pl.BlockSpec(arr.shape, lambda b, qb: (0,) * nd)

    out_shape = (jax.ShapeDtypeStruct((B, C, N), h_bcn.dtype),
                 jax.ShapeDtypeStruct((B, C, N), m_bcn.dtype))

    new_h_bcn, new_m_bcn = pl.pallas_call(
        partial(sam_kernel, hid=hid, exp_dtype=_exp_dtype_for_backend()),
        out_shape=out_shape,
        grid_spec=pltpu.PrefetchScalarGridSpec(
            num_scalar_prefetch=0,
            grid=(B, nq),
            in_specs=[act_in_spec, act_in_spec] + [w_spec(w) for w in weights],
            out_specs=[act_out_spec, act_out_spec],
        ),
        compiler_params=pltpu.CompilerParams(
            dimension_semantics=("parallel", "parallel")),
    )(h_bcn, m_bcn, *weights)

    # Free reshapes back to NCHW.
    return new_h_bcn.reshape(B, C, H, W), new_m_bcn.reshape(B, C, H, W)


def sam_reference(h, m, params):
    """Pure-JAX NCHW reference matching the PyTorch module semantics."""
    B, C, H, W = h.shape
    N = H * W
    hid = params["wq"].shape[0]

    def conv1x1(x, w, b):
        return jnp.einsum("oc,bchw->bohw", w, x) + b[None, :, None, None]

    K_h = conv1x1(h, params["wk"], params["bk"]).reshape(B, hid, N)
    Q_h = jnp.transpose(conv1x1(h, params["wq"], params["bq"]).reshape(B, hid, N), (0, 2, 1))
    A_h = jax.nn.softmax(jnp.einsum("bnh,bhk->bnk", Q_h, K_h), axis=-1)
    V_h = conv1x1(h, params["wv"], params["bv"]).reshape(B, C, N)
    Z_h = jnp.einsum("bnk,bck->bnc", A_h, V_h)

    K_m = conv1x1(m, params["wk2"], params["bk2"]).reshape(B, hid, N)
    V_m = conv1x1(m, params["wv2"], params["bv2"]).reshape(B, C, N)
    A_m = jax.nn.softmax(jnp.einsum("bnh,bhk->bnk", Q_h, K_m), axis=-1)
    Z_m = jnp.einsum("bnk,bck->bnc", A_m, V_m)

    Z_h = jnp.transpose(Z_h, (0, 2, 1)).reshape(B, C, H, W)
    Z_m = jnp.transpose(Z_m, (0, 2, 1)).reshape(B, C, H, W)
    Z = conv1x1(jnp.concatenate([Z_h, Z_m], axis=1), params["wz"], params["bz"])
    combined = conv1x1(jnp.concatenate([Z, h], axis=1), params["wm"], params["bm"])
    mo, mg, mi = jnp.split(combined, 3, axis=1)
    mi = jax.nn.sigmoid(mi)
    new_m = (1 - mi) * m + mi * jnp.tanh(mg)
    new_h = jax.nn.sigmoid(mo) * new_m
    return new_h, new_m


def make_params(key, input_dim, hidden_dim):
    """Deterministic parameter init. Weights stored as (C_out, C_in), biases (C_out,)."""
    ks = jax.random.split(key, 14)

    def w(k, cout, cin, scale=0.1):
        return (scale * jax.random.normal(k, (cout, cin))).astype(jnp.float32)

    def b(k, cout, scale=0.05):
        return (scale * jax.random.normal(k, (cout,))).astype(jnp.float32)

    C, Hd = input_dim, hidden_dim
    return {
        "wq": w(ks[0], Hd, C),   "bq": b(ks[1], Hd),
        "wk": w(ks[2], Hd, C),   "bk": b(ks[3], Hd),
        "wk2": w(ks[4], Hd, C),  "bk2": b(ks[5], Hd),
        "wv": w(ks[6], C, C),    "bv": b(ks[7], C),
        "wv2": w(ks[8], C, C),   "bv2": b(ks[9], C),
        "wz": w(ks[10], 2 * C, 2 * C), "bz": b(ks[11], 2 * C),
        "wm": w(ks[12], 3 * C, 3 * C), "bm": b(ks[13], 3 * C),
    }


if __name__ == "__main__":
    B, C, Hd, H, W = 2, 4, 8, 16, 16   # batch, input_dim, hidden_dim, spatial

    key = jax.random.PRNGKey(0)
    k_h, k_m, k_p = jax.random.split(key, 3)
    h = jax.random.normal(k_h, (B, C, H, W), dtype=jnp.float32)
    m = jax.random.normal(k_m, (B, C, H, W), dtype=jnp.float32)
    params = make_params(k_p, C, Hd)

    new_h, new_m = sam_forward(h, m, params)
    jax.block_until_ready((new_h, new_m))

    ref_h, ref_m = sam_reference(h, m, params)
    assert new_h.shape == (B, C, H, W) and new_m.shape == (B, C, H, W)
    # Tolerance covers: bf16 MXU operands for the quadratic matmuls (f32
    # accumulate), bf16 exp on v6e/v7x, the EUP approximate reciprocal in the
    # softmax, and the algebraic folding of layer_z / V into layer_m.
    assert jnp.allclose(new_h, ref_h, atol=2e-3, rtol=2e-3), \
        float(jnp.max(jnp.abs(new_h - ref_h)))
    assert jnp.allclose(new_m, ref_m, atol=2e-3, rtol=2e-3), \
        float(jnp.max(jnp.abs(new_m - ref_m)))

    print("KERNEL_OK")
</pallas_src>

<mosaic_0001>
module attributes {stable_mosaic.version = 11 : i64} {
  func.func @sam_kernel(%arg0: i32, %arg1: i32, %arg2: memref<1x4x256xf32, #tpu.memory_space<vmem>>, %arg3: memref<1x4x256xf32, #tpu.memory_space<vmem>>, %arg4: memref<8x4xf32, #tpu.memory_space<vmem>>, %arg5: memref<8x1xf32, #tpu.memory_space<vmem>>, %arg6: memref<24x4xf32, #tpu.memory_space<vmem>>, %arg7: memref<24x1xf32, #tpu.memory_space<vmem>>, %arg8: memref<24x4xf32, #tpu.memory_space<vmem>>, %arg9: memref<24x1xf32, #tpu.memory_space<vmem>>, %arg10: memref<16x4xf32, #tpu.memory_space<vmem>>, %arg11: memref<16x1xf32, #tpu.memory_space<vmem>>, %arg12: memref<1x4x256xf32, #tpu.memory_space<vmem>>, %arg13: memref<1x4x256xf32, #tpu.memory_space<vmem>>) attributes {dimension_semantics = [#tpu.dimension_semantics<parallel>, #tpu.dimension_semantics<parallel>], iteration_bounds = array<i64: 2, 1>, scalar_prefetch = 0 : i64, scratch_operands = 0 : i64, tpu.core_type = #tpu.core_type<tc>, window_params = [{transform_indices = @transform_0, window_bounds = array<i64: 1, 4, 256>}, {transform_indices = @transform_1, window_bounds = array<i64: 1, 4, 256>}, {pipeline_mode = #tpu.pipeline_mode<synchronous>, transform_indices = @transform_2, window_bounds = array<i64: 8, 4>}, {pipeline_mode = #tpu.pipeline_mode<synchronous>, transform_indices = @transform_3, window_bounds = array<i64: 8, 1>}, {pipeline_mode = #tpu.pipeline_mode<synchronous>, transform_indices = @transform_4, window_bounds = array<i64: 24, 4>}, {pipeline_mode = #tpu.pipeline_mode<synchronous>, transform_indices = @transform_5, window_bounds = array<i64: 24, 1>}, {pipeline_mode = #tpu.pipeline_mode<synchronous>, transform_indices = @transform_6, window_bounds = array<i64: 24, 4>}, {pipeline_mode = #tpu.pipeline_mode<synchronous>, transform_indices = @transform_7, window_bounds = array<i64: 24, 1>}, {pipeline_mode = #tpu.pipeline_mode<synchronous>, transform_indices = @transform_8, window_bounds = array<i64: 16, 4>}, {pipeline_mode = #tpu.pipeline_mode<synchronous>, transform_indices = @transform_9, window_bounds = array<i64: 16, 1>}, {transform_indices = @transform_10, window_bounds = array<i64: 1, 4, 256>}, {transform_indices = @transform_11, window_bounds = array<i64: 1, 4, 256>}]} {
    %c256_i32 = arith.constant 256 : i32
    %0 = arith.muli %arg1, %c256_i32 : i32
    %1 = tpu.assume_multiple %0, 256 : i32
    %c0 = arith.constant 0 : index
    %c0_0 = arith.constant 0 : index
    %c0_1 = arith.constant 0 : index
    %2 = vector.load %arg2[%c0, %c0_0, %c0_1] : memref<1x4x256xf32, #tpu.memory_space<vmem>>, vector<1x4x256xf32>
    %3 = vector.shape_cast %2 : vector<1x4x256xf32> to vector<4x256xf32>
    %c0_2 = arith.constant 0 : index
    %c0_3 = arith.constant 0 : index
    %c0_4 = arith.constant 0 : index
    %4 = vector.load %arg3[%c0_2, %c0_3, %c0_4] : memref<1x4x256xf32, #tpu.memory_space<vmem>>, vector<1x4x256xf32>
    %5 = vector.shape_cast %4 : vector<1x4x256xf32> to vector<4x256xf32>
    %c0_5 = arith.constant 0 : index
    %c0_6 = arith.constant 0 : index
    %6 = arith.index_cast %1 : i32 to index
    %7 = vector.load %arg2[%c0_5, %c0_6, %6] : memref<1x4x256xf32, #tpu.memory_space<vmem>>, vector<1x4x256xf32>
    %8 = vector.shape_cast %7 : vector<1x4x256xf32> to vector<4x256xf32>
    %c0_7 = arith.constant 0 : index
    %c0_8 = arith.constant 0 : index
    %9 = arith.index_cast %1 : i32 to index
    %10 = vector.load %arg3[%c0_7, %c0_8, %9] : memref<1x4x256xf32, #tpu.memory_space<vmem>>, vector<1x4x256xf32>
    %11 = vector.shape_cast %10 : vector<1x4x256xf32> to vector<4x256xf32>
    %c0_9 = arith.constant 0 : index
    %c0_10 = arith.constant 0 : index
    %12 = vector.load %arg6[%c0_9, %c0_10] : memref<24x4xf32, #tpu.memory_space<vmem>>, vector<24x4xf32>
    %cst = arith.constant dense<0.000000e+00> : vector<24x256xf32>
    %13 = tpu.matmul %12, %3, %cst {dimension_numbers = #tpu.dot_dimension_numbers<[1], [0], [0], [1], [0, 0, 1, 1], [], []>} : vector<24x4xf32>, vector<4x256xf32>, vector<24x256xf32> -> vector<24x256xf32>
    %c0_11 = arith.constant 0 : index
    %c0_12 = arith.constant 0 : index
    %14 = vector.load %arg7[%c0_11, %c0_12] : memref<24x1xf32, #tpu.memory_space<vmem>>, vector<24x1xf32>
    %15 = vector.broadcast %14 : vector<24x1xf32> to vector<24x256xf32>
    %16 = arith.addf %13, %15 : vector<24x256xf32>
    %c0_13 = arith.constant 0 : index
    %c0_14 = arith.constant 0 : index
    %17 = vector.load %arg8[%c0_13, %c0_14] : memref<24x4xf32, #tpu.memory_space<vmem>>, vector<24x4xf32>
    %cst_15 = arith.constant dense<0.000000e+00> : vector<24x256xf32>
    %18 = tpu.matmul %17, %5, %cst_15 {dimension_numbers = #tpu.dot_dimension_numbers<[1], [0], [0], [1], [0, 0, 1, 1], [], []>} : vector<24x4xf32>, vector<4x256xf32>, vector<24x256xf32> -> vector<24x256xf32>
    %c0_16 = arith.constant 0 : index
    %c0_17 = arith.constant 0 : index
    %19 = vector.load %arg9[%c0_16, %c0_17] : memref<24x1xf32, #tpu.memory_space<vmem>>, vector<24x1xf32>
    %20 = vector.broadcast %19 : vector<24x1xf32> to vector<24x256xf32>
    %21 = arith.addf %18, %20 : vector<24x256xf32>
    %c0_18 = arith.constant 0 : index
    %c0_19 = arith.constant 0 : index
    %22 = vector.load %arg4[%c0_18, %c0_19] : memref<8x4xf32, #tpu.memory_space<vmem>>, vector<8x4xf32>
    %cst_20 = arith.constant dense<0.000000e+00> : vector<8x256xf32>
    %23 = tpu.matmul %22, %8, %cst_20 {dimension_numbers = #tpu.dot_dimension_numbers<[1], [0], [0], [1], [0, 0, 1, 1], [], []>} : vector<8x4xf32>, vector<4x256xf32>, vector<8x256xf32> -> vector<8x256xf32>
    %c0_21 = arith.constant 0 : index
    %c0_22 = arith.constant 0 : index
    %24 = vector.load %arg5[%c0_21, %c0_22] : memref<8x1xf32, #tpu.memory_space<vmem>>, vector<8x1xf32>
    %25 = vector.broadcast %24 : vector<8x1xf32> to vector<8x256xf32>
    %26 = arith.addf %23, %25 : vector<8x256xf32>
    %27 = arith.truncf %26 : vector<8x256xf32> to vector<8x256xbf16>
    %28 = vector.extract_strided_slice %16 {offsets = [0, 0], sizes = [8, 256], strides = [1, 1]} : vector<24x256xf32> to vector<8x256xf32>
    %29 = arith.truncf %28 : vector<8x256xf32> to vector<8x256xbf16>
    %30 = vector.extract_strided_slice %16 {offsets = [8, 0], sizes = [16, 256], strides = [1, 1]} : vector<24x256xf32> to vector<16x256xf32>
    %31 = arith.truncf %30 : vector<16x256xf32> to vector<16x256xbf16>
    %32 = vector.extract_strided_slice %21 {offsets = [0, 0], sizes = [8, 256], strides = [1, 1]} : vector<24x256xf32> to vector<8x256xf32>
    %33 = arith.truncf %32 : vector<8x256xf32> to vector<8x256xbf16>
    %34 = vector.extract_strided_slice %21 {offsets = [8, 0], sizes = [16, 256], strides = [1, 1]} : vector<24x256xf32> to vector<16x256xf32>
    %35 = arith.truncf %34 : vector<16x256xf32> to vector<16x256xbf16>
    %cst_23 = arith.constant dense<0.000000e+00> : vector<256x256xf32>
    %36 = tpu.matmul %27, %29, %cst_23 {dimension_numbers = #tpu.dot_dimension_numbers<[0], [0], [1], [1], [0, 1, 1, 1], [], []>} : vector<8x256xbf16>, vector<8x256xbf16>, vector<256x256xf32> -> vector<256x256xf32>
    %cst_24 = arith.constant dense<0.000000e+00> : vector<256x256xf32>
    %37 = tpu.matmul %27, %33, %cst_24 {dimension_numbers = #tpu.dot_dimension_numbers<[0], [0], [1], [1], [0, 1, 1, 1], [], []>} : vector<8x256xbf16>, vector<8x256xbf16>, vector<256x256xf32> -> vector<256x256xf32>
    %cst_25 = arith.constant dense<0xFF800000> : vector<256xf32>
    %38 = vector.multi_reduction <maximumf>, %36, %cst_25 [1] : vector<256x256xf32> to vector<256xf32>
    %39 = vector.shape_cast %38 : vector<256xf32> to vector<256x1xf32>
    %40 = vector.broadcast %39 : vector<256x1xf32> to vector<256x256xf32>
    %41 = arith.subf %36, %40 : vector<256x256xf32>
    %42 = math.exp %41 : vector<256x256xf32>
    %cst_26 = arith.constant dense<0.000000e+00> : vector<256xf32>
    %43 = vector.multi_reduction <add>, %42, %cst_26 [1] : vector<256x256xf32> to vector<256xf32>
    %44 = vector.shape_cast %43 : vector<256xf32> to vector<256x1xf32>
    %45 = tpu.reciprocal %44 {approx = true} : vector<256x1xf32> -> vector<256x1xf32>
    %46 = vector.broadcast %45 : vector<256x1xf32> to vector<256x256xf32>
    %47 = arith.mulf %42, %46 : vector<256x256xf32>
    %48 = arith.truncf %47 : vector<256x256xf32> to vector<256x256xbf16>
    %cst_27 = arith.constant dense<0xFF800000> : vector<256xf32>
    %49 = vector.multi_reduction <maximumf>, %37, %cst_27 [1] : vector<256x256xf32> to vector<256xf32>
    %50 = vector.shape_cast %49 : vector<256xf32> to vector<256x1xf32>
    %51 = vector.broadcast %50 : vector<256x1xf32> to vector<256x256xf32>
    %52 = arith.subf %37, %51 : vector<256x256xf32>
    %53 = math.exp %52 : vector<256x256xf32>
    %cst_28 = arith.constant dense<0.000000e+00> : vector<256xf32>
    %54 = vector.multi_reduction <add>, %53, %cst_28 [1] : vector<256x256xf32> to vector<256xf32>
    %55 = vector.shape_cast %54 : vector<256xf32> to vector<256x1xf32>
    %56 = tpu.reciprocal %55 {approx = true} : vector<256x1xf32> -> vector<256x1xf32>
    %57 = vector.broadcast %56 : vector<256x1xf32> to vector<256x256xf32>
    %58 = arith.mulf %53, %57 : vector<256x256xf32>
    %59 = arith.truncf %58 : vector<256x256xf32> to vector<256x256xbf16>
    %cst_29 = arith.constant dense<0.000000e+00> : vector<16x256xf32>
    %60 = tpu.matmul %31, %48, %cst_29 {dimension_numbers = #tpu.dot_dimension_numbers<[1], [1], [0], [0], [0, 0, 1, 0], [], []>} : vector<16x256xbf16>, vector<256x256xbf16>, vector<16x256xf32> -> vector<16x256xf32>
    %cst_30 = arith.constant dense<0.000000e+00> : vector<16x256xf32>
    %61 = tpu.matmul %35, %59, %cst_30 {dimension_numbers = #tpu.dot_dimension_numbers<[1], [1], [0], [0], [0, 0, 1, 0], [], []>} : vector<16x256xbf16>, vector<256x256xbf16>, vector<16x256xf32> -> vector<16x256xf32>
    %62 = arith.addf %60, %61 : vector<16x256xf32>
    %c0_31 = arith.constant 0 : index
    %c0_32 = arith.constant 0 : index
    %63 = vector.load %arg10[%c0_31, %c0_32] : memref<16x4xf32, #tpu.memory_space<vmem>>, vector<16x4xf32>
    %cst_33 = arith.constant dense<0.000000e+00> : vector<16x256xf32>
    %64 = tpu.matmul %63, %8, %cst_33 {dimension_numbers = #tpu.dot_dimension_numbers<[1], [0], [0], [1], [0, 0, 1, 1], [], []>} : vector<16x4xf32>, vector<4x256xf32>, vector<16x256xf32> -> vector<16x256xf32>
    %65 = arith.addf %62, %64 : vector<16x256xf32>
    %c0_34 = arith.constant 0 : index
    %c0_35 = arith.constant 0 : index
    %66 = vector.load %arg11[%c0_34, %c0_35] : memref<16x1xf32, #tpu.memory_space<vmem>>, vector<16x1xf32>
    %67 = vector.broadcast %66 : vector<16x1xf32> to vector<16x256xf32>
    %68 = arith.addf %65, %67 : vector<16x256xf32>
    %69 = vector.extract_strided_slice %68 {offsets = [0, 0], sizes = [8, 256], strides = [1, 1]} : vector<16x256xf32> to vector<8x256xf32>
    %70 = arith.negf %69 : vector<8x256xf32>
    %71 = math.exp %70 : vector<8x256xf32>
    %cst_36 = arith.constant 1.000000e+00 : f32
    %72 = vector.broadcast %cst_36 : f32 to vector<8x256xf32>
    %73 = arith.addf %72, %71 : vector<8x256xf32>
    %74 = arith.divf %72, %73 : vector<8x256xf32>
    %75 = vector.extract_strided_slice %74 {offsets = [0, 0], sizes = [4, 256], strides = [1, 1]} : vector<8x256xf32> to vector<4x256xf32>
    %76 = vector.extract_strided_slice %74 {offsets = [4, 0], sizes = [4, 256], strides = [1, 1]} : vector<8x256xf32> to vector<4x256xf32>
    %77 = vector.extract_strided_slice %68 {offsets = [8, 0], sizes = [4, 256], strides = [1, 1]} : vector<16x256xf32> to vector<4x256xf32>
    %78 = math.tanh %77 : vector<4x256xf32>
    %cst_37 = arith.constant 1.000000e+00 : f32
    %79 = vector.broadcast %cst_37 : f32 to vector<4x256xf32>
    %80 = arith.subf %79, %76 : vector<4x256xf32>
    %81 = arith.mulf %80, %11 : vector<4x256xf32>
    %82 = arith.mulf %76, %78 : vector<4x256xf32>
    %83 = arith.addf %81, %82 : vector<4x256xf32>
    %84 = arith.mulf %75, %83 : vector<4x256xf32>
    %c0_38 = arith.constant 0 : index
    %c0_39 = arith.constant 0 : index
    %c0_40 = arith.constant 0 : index
    %85 = vector.load %arg12[%c0_38, %c0_39, %c0_40] : memref<1x4x256xf32, #tpu.memory_space<vmem>>, vector<1x4x256xf32>
    %86 = vector.shape_cast %85 : vector<1x4x256xf32> to vector<4x256xf32>
    %87 = vector.shape_cast %84 : vector<4x256xf32> to vector<1x4x256xf32>
    tpu.vector_store %arg12[%c0_38, %c0_39, %c0_40], %87 {strides = array<i32>} : memref<1x4x256xf32, #tpu.memory_space<vmem>>, vector<1x4x256xf32>,
    %c0_41 = arith.constant 0 : index
    %c0_42 = arith.constant 0 : index
    %c0_43 = arith.constant 0 : index
    %88 = vector.load %arg13[%c0_41, %c0_42, %c0_43] : memref<1x4x256xf32, #tpu.memory_space<vmem>>, vector<1x4x256xf32>
    %89 = vector.shape_cast %88 : vector<1x4x256xf32> to vector<4x256xf32>
    %90 = vector.shape_cast %83 : vector<4x256xf32> to vector<1x4x256xf32>
    tpu.vector_store %arg13[%c0_41, %c0_42, %c0_43], %90 {strides = array<i32>} : memref<1x4x256xf32, #tpu.memory_space<vmem>>, vector<1x4x256xf32>,
    return
  }
  func.func @transform_0(%arg0: i32, %arg1: i32) -> (i32, i32, i32) {
    %c0_i32 = arith.constant 0 : i32
    %c0_i32_0 = arith.constant 0 : i32
    %c0_i32_1 = arith.constant 0 : i32
    return %arg0, %c0_i32, %c0_i32_0 : i32, i32, i32
  }
  func.func @transform_1(%arg0: i32, %arg1: i32) -> (i32, i32, i32) {
    %c0_i32 = arith.constant 0 : i32
    %c0_i32_0 = arith.constant 0 : i32
    %c0_i32_1 = arith.constant 0 : i32
    return %arg0, %c0_i32, %c0_i32_0 : i32, i32, i32
  }
  func.func @transform_2(%arg0: i32, %arg1: i32) -> (i32, i32) {
    %c0_i32 = arith.constant 0 : i32
    %c0_i32_0 = arith.constant 0 : i32
    %c0_i32_1 = arith.constant 0 : i32
    return %c0_i32, %c0_i32_0 : i32, i32
  }
  func.func @transform_3(%arg0: i32, %arg1: i32) -> (i32, i32) {
    %c0_i32 = arith.constant 0 : i32
    %c0_i32_0 = arith.constant 0 : i32
    %c0_i32_1 = arith.constant 0 : i32
    return %c0_i32, %c0_i32_0 : i32, i32
  }
  func.func @transform_4(%arg0: i32, %arg1: i32) -> (i32, i32) {
    %c0_i32 = arith.constant 0 : i32
    %c0_i32_0 = arith.constant 0 : i32
    %c0_i32_1 = arith.constant 0 : i32
    return %c0_i32, %c0_i32_0 : i32, i32
  }
  func.func @transform_5(%arg0: i32, %arg1: i32) -> (i32, i32) {
    %c0_i32 = arith.constant 0 : i32
    %c0_i32_0 = arith.constant 0 : i32
    %c0_i32_1 = arith.constant 0 : i32
    return %c0_i32, %c0_i32_0 : i32, i32
  }
  func.func @transform_6(%arg0: i32, %arg1: i32) -> (i32, i32) {
    %c0_i32 = arith.constant 0 : i32
    %c0_i32_0 = arith.constant 0 : i32
    %c0_i32_1 = arith.constant 0 : i32
    return %c0_i32, %c0_i32_0 : i32, i32
  }
  func.func @transform_7(%arg0: i32, %arg1: i32) -> (i32, i32) {
    %c0_i32 = arith.constant 0 : i32
    %c0_i32_0 = arith.constant 0 : i32
    %c0_i32_1 = arith.constant 0 : i32
    return %c0_i32, %c0_i32_0 : i32, i32
  }
  func.func @transform_8(%arg0: i32, %arg1: i32) -> (i32, i32) {
    %c0_i32 = arith.constant 0 : i32
    %c0_i32_0 = arith.constant 0 : i32
    %c0_i32_1 = arith.constant 0 : i32
    return %c0_i32, %c0_i32_0 : i32, i32
  }
  func.func @transform_9(%arg0: i32, %arg1: i32) -> (i32, i32) {
    %c0_i32 = arith.constant 0 : i32
    %c0_i32_0 = arith.constant 0 : i32
    %c0_i32_1 = arith.constant 0 : i32
    return %c0_i32, %c0_i32_0 : i32, i32
  }
  func.func @transform_10(%arg0: i32, %arg1: i32) -> (i32, i32, i32) {
    %c0_i32 = arith.constant 0 : i32
    %c0_i32_0 = arith.constant 0 : i32
    return %arg0, %c0_i32, %arg1 : i32, i32, i32
  }
  func.func @transform_11(%arg0: i32, %arg1: i32) -> (i32, i32, i32) {
    %c0_i32 = arith.constant 0 : i32
    %c0_i32_0 = arith.constant 0 : i32
    return %arg0, %c0_i32, %arg1 : i32, i32, i32
  }
}

</mosaic_0001>

<bundles_post_ra>
// kernel: tpu_custom_call.1
= control target key start
LH: loop header
LB: loop body
LE: loop exit
PB: predicated region body
PF: predicated region fallthrough
CT: control target
= control target key end

     0   :  { %17 = vsyncpa [#allocation3], 0  ;;  %s4775_s0 = inlined_call_operand.vmem [shape: f32[2,4,256], index: 0, kind: input, shape index: {}]   ;;  %s4776_s1 = inlined_call_operand.vmem [shape: f32[2,4,256], index: 1, kind: input, shape index: {}]   ;;  %s4777_s2 = inlined_call_operand.vmem [shape: f32[8,4], index: 2, kind: input, shape index: {}]   ;;  %s4778_s3 = inlined_call_operand.vmem [shape: f32[8,1], index: 3, kind: input, shape index: {}]   ;;  %s4779_s4 = inlined_call_operand.vmem [shape: f32[24,4], index: 4, kind: input, shape index: {}]   ;;  %s4780_s5 = inlined_call_operand.vmem [shape: f32[24,1], index: 5, kind: input, shape index: {}]   ;;  %s4781_s6 = inlined_call_operand.vmem [shape: f32[24,4], index: 6, kind: input, shape index: {}]   ;;  %s4782_s7 = inlined_call_operand.vmem [shape: f32[24,1], index: 7, kind: input, shape index: {}]   ;;  %s4783_s8 = inlined_call_operand.vmem [shape: f32[16,4], index: 8, kind: input, shape index: {}]   ;;  %s4784_s9 = inlined_call_operand.vmem [shape: f32[16,1], index: 9, kind: input, shape index: {}]   ;;  %s4785_s10 = inlined_call_operand.hbm [shape: f32[2,4,256], index: 10, kind: output, shape index: {0}]   ;;  %s4786_s11 = inlined_call_operand.hbm [shape: f32[2,4,256], index: 11, kind: output, shape index: {1}]  }
   0x1   :  { %19 = vsyncpa [#allocation3 + $0x1], 0 }
   0x2   :  { %20 = vsyncpa [#allocation5], 0 }
   0x3   :  { %22 = vsyncpa [#allocation5 + $0x1], 0  ;;  %s3406_s17 = smov 0   ;;  %s3408_s18 = smov 0  }
   0x4   :  { %s3410_s19 = smov 0   ;;  %s3412_s20 = smov 0  }
   0x5   :  { %s3414_s21 = smov 0   ;;  %s3416_s22 = smov 0  }
   0x6 LB: > { %4953 = sst [smem:[#allocation8_spill]] %s3328_s19  ;;  %s2683_s23 = sadd.s32 4294967295, %s3340_s22   ;;  %s3340_s22 = sphi %s3416_s22, %s28_s22   ;;  %s3336_s21 = sphi %s3414_s21, %s5294_s21   ;;  %s3332_s20 = sphi %s3412_s20, %s5293_s20   ;;  %s3328_s19 = sphi %s3410_s19, %s5292_s19   ;;  %s3324_s18 = sphi %s3408_s18, %s5296_s18   ;;  %s3320_s17 = sphi %s3406_s17, %s5295_s17  }
   0x7   : > { %4954 = sst [smem:[#allocation9_spill]] %s3336_s21  ;;  %s2684_s24 = sadd.s32 4294967294, %s3340_s22  }
   0x8   : > { %s40_s25 = sadd.s32 1, %s3336_s21  ;;  %s269_s26 = sadd.s32 1, %s3328_s19 }
   0x9   : > { %p42_p0 = scmp.ge.s32.totalorder %s40_s25, 2  ;;  %p279_p1 = scmp.ne.s32.totalorder %s3328_s19, %s3324_s18 }
   0xa   : > { %p280_p2 = scmp.eq.s32.totalorder %s2683_s23, 1  ;;  %p285_p3 = scmp.ne.s32.totalorder %s3324_s18, %s3320_s17 }
   0xb   : > { %s5298_s25 = smov (%p42_p0, %s40_s25), 0  ;;  %p286_p5 = scmp.eq.s32.totalorder %s2684_s24, 1 }
   0xc   : > { %4955 = sst [smem:[#allocation10_spill]] %s5298_s25  ;;  %p3446_p4 = por %p280_p2, %p279_p1 }
   0xd   : > { %s264_s28 = ssub.s32 %s3336_s21, %s5298_s25  ;;  %p2687_p6 = scmp.ge.s32.totalorder %s3340_s22, 1 }
   0xe   : > { %p267_p7 = scmp.eq.s32.totalorder %s264_s28, 0  ;;  %p3453_p8 = por %p286_p5, %p285_p3 }
   0xf   : > { %p372_p9 = scmp.lt.s32.totalorder %s3340_s22, 3 }
  0x10   : > { %s3459_s30 = scalar_select %p267_p7, %s3328_s19, %s269_s26  }
  0x11   : > { %p373_p10 = pnand %p2687_p6, %p372_p9 }
  0x12   : > { %4958 = sst [smem:[#allocation11_spill]] %s3459_s30 }
  0x13   : > { %376 = sbr.rel (%p373_p10) target bundleno = 1320 (0x528), region = 60 }
  0x1a   : > { %p422_p11 = scmp.lt.s32.totalorder %s3332_s20, 1  ;;  %v4790_v0 = vmov 0.0   ;;  %v3343_v1 = vmov 0   ;;  %v687_v2 = vld [vmem:[%s4778_s3] sm:$0xff]  ;;  %vm479_vm0 = vcmask 1043456   ;;  %vm469_vm1 = vcmask 31744  }
  0x1b   : > { %548 = vmatprep.mubr.f32.mxu0 %v4790_v0  ;;  %554 = vmatprep.mubr.f32.mxu1 %v4790_v0  ;;  %v449_v3 = vld [vmem:[%s4780_s5] sm:$0xff]  ;;  %v447_v9 = vld [vmem:[%s4779_s4 + $0x8] sm:$0xff]  ;;  %v448_v11 = vld [vmem:[%s4779_s4 + $0x10] sm:$0xff]  ;;  %vm815_vm2 = vcmask 64512   ;;  %s4952_s26 = sshll.u32 %s3332_s20, 7 }
  0x1c   : > { %s423_s12 = scalar_select %p422_p11, %s3332_s20, 1  ;;  %2828 = vset.pattern.permute.xlu1 %v3343_v1  ;;  %2827 = vset.pattern.permute.xlu0 %v3343_v1  ;;  %v570_v4 = vld [vmem:[%s4782_s7] sm:$0xff]  ;;  %v568_v14 = vld [vmem:[%s4781_s6 + $0x8] sm:$0xff]  ;;  %v569_v15 = vld [vmem:[%s4781_s6 + $0x10] sm:$0xff] }
  0x1d   : > { %690 = vperm.xlu0 %2827, %v687_v2   ;;  %454 = vperm.xlu1 %2828, %v449_v3   ;;  %v446_v8 = vld [vmem:[%s4779_s4] sm:$0xff]  ;;  %v572_v47 = vld [vmem:[%s4782_s7 + $0x10] sm:$0xff]  ;;  %v571_v48 = vld [vmem:[%s4782_s7 + $0x8] sm:$0xff]  ;;  %s4690_s25 = scalar_lea.hbm %s4786_s11, %s4952_s26 }
  0x1e   : > { %s2755_s23 = sshll.u32 %s423_s12, 3  ;;  %v686_v12 = vld [vmem:[%s4777_s2] sm:$0xff] }
  0x1f   : > { %s3479_s21 = scalar_lea.vmem %s4775_s0, %s2755_s23  ;;  %s3484_s13 = scalar_lea.vmem %s4776_s1, %s2755_s23  ;;  %v567_v13 = vld [vmem:[%s4781_s6] sm:$0xff] }
  0x20   : > { %v436_v5 = vld [vmem:[%s3479_s21] sm:$0xff]  ;;  %s3344_s23 = smov [#allocation4]  }
  0x21   : > { %v437_v6 = vld [vmem:[%s3484_s13] sm:$0xff]  ;;  %v3488_v7 = vcombine.high %v436_v5, %v436_v5  ;;  %575 = vperm.xlu0 %2827, %v570_v4  }
  0x22   : > { %v589_v10 = vcombine.high %v437_v6, %v437_v6 }
  0x23   : > { %4959 = vst [vmem:[#allocation12_spill] sm:$0xff] %v3488_v7  ;;  %2694 = vmatprep.subr.msk.mxu0 %vm479_vm0, %v3488_v7  ;;  %2759 = vmatprep.subr.msk.mxu1 %vm479_vm0, %v3488_v7 }
  0x24   : > { %2695 = vmatpush1.msk.msra.mxu0 %vm479_vm0, %v436_v5  ;;  %2760 = vmatpush1.msk.msra.mxu1 %vm479_vm0, %v436_v5 }
  0x25   : > { %2696 = vmatmul.mubr.msk.f32.vlgmr.msra.gmra.mrb[0].mxu0 %vm469_vm1, %v446_v8  ;;  %2697 = vmatmul.mubr.msk.f32.vlgmr.msra.gmra.mrb[0].mxu1 %vm469_vm1, %v447_v9 }
  0x26   : > { %2704 = vmatprep.subr.msk.mxu0 %vm479_vm0, %v3488_v7  ;;  %560 = vmatprep.mubr.f32.mxu1 %v4790_v0 }
  0x27   : > { %2705 = vmatpush1.msk.msra.mxu0 %vm479_vm0, %v436_v5  ;;  %766 = vmatprep.mubr.f32.mxu0 %v4790_v0 }
  0x28   : > { %2699 = vmatprep.subr.msk.mxu1 %vm479_vm0, %v589_v10 }
  0x29   : > { %2698 = vmatmul.mubr.msk.f32.gmra.mrb[2].mxu1 %vm469_vm1, %v448_v11  ;;  %2706 = vmatmul.mubr.msk.f32.vlgmr.msra.gmra.mrb[2].mxu0 %vm469_vm1, %v686_v12 }
  0x2a   : > { %2700 = vmatpush1.msk.msra.mxu1 %vm479_vm0, %v437_v6  ;;  %667 = vmatprep.mubr.f32.mxu1 %v4790_v0 }
  0x2b   : > { %1101 = vmatprep.mubr.bf16.mxu0 %v3343_v1 }
  0x2d   : > { %2701 = vmatmul.mubr.msk.f32.vlgmr.msra.gmra.mrb[4].mxu1 %vm469_vm1, %v567_v13 }
  0x2e   : > { %673 = vmatprep.mubr.f32.mxu1 %v4790_v0 }
  0x31   : > { %2702 = vmatmul.mubr.msk.f32.gmra.mrb[6].mxu1 %vm469_vm1, %v568_v14 }
  0x32   : > { %679 = vmatprep.mubr.f32.mxu1 %v4790_v0 }
  0x35   : > { %2703 = vmatmul.mubr.msk.f32.gmra.mrb[8].mxu1 %vm469_vm1, %v569_v15 }
  0x36   : > { %902 = vmatprep.mubr.bf16.mxu1 %v3343_v1 }
  0x9c   : > { %v455_v16 = vpop.permute.xlu1 %454  ;;  %v691_v22 = vpop.permute.xlu0 %690 }
  0xa0   : > { %v576_v34 = vpop.permute.xlu0 %575 }
  0xf8   : > { %v550_v17 = vpop.f32.mrb[0].mxu0  ;;  %v3536_v18 = vpop.f32.mrb[0].mxu1 }
  0xf9   : > { %4960 = vst [vmem:[#allocation13_spill] sm:$0xff] %v3536_v18  ;;  %v551_v19 = vadd.f32 %v550_v17, %v455_v16  ;;  %v552_v20 = vpop.f32.mrb[1].mxu0  ;;  %v3538_v21 = vpop.f32.mrb[1].mxu1 }
  0xfa   : > { %4961 = vst [vmem:[#allocation14_spill] sm:$0xff] %v3538_v21  ;;  %v553_v23 = vadd.f32 %v552_v20, %v455_v16 }
  0xfb   : > { %v775_v24 = vpack.c.bf16 %v551_v19, %v551_v19 }
  0xfc   : > { %v776_v25 = vpack.c.bf16 %v553_v23, %v553_v23  ;;  %v768_v26 = vpop.f32.mrb[2].mxu0  ;;  %v3540_v27 = vpop.f32.mrb[2].mxu1 }
  0xfd   : > { %4962 = vst [vmem:[#allocation15_spill] sm:$0xff] %v3540_v27  ;;  %v865_v28 = vsel %vm479_vm0, %v775_v24, 0  ;;  %v769_v29 = vadd.f32 %v768_v26, %v691_v22  ;;  %v770_v30 = vpop.f32.mrb[3].mxu0  ;;  %v3543_v31 = vpop.f32.mrb[3].mxu1 }
  0xfe   : > { %4963 = vst [vmem:[#allocation16_spill] sm:$0xff] %v3543_v31  ;;  %v771_v32 = vadd.f32 %v770_v30, %v691_v22  ;;  %2707 = vmatprep.subr.msk.bf16.mxu1 %vm479_vm0, %v776_v25 }
  0xff   : > { %v773_v33 = vpack.c.bf16 %v769_v29, %v769_v29  ;;  %871 = vmatpush1.bf16.msra.mxu1 %v865_v28 }
 0x100   : > { %v774_v35 = vpack.c.bf16 %v771_v32, %v771_v32  ;;  %v669_v36 = vpop.f32.mrb[4].mxu1 }
 0x101   : > { %v670_v37 = vadd.f32 %v669_v36, %v576_v34  ;;  %v671_v38 = vpop.f32.mrb[5].mxu1  ;;  %783 = vxpose.xlu1.c.b16.start.end [1/1] (short) %v773_v33, 128 }
 0x102   : > { %v672_v39 = vadd.f32 %v671_v38, %v576_v34  ;;  %799 = vxpose.xlu0.c.b16.start.end [1/1] (short) %v774_v35, 128 }
 0x103   : > { %v779_v40 = vpack.c.bf16 %v670_v37, %v670_v37 }
 0x104   : > { %v780_v41 = vpack.c.bf16 %v672_v39, %v672_v39  ;;  %v675_v43 = vpop.f32.mrb[6].mxu1 }
 0x105   : > { %v1064_v42 = vsel %vm479_vm0, %v779_v40, 0  ;;  %v677_v44 = vpop.f32.mrb[7].mxu1 }
 0x106   : > { %2724 = vmatprep.subr.msk.bf16.mxu0 %vm479_vm0, %v780_v41 }
 0x107   : > { %1070 = vmatpush1.bf16.msra.mxu0 %v1064_v42 }
 0x108   : > { %v681_v45 = vpop.f32.mrb[8].mxu1 }
 0x109   : > { %v683_v46 = vpop.f32.mrb[9].mxu1 }
 0x121   : > { %585 = vperm.xlu1 %2828, %v572_v47  }
 0x127   : > { %580 = vperm.xlu0 %2827, %v571_v48  }
 0x167   : > { %v791_v49 = vpop.trf.xlu1 }
 0x168   : > { %2708 = vmatmul.mubr.msk.bf16.vlgmr.msra.gmra.mrb[12].mxu1 %vm815_vm2, %v791_v49  ;;  %2725 = vmatmul.mubr.msk.bf16.vlgmr.msra.gmra.mrb[4].mxu0 %vm815_vm2, %v791_v49  ;;  %v807_v52 = vpop.trf.xlu0 }
 0x169   : > { %1111 = vmatprep.mubr.bf16.mxu0 %v3343_v1  ;;  %912 = vmatprep.mubr.bf16.mxu1 %v3343_v1 }
 0x16b   : > { %v792_v50 = vpop.trf.xlu1 }
 0x16c   : > { %v808_v53 = vpop.trf.xlu0 }
 0x16f   : > { %v793_v51 = vpop.trf.xlu1 }
 0x170   : > { %2709 = vmatmul.mubr.msk.bf16.gmra.mrb[16].mxu1 %vm815_vm2, %v792_v50  ;;  %2726 = vmatmul.mubr.msk.bf16.gmra.mrb[8].mxu0 %vm815_vm2, %v792_v50  ;;  %v809_v55 = vpop.trf.xlu0 }
 0x171   : > { %1121 = vmatprep.mubr.bf16.mxu0 %v3343_v1  ;;  %922 = vmatprep.mubr.bf16.mxu1 %v3343_v1 }
 0x173   : > { %v794_v54 = vpop.trf.xlu1 }
 0x174   : > { %v810_v57 = vpop.trf.xlu0 }
 0x177   : > { %v795_v56 = vpop.trf.xlu1 }
 0x178   : > { %2710 = vmatmul.mubr.msk.bf16.gmra.mrb[20].mxu1 %vm815_vm2, %v793_v51  ;;  %2727 = vmatmul.mubr.msk.bf16.gmra.mrb[12].mxu0 %vm815_vm2, %v793_v51  ;;  %v811_v59 = vpop.trf.xlu0 }
 0x179   : > { %1131 = vmatprep.mubr.bf16.mxu0 %v3343_v1  ;;  %932 = vmatprep.mubr.bf16.mxu1 %v3343_v1 }
 0x17b   : > { %v796_v58 = vpop.trf.xlu1 }
 0x17c   : > { %v812_v60 = vpop.trf.xlu0 }
 0x17f   : > { %v797_v61 = vpop.trf.xlu1 }
 0x180   : > { %2711 = vmatmul.mubr.msk.bf16.gmra.mrb[24].mxu1 %vm815_vm2, %v794_v54  ;;  %2728 = vmatmul.mubr.msk.bf16.gmra.mrb[16].mxu0 %vm815_vm2, %v794_v54  ;;  %v813_v62 = vpop.trf.xlu0 }
 0x181   : > { %1141 = vmatprep.mubr.bf16.mxu0 %v3343_v1  ;;  %942 = vmatprep.mubr.bf16.mxu1 %v3343_v1 }
 0x183   : > { %v798_v63 = vpop.trf.xlu1 }
 0x184   : > { %v814_v2 = vpop.trf.xlu0 }
 0x188   : > { %2712 = vmatmul.mubr.msk.bf16.gmra.mrb[28].mxu1 %vm815_vm2, %v795_v56  ;;  %2729 = vmatmul.mubr.msk.bf16.gmra.mrb[20].mxu0 %vm815_vm2, %v795_v56 }
 0x189   : > { %1151 = vmatprep.mubr.bf16.mxu0 %v3343_v1  ;;  %952 = vmatprep.mubr.bf16.mxu1 %v3343_v1 }
 0x190   : > { %2713 = vmatmul.mubr.msk.bf16.gmra.mrb[32].mxu1 %vm815_vm2, %v796_v58  ;;  %2730 = vmatmul.mubr.msk.bf16.gmra.mrb[24].mxu0 %vm815_vm2, %v796_v58 }
 0x191   : > { %1161 = vmatprep.mubr.bf16.mxu0 %v3343_v1  ;;  %962 = vmatprep.mubr.bf16.mxu1 %v3343_v1 }
 0x198   : > { %2714 = vmatmul.mubr.msk.bf16.gmra.mrb[36].mxu1 %vm815_vm2, %v797_v61  ;;  %2731 = vmatmul.mubr.msk.bf16.gmra.mrb[28].mxu0 %vm815_vm2, %v797_v61 }
 0x199   : > { %972 = vmatprep.mubr.bf16.mxu1 %v3343_v1  ;;  %1171 = vmatprep.mubr.bf16.mxu0 %v3343_v1 }
 0x1a0   : > { %2732 = vmatmul.mubr.msk.bf16.gmra.mrb[32].mxu0 %vm815_vm2, %v798_v63  ;;  %2715 = vmatmul.mubr.msk.bf16.gmra.mrb[40].mxu1 %vm815_vm2, %v798_v63  ;;  %v586_v3 = vpop.permute.xlu1 %585 }
 0x1a1   : > { %982 = vmatprep.mubr.bf16.mxu1 %v3343_v1  ;;  %1181 = vmatprep.mubr.bf16.mxu0 %v3343_v1  ;;  %v3586_v5 = vadd.f32 %v681_v45, %v586_v3  ;;  %v684_v6 = vadd.f32 %v683_v46, %v586_v3 }
 0x1a3   : > { %4964 = vst [vmem:[#allocation17_spill] sm:$0xff] %v3586_v5 }
 0x1a6   : > { %v581_v4 = vpop.permute.xlu0 %580 }
 0x1a7   : > { %v3588_v8 = vadd.f32 %v675_v43, %v581_v4  ;;  %v678_v9 = vadd.f32 %v677_v44, %v581_v4 }
 0x1a8   : > { %2716 = vmatmul.mubr.msk.bf16.gmra.mrb[44].mxu1 %vm815_vm2, %v807_v52  ;;  %2733 = vmatmul.mubr.msk.bf16.gmra.mrb[36].mxu0 %vm815_vm2, %v807_v52 }
 0x1a9   : > { %4965 = vst [vmem:[#allocation18_spill] sm:$0xff] %v3588_v8  ;;  %992 = vmatprep.mubr.bf16.mxu1 %v3343_v1  ;;  %1191 = vmatprep.mubr.bf16.mxu0 %v3343_v1  ;;  %v782_v11 = vpack.c.bf16 %v684_v6, %v678_v9 }
 0x1b0   : > { %2717 = vmatmul.mubr.msk.bf16.gmra.mrb[48].mxu1 %vm815_vm2, %v808_v53  ;;  %2734 = vmatmul.mubr.msk.bf16.gmra.mrb[40].mxu0 %vm815_vm2, %v808_v53 }
 0x1b1   : > { %1002 = vmatprep.mubr.bf16.mxu1 %v3343_v1  ;;  %1201 = vmatprep.mubr.bf16.mxu0 %v3343_v1 }
 0x1b8   : > { %2718 = vmatmul.mubr.msk.bf16.gmra.mrb[52].mxu1 %vm815_vm2, %v809_v55  ;;  %2735 = vmatmul.mubr.msk.bf16.gmra.mrb[44].mxu0 %vm815_vm2, %v809_v55 }
 0x1b9   : > { %1012 = vmatprep.mubr.bf16.mxu1 %v3343_v1  ;;  %1211 = vmatprep.mubr.bf16.mxu0 %v3343_v1 }
 0x1c0   : > { %2719 = vmatmul.mubr.msk.bf16.gmra.mrb[56].mxu1 %vm815_vm2, %v810_v57  ;;  %2736 = vmatmul.mubr.msk.bf16.gmra.mrb[48].mxu0 %vm815_vm2, %v810_v57 }
 0x1c1   : > { %1022 = vmatprep.mubr.bf16.mxu1 %v3343_v1  ;;  %1221 = vmatprep.mubr.bf16.mxu0 %v3343_v1 }
 0x1c8   : > { %2720 = vmatmul.mubr.msk.bf16.gmra.mrb[60].mxu1 %vm815_vm2, %v811_v59  ;;  %2737 = vmatmul.mubr.msk.bf16.gmra.mrb[52].mxu0 %vm815_vm2, %v811_v59 }
 0x1c9   : > { %1032 = vmatprep.mubr.bf16.mxu1 %v3343_v1  ;;  %1231 = vmatprep.mubr.bf16.mxu0 %v3343_v1 }
 0x1d0   : > { %2721 = vmatmul.mubr.msk.bf16.gmra.mrb[64].mxu1 %vm815_vm2, %v812_v60  ;;  %2738 = vmatmul.mubr.msk.bf16.gmra.mrb[56].mxu0 %vm815_vm2, %v812_v60 }
 0x1d1   : > { %1042 = vmatprep.mubr.bf16.mxu1 %v3343_v1  ;;  %1241 = vmatprep.mubr.bf16.mxu0 %v3343_v1 }
 0x1d8   : > { %2722 = vmatmul.mubr.msk.bf16.gmra.mrb[68].mxu1 %vm815_vm2, %v813_v62  ;;  %2739 = vmatmul.mubr.msk.bf16.gmra.mrb[60].mxu0 %vm815_vm2, %v813_v62 }
 0x1d9   : > { %1052 = vmatprep.mubr.bf16.mxu1 %v3343_v1  ;;  %1251 = vmatprep.mubr.bf16.mxu0 %v3343_v1 }
 0x1e0   : > { %2723 = vmatmul.mubr.msk.bf16.gmra.mrb[72].mxu1 %vm815_vm2, %v814_v2  ;;  %2740 = vmatmul.mubr.msk.bf16.gmra.mrb[64].mxu0 %vm815_vm2, %v814_v2 }
 0x1e1   : > { %2318 = vmatprep.mubr.bf16.mxu0 %v782_v11 }
 0x23b   : > { %v3622_v12 = vpop.f32.mrb[12].mxu1  ;;  %v3624_v13 = vpop.f32.mrb[4].mxu0 }
 0x23c   : > { %v3626_v14 = vpop.f32.mrb[13].mxu1  ;;  %v3628_v15 = vpop.f32.mrb[5].mxu0 }
 0x23d   : > { %v3630_v16 = vpop.f32.mrb[14].mxu1  ;;  %v3632_v17 = vpop.f32.mrb[6].mxu0  ;;  %v1774_v1 = vmax.f32 %v3624_v13, %v3628_v15  ;;  %v1262_v19 = vmax.f32 %v3622_v12, %v3626_v14 }
 0x23e   : > { %v3638_v20 = vpop.f32.mrb[15].mxu1  ;;  %v3640_v22 = vpop.f32.mrb[7].mxu0 }
 0x23f   : > { %1775 = vmax.xlane.f32.xlu0 %v1774_v1  ;;  %v1777_v23 = vmax.f32 %v3632_v17, %v3640_v22  ;;  %v1265_v24 = vmax.f32 %v3630_v16, %v3638_v20 }
 0x241   : > { %1778 = vmax.xlane.f32.xlu1 %v1777_v23 }
 0x243   : > { %v3646_v25 = vpop.f32.mrb[8].mxu0  ;;  %1263 = vmax.xlane.f32.xlu0 %v1262_v19  ;;  %v3648_v26 = vpop.f32.mrb[16].mxu1 }
 0x244   : > { %v3650_v28 = vpop.f32.mrb[17].mxu1  ;;  %v3652_v29 = vpop.f32.mrb[9].mxu0 }
 0x245   : > { %v3654_v30 = vpop.f32.mrb[10].mxu0  ;;  %1266 = vmax.xlane.f32.xlu1 %v1265_v24  ;;  %v3656_v32 = vpop.f32.mrb[18].mxu1  ;;  %v1780_v33 = vmax.f32 %v3646_v25, %v3652_v29  ;;  %v1268_v34 = vmax.f32 %v3648_v26, %v3650_v28 }
 0x246   : > { %v3662_v35 = vpop.f32.mrb[19].mxu1  ;;  %v3664_v36 = vpop.f32.mrb[11].mxu0 }
 0x247   : > { %1781 = vmax.xlane.f32.xlu0 %v1780_v33  ;;  %v1783_v37 = vmax.f32 %v3654_v30, %v3664_v36  ;;  %v1271_v38 = vmax.f32 %v3656_v32, %v3662_v35 }
 0x249   : > { %1784 = vmax.xlane.f32.xlu1 %v1783_v37 }
 0x24b   : > { %v3670_v39 = vpop.f32.mrb[12].mxu0  ;;  %1269 = vmax.xlane.f32.xlu0 %v1268_v34  ;;  %v3672_v40 = vpop.f32.mrb[20].mxu1 }
 0x24c   : > { %v3674_v41 = vpop.f32.mrb[21].mxu1  ;;  %v3676_v42 = vpop.f32.mrb[13].mxu0 }
 0x24d   : > { %v3678_v43 = vpop.f32.mrb[14].mxu0  ;;  %1272 = vmax.xlane.f32.xlu1 %v1271_v38  ;;  %v3680_v44 = vpop.f32.mrb[22].mxu1  ;;  %v1786_v45 = vmax.f32 %v3670_v39, %v3676_v42  ;;  %v1274_v46 = vmax.f32 %v3672_v40, %v3674_v41 }
 0x24e   : > { %v3686_v47 = vpop.f32.mrb[23].mxu1  ;;  %v3688_v48 = vpop.f32.mrb[15].mxu0 }
 0x24f   : > { %1787 = vmax.xlane.f32.xlu0 %v1786_v45  ;;  %v1789_v49 = vmax.f32 %v3678_v43, %v3688_v48  ;;  %v1277_v50 = vmax.f32 %v3680_v44, %v3686_v47 }
 0x251   : > { %1790 = vmax.xlane.f32.xlu1 %v1789_v49 }
 0x253   : > { %v3694_v51 = vpop.f32.mrb[16].mxu0  ;;  %1275 = vmax.xlane.f32.xlu0 %v1274_v46  ;;  %v3696_v52 = vpop.f32.mrb[24].mxu1 }
 0x254   : > { %v3698_v53 = vpop.f32.mrb[25].mxu1  ;;  %v3700_v54 = vpop.f32.mrb[17].mxu0 }
 0x255   : > { %v3702_v55 = vpop.f32.mrb[18].mxu0  ;;  %1278 = vmax.xlane.f32.xlu1 %v1277_v50  ;;  %v3704_v56 = vpop.f32.mrb[26].mxu1  ;;  %v1792_v57 = vmax.f32 %v3694_v51, %v3700_v54  ;;  %v1280_v58 = vmax.f32 %v3696_v52, %v3698_v53 }
 0x256   : > { %v3710_v59 = vpop.f32.mrb[27].mxu1  ;;  %v3712_v60 = vpop.f32.mrb[19].mxu0 }
 0x257   : > { %1793 = vmax.xlane.f32.xlu0 %v1792_v57  ;;  %v1795_v61 = vmax.f32 %v3702_v55, %v3712_v60  ;;  %v1283_v62 = vmax.f32 %v3704_v56, %v3710_v59 }
 0x259   : > { %1796 = vmax.xlane.f32.xlu1 %v1795_v61 }
 0x25b   : > { %v3718_v63 = vpop.f32.mrb[20].mxu0  ;;  %1281 = vmax.xlane.f32.xlu0 %v1280_v58  ;;  %v3720_v2 = vpop.f32.mrb[28].mxu1 }
 0x25c   : > { %v3722_v3 = vpop.f32.mrb[29].mxu1  ;;  %v3724_v4 = vpop.f32.mrb[21].mxu0 }
 0x25d   : > { %v3726_v6 = vpop.f32.mrb[22].mxu0  ;;  %1284 = vmax.xlane.f32.xlu1 %v1283_v62  ;;  %v3728_v9 = vpop.f32.mrb[30].mxu1  ;;  %v1798_v11 = vmax.f32 %v3718_v63, %v3724_v4  ;;  %v1286_v1 = vmax.f32 %v3720_v2, %v3722_v3 }
 0x25e   : > { %v3734_v19 = vpop.f32.mrb[31].mxu1  ;;  %v3736_v23 = vpop.f32.mrb[23].mxu0 }
 0x25f   : > { %1799 = vmax.xlane.f32.xlu0 %v1798_v11  ;;  %v1801_v24 = vmax.f32 %v3726_v6, %v3736_v23  ;;  %v1289_v33 = vmax.f32 %v3728_v9, %v3734_v19 }
 0x261   : > { %1802 = vmax.xlane.f32.xlu1 %v1801_v24 }
 0x263   : > { %v3742_v34 = vpop.f32.mrb[24].mxu0  ;;  %1287 = vmax.xlane.f32.xlu0 %v1286_v1  ;;  %v3744_v37 = vpop.f32.mrb[32].mxu1 }
 0x264   : > { %v3746_v38 = vpop.f32.mrb[33].mxu1  ;;  %v3748_v45 = vpop.f32.mrb[25].mxu0 }
 0x265   : > { %v3750_v46 = vpop.f32.mrb[26].mxu0  ;;  %1290 = vmax.xlane.f32.xlu1 %v1289_v33  ;;  %v3752_v49 = vpop.f32.mrb[34].mxu1  ;;  %v1804_v50 = vmax.f32 %v3742_v34, %v3748_v45  ;;  %v1292_v57 = vmax.f32 %v3744_v37, %v3746_v38 }
 0x266   : > { %v3758_v58 = vpop.f32.mrb[35].mxu1  ;;  %v3760_v61 = vpop.f32.mrb[27].mxu0 }
 0x267   : > { %1805 = vmax.xlane.f32.xlu0 %v1804_v50  ;;  %v1807_v62 = vmax.f32 %v3750_v46, %v3760_v61  ;;  %v1295_v11 = vmax.f32 %v3752_v49, %v3758_v58 }
 0x269   : > { %1808 = vmax.xlane.f32.xlu1 %v1807_v62 }
 0x26b   : > { %v3766_v1 = vpop.f32.mrb[28].mxu0  ;;  %1293 = vmax.xlane.f32.xlu0 %v1292_v57  ;;  %v3768_v24 = vpop.f32.mrb[36].mxu1 }
 0x26c   : > { %4966 = vst [vmem:[#allocation19_spill] sm:$0xff] %v3766_v1  ;;  %4967 = vst [vmem:[#allocation20_spill] sm:$0xff] %v3768_v24  ;;  %v3770_v33 = vpop.f32.mrb[37].mxu1  ;;  %v3772_v0 = vpop.f32.mrb[29].mxu0 }
 0x26d   : > { %4968 = vst [vmem:[#allocation21_spill] sm:$0xff] %v3770_v33  ;;  %4969 = vst [vmem:[#allocation22_spill] sm:$0xff] %v3772_v0  ;;  %v3774_v10 = vpop.f32.mrb[30].mxu0  ;;  %1296 = vmax.xlane.f32.xlu1 %v1295_v11  ;;  %v3776_v50 = vpop.f32.mrb[38].mxu1  ;;  %v1810_v8 = vmax.f32 %v3766_v1, %v3772_v0  ;;  %v1298_v62 = vmax.f32 %v3768_v24, %v3770_v33 }
 0x26e   : > { %4970 = vst [vmem:[#allocation23_spill] sm:$0xff] %v3774_v10  ;;  %4971 = vst [vmem:[#allocation24_spill] sm:$0xff] %v3776_v50  ;;  %v3782_v5 = vpop.f32.mrb[39].mxu1  ;;  %v3784_v57 = vpop.f32.mrb[31].mxu0 }
 0x26f   : > { %4972 = vst [vmem:[#allocation25_spill] sm:$0xff] %v3782_v5  ;;  %4973 = vst [vmem:[#allocation26_spill] sm:$0xff] %v3784_v57  ;;  %1811 = vmax.xlane.f32.xlu0 %v1810_v8  ;;  %v1813_v7 = vmax.f32 %v3774_v10, %v3784_v57  ;;  %v1301_v31 = vmax.f32 %v3776_v50, %v3782_v5 }
 0x271   : > { %1814 = vmax.xlane.f32.xlu1 %v1813_v7 }
 0x273   : > { %v3790_v11 = vpop.f32.mrb[32].mxu0  ;;  %1299 = vmax.xlane.f32.xlu0 %v1298_v62  ;;  %v3792_v27 = vpop.f32.mrb[40].mxu1 }
 0x274   : > { %4974 = vst [vmem:[#allocation27_spill] sm:$0xff] %v3790_v11  ;;  %4975 = vst [vmem:[#allocation28_spill] sm:$0xff] %v3792_v27  ;;  %v3794_v21 = vpop.f32.mrb[41].mxu1  ;;  %v3796_v18 = vpop.f32.mrb[33].mxu0 }
 0x275   : > { %4976 = vst [vmem:[#allocation29_spill] sm:$0xff] %v3794_v21  ;;  %4977 = vst [vmem:[#allocation30_spill] sm:$0xff] %v3796_v18  ;;  %v3798_v33 = vpop.f32.mrb[34].mxu0  ;;  %1302 = vmax.xlane.f32.xlu1 %v1301_v31  ;;  %v3800_v8 = vpop.f32.mrb[42].mxu1  ;;  %v1816_v24 = vmax.f32 %v3790_v11, %v3796_v18  ;;  %v1304_v7 = vmax.f32 %v3792_v27, %v3794_v21 }
 0x276   : > { %4978 = vst [vmem:[#allocation31_spill] sm:$0xff] %v3798_v33  ;;  %4979 = vst [vmem:[#allocation32_spill] sm:$0xff] %v3800_v8  ;;  %v3806_v5 = vpop.f32.mrb[43].mxu1  ;;  %v3808_v62 = vpop.f32.mrb[35].mxu0 }
 0x277   : > { %4980 = vst [vmem:[#allocation33_spill] sm:$0xff] %v3806_v5  ;;  %4981 = vst [vmem:[#allocation34_spill] sm:$0xff] %v3808_v62  ;;  %1817 = vmax.xlane.f32.xlu0 %v1816_v24  ;;  %v1819_v50 = vmax.f32 %v3798_v33, %v3808_v62  ;;  %v1307_v57 = vmax.f32 %v3800_v8, %v3806_v5 }
 0x279   : > { %1820 = vmax.xlane.f32.xlu1 %v1819_v50 }
 0x27b   : > { %v3814_v31 = vpop.f32.mrb[36].mxu0  ;;  %1305 = vmax.xlane.f32.xlu0 %v1304_v7  ;;  %v3816_v10 = vpop.f32.mrb[44].mxu1 }
 0x27c   : > { %4982 = vst [vmem:[#allocation35_spill] sm:$0xff] %v3814_v31  ;;  %4983 = vst [vmem:[#allocation36_spill] sm:$0xff] %v3816_v10  ;;  %v3818_v18 = vpop.f32.mrb[45].mxu1  ;;  %v3820_v21 = vpop.f32.mrb[37].mxu0 }
 0x27d   : > { %4984 = vst [vmem:[#allocation37_spill] sm:$0xff] %v3818_v18  ;;  %4985 = vst [vmem:[#allocation38_spill] sm:$0xff] %v3820_v21  ;;  %v3822_v27 = vpop.f32.mrb[38].mxu0  ;;  %1308 = vmax.xlane.f32.xlu1 %v1307_v57  ;;  %v3824_v24 = vpop.f32.mrb[46].mxu1  ;;  %v1822_v62 = vmax.f32 %v3814_v31, %v3820_v21  ;;  %v1310_v50 = vmax.f32 %v3816_v10, %v3818_v18 }
 0x27e   : > { %4986 = vst [vmem:[#allocation39_spill] sm:$0xff] %v3822_v27  ;;  %4987 = vst [vmem:[#allocation40_spill] sm:$0xff] %v3824_v24  ;;  %v3830_v5 = vpop.f32.mrb[47].mxu1  ;;  %v3832_v7 = vpop.f32.mrb[39].mxu0 }
 0x27f   : > { %4988 = vst [vmem:[#allocation41_spill] sm:$0xff] %v3830_v5  ;;  %4989 = vst [vmem:[#allocation42_spill] sm:$0xff] %v3832_v7  ;;  %1823 = vmax.xlane.f32.xlu0 %v1822_v62  ;;  %v1825_v8 = vmax.f32 %v3822_v27, %v3832_v7  ;;  %v1313_v33 = vmax.f32 %v3824_v24, %v3830_v5 }
 0x281   : > { %1826 = vmax.xlane.f32.xlu1 %v1825_v8 }
 0x283   : > { %v3838_v57 = vpop.f32.mrb[40].mxu0  ;;  %1311 = vmax.xlane.f32.xlu0 %v1310_v50  ;;  %v3840_v11 = vpop.f32.mrb[48].mxu1 }
 0x284   : > { %4990 = vst [vmem:[#allocation43_spill] sm:$0xff] %v3838_v57  ;;  %4991 = vst [vmem:[#allocation44_spill] sm:$0xff] %v3840_v11  ;;  %v3842_v21 = vpop.f32.mrb[49].mxu1  ;;  %v3844_v18 = vpop.f32.mrb[41].mxu0 }
 0x285   : > { %4992 = vst [vmem:[#allocation45_spill] sm:$0xff] %v3842_v21  ;;  %4993 = vst [vmem:[#allocation46_spill] sm:$0xff] %v3844_v18  ;;  %v3846_v10 = vpop.f32.mrb[42].mxu0  ;;  %1314 = vmax.xlane.f32.xlu1 %v1313_v33  ;;  %v3848_v62 = vpop.f32.mrb[50].mxu1  ;;  %v1828_v7 = vmax.f32 %v3838_v57, %v3844_v18  ;;  %v1316_v8 = vmax.f32 %v3840_v11, %v3842_v21 }
 0x286   : > { %4994 = vst [vmem:[#allocation47_spill] sm:$0xff] %v3846_v10  ;;  %4995 = vst [vmem:[#allocation48_spill] sm:$0xff] %v3848_v62  ;;  %v3854_v5 = vpop.f32.mrb[51].mxu1  ;;  %v3856_v50 = vpop.f32.mrb[43].mxu0 }
 0x287   : > { %4996 = vst [vmem:[#allocation49_spill] sm:$0xff] %v3854_v5  ;;  %4997 = vst [vmem:[#allocation50_spill] sm:$0xff] %v3856_v50  ;;  %1829 = vmax.xlane.f32.xlu0 %v1828_v7  ;;  %v1831_v24 = vmax.f32 %v3846_v10, %v3856_v50  ;;  %v1319_v27 = vmax.f32 %v3848_v62, %v3854_v5 }
 0x289   : > { %1832 = vmax.xlane.f32.xlu1 %v1831_v24 }
 0x28b   : > { %v3862_v33 = vpop.f32.mrb[44].mxu0  ;;  %1317 = vmax.xlane.f32.xlu0 %v1316_v8  ;;  %v3864_v31 = vpop.f32.mrb[52].mxu1 }
 0x28c   : > { %4998 = vst [vmem:[#allocation51_spill] sm:$0xff] %v3862_v33  ;;  %4999 = vst [vmem:[#allocation52_spill] sm:$0xff] %v3864_v31  ;;  %v3866_v18 = vpop.f32.mrb[53].mxu1  ;;  %v3868_v21 = vpop.f32.mrb[45].mxu0 }
 0x28d   : > { %5000 = vst [vmem:[#allocation53_spill] sm:$0xff] %v3866_v18  ;;  %5001 = vst [vmem:[#allocation54_spill] sm:$0xff] %v3868_v21  ;;  %v3870_v11 = vpop.f32.mrb[46].mxu0  ;;  %1320 = vmax.xlane.f32.xlu1 %v1319_v27  ;;  %v3872_v7 = vpop.f32.mrb[54].mxu1  ;;  %v1834_v50 = vmax.f32 %v3862_v33, %v3868_v21  ;;  %v1322_v24 = vmax.f32 %v3864_v31, %v3866_v18 }
 0x28e   : > { %5002 = vst [vmem:[#allocation55_spill] sm:$0xff] %v3870_v11  ;;  %5003 = vst [vmem:[#allocation56_spill] sm:$0xff] %v3872_v7  ;;  %v3878_v5 = vpop.f32.mrb[55].mxu1  ;;  %v3880_v8 = vpop.f32.mrb[47].mxu0 }
 0x28f   : > { %5004 = vst [vmem:[#allocation57_spill] sm:$0xff] %v3878_v5  ;;  %5005 = vst [vmem:[#allocation58_spill] sm:$0xff] %v3880_v8  ;;  %1835 = vmax.xlane.f32.xlu0 %v1834_v50  ;;  %v1837_v62 = vmax.f32 %v3870_v11, %v3880_v8  ;;  %v1325_v10 = vmax.f32 %v3872_v7, %v3878_v5 }
 0x291   : > { %1838 = vmax.xlane.f32.xlu1 %v1837_v62 }
 0x293   : > { %v3886_v27 = vpop.f32.mrb[48].mxu0  ;;  %1323 = vmax.xlane.f32.xlu0 %v1322_v24  ;;  %v3888_v57 = vpop.f32.mrb[56].mxu1 }
 0x294   : > { %5006 = vst [vmem:[#allocation59_spill] sm:$0xff] %v3886_v27  ;;  %5007 = vst [vmem:[#allocation60_spill] sm:$0xff] %v3888_v57  ;;  %v3890_v21 = vpop.f32.mrb[57].mxu1  ;;  %v3892_v18 = vpop.f32.mrb[49].mxu0 }
 0x295   : > { %5008 = vst [vmem:[#allocation61_spill] sm:$0xff] %v3890_v21  ;;  %5009 = vst [vmem:[#allocation62_spill] sm:$0xff] %v3892_v18  ;;  %v3894_v31 = vpop.f32.mrb[50].mxu0  ;;  %1326 = vmax.xlane.f32.xlu1 %v1325_v10  ;;  %v3896_v50 = vpop.f32.mrb[58].mxu1  ;;  %v1840_v8 = vmax.f32 %v3886_v27, %v3892_v18  ;;  %v1328_v62 = vmax.f32 %v3888_v57, %v3890_v21 }
 0x296   : > { %5010 = vst [vmem:[#allocation63_spill] sm:$0xff] %v3894_v31  ;;  %5011 = vst [vmem:[#allocation64_spill] sm:$0xff] %v3896_v50  ;;  %v3902_v5 = vpop.f32.mrb[59].mxu1  ;;  %v3904_v24 = vpop.f32.mrb[51].mxu0 }
 0x297   : > { %5012 = vst [vmem:[#allocation65_spill] sm:$0xff] %v3902_v5  ;;  %5013 = vst [vmem:[#allocation66_spill] sm:$0xff] %v3904_v24  ;;  %1841 = vmax.xlane.f32.xlu0 %v1840_v8  ;;  %v1843_v7 = vmax.f32 %v3894_v31, %v3904_v24  ;;  %v1331_v11 = vmax.f32 %v3896_v50, %v3902_v5 }
 0x299   : > { %1844 = vmax.xlane.f32.xlu1 %v1843_v7 }
 0x29b   : > { %v3910_v10 = vpop.f32.mrb[52].mxu0  ;;  %1329 = vmax.xlane.f32.xlu0 %v1328_v62  ;;  %v3912_v33 = vpop.f32.mrb[60].mxu1 }
 0x29c   : > { %5014 = vst [vmem:[#allocation67_spill] sm:$0xff] %v3910_v10  ;;  %5015 = vst [vmem:[#allocation68_spill] sm:$0xff] %v3912_v33  ;;  %v3914_v18 = vpop.f32.mrb[61].mxu1  ;;  %v3916_v21 = vpop.f32.mrb[53].mxu0 }
 0x29d   : > { %5016 = vst [vmem:[#allocation69_spill] sm:$0xff] %v3914_v18  ;;  %5017 = vst [vmem:[#allocation70_spill] sm:$0xff] %v3916_v21  ;;  %v3918_v57 = vpop.f32.mrb[54].mxu0  ;;  %1332 = vmax.xlane.f32.xlu1 %v1331_v11  ;;  %v3920_v8 = vpop.f32.mrb[62].mxu1  ;;  %v1846_v24 = vmax.f32 %v3910_v10, %v3916_v21  ;;  %v1334_v7 = vmax.f32 %v3912_v33, %v3914_v18 }
 0x29e   : > { %5018 = vst [vmem:[#allocation71_spill] sm:$0xff] %v3918_v57  ;;  %5019 = vst [vmem:[#allocation72_spill] sm:$0xff] %v3920_v8  ;;  %v3926_v5 = vpop.f32.mrb[63].mxu1  ;;  %v3928_v62 = vpop.f32.mrb[55].mxu0 }
 0x29f   : > { %5020 = vst [vmem:[#allocation73_spill] sm:$0xff] %v3926_v5  ;;  %5021 = vst [vmem:[#allocation74_spill] sm:$0xff] %v3928_v62  ;;  %1847 = vmax.xlane.f32.xlu0 %v1846_v24  ;;  %v1849_v50 = vmax.f32 %v3918_v57, %v3928_v62  ;;  %v1337_v31 = vmax.f32 %v3920_v8, %v3926_v5 }
 0x2a1   : > { %1850 = vmax.xlane.f32.xlu1 %v1849_v50 }
 0x2a3   : > { %v3934_v11 = vpop.f32.mrb[56].mxu0  ;;  %1335 = vmax.xlane.f32.xlu0 %v1334_v7  ;;  %v3936_v27 = vpop.f32.mrb[64].mxu1 }
 0x2a4   : > { %5022 = vst [vmem:[#allocation75_spill] sm:$0xff] %v3934_v11  ;;  %5023 = vst [vmem:[#allocation76_spill] sm:$0xff] %v3936_v27  ;;  %v3938_v21 = vpop.f32.mrb[65].mxu1  ;;  %v3940_v18 = vpop.f32.mrb[57].mxu0 }
 0x2a5   : > { %5024 = vst [vmem:[#allocation77_spill] sm:$0xff] %v3938_v21  ;;  %5025 = vst [vmem:[#allocation78_spill] sm:$0xff] %v3940_v18  ;;  %v3942_v33 = vpop.f32.mrb[58].mxu0  ;;  %1338 = vmax.xlane.f32.xlu1 %v1337_v31  ;;  %v3944_v24 = vpop.f32.mrb[66].mxu1  ;;  %v1852_v62 = vmax.f32 %v3934_v11, %v3940_v18  ;;  %v1340_v50 = vmax.f32 %v3936_v27, %v3938_v21 }
 0x2a6   : > { %5026 = vst [vmem:[#allocation79_spill] sm:$0xff] %v3942_v33  ;;  %5027 = vst [vmem:[#allocation80_spill] sm:$0xff] %v3944_v24  ;;  %v3950_v5 = vpop.f32.mrb[67].mxu1  ;;  %v3952_v7 = vpop.f32.mrb[59].mxu0 }
 0x2a7   : > { %5028 = vst [vmem:[#allocation81_spill] sm:$0xff] %v3950_v5  ;;  %5029 = vst [vmem:[#allocation82_spill] sm:$0xff] %v3952_v7  ;;  %1853 = vmax.xlane.f32.xlu0 %v1852_v62  ;;  %v1855_v8 = vmax.f32 %v3942_v33, %v3952_v7  ;;  %v1343_v57 = vmax.f32 %v3944_v24, %v3950_v5 }
 0x2a9   : > { %1856 = vmax.xlane.f32.xlu1 %v1855_v8 }
 0x2ab   : > { %v3958_v31 = vpop.f32.mrb[60].mxu0  ;;  %1341 = vmax.xlane.f32.xlu0 %v1340_v50  ;;  %v3960_v10 = vpop.f32.mrb[68].mxu1 }
 0x2ac   : > { %5030 = vst [vmem:[#allocation83_spill] sm:$0xff] %v3958_v31  ;;  %5031 = vst [vmem:[#allocation84_spill] sm:$0xff] %v3960_v10  ;;  %v3962_v18 = vpop.f32.mrb[69].mxu1  ;;  %v3964_v21 = vpop.f32.mrb[61].mxu0 }
 0x2ad   : > { %5032 = vst [vmem:[#allocation85_spill] sm:$0xff] %v3962_v18  ;;  %5033 = vst [vmem:[#allocation86_spill] sm:$0xff] %v3964_v21  ;;  %v3966_v27 = vpop.f32.mrb[62].mxu0  ;;  %1344 = vmax.xlane.f32.xlu1 %v1343_v57  ;;  %v3968_v62 = vpop.f32.mrb[70].mxu1  ;;  %v1858_v7 = vmax.f32 %v3958_v31, %v3964_v21  ;;  %v1346_v8 = vmax.f32 %v3960_v10, %v3962_v18 }
 0x2ae   : > { %5034 = vst [vmem:[#allocation87_spill] sm:$0xff] %v3966_v27  ;;  %5035 = vst [vmem:[#allocation88_spill] sm:$0xff] %v3968_v62  ;;  %v3974_v5 = vpop.f32.mrb[71].mxu1  ;;  %v3976_v50 = vpop.f32.mrb[63].mxu0 }
 0x2af   : > { %5036 = vst [vmem:[#allocation89_spill] sm:$0xff] %v3974_v5  ;;  %5037 = vst [vmem:[#allocation90_spill] sm:$0xff] %v3976_v50  ;;  %1859 = vmax.xlane.f32.xlu0 %v1858_v7  ;;  %v1861_v24 = vmax.f32 %v3966_v27, %v3976_v50  ;;  %v1349_v33 = vmax.f32 %v3968_v62, %v3974_v5 }
 0x2b1   : > { %1862 = vmax.xlane.f32.xlu1 %v1861_v24 }
 0x2b3   : > { %v3982_v57 = vpop.f32.mrb[64].mxu0  ;;  %1347 = vmax.xlane.f32.xlu0 %v1346_v8  ;;  %v3984_v11 = vpop.f32.mrb[72].mxu1 }
 0x2b4   : > { %5038 = vst [vmem:[#allocation91_spill] sm:$0xff] %v3982_v57  ;;  %5039 = vst [vmem:[#allocation92_spill] sm:$0xff] %v3984_v11  ;;  %v3986_v21 = vpop.f32.mrb[73].mxu1  ;;  %v3988_v18 = vpop.f32.mrb[65].mxu0 }
 0x2b5   : > { %5040 = vst [vmem:[#allocation93_spill] sm:$0xff] %v3986_v21  ;;  %5041 = vst [vmem:[#allocation94_spill] sm:$0xff] %v3988_v18  ;;  %v3990_v10 = vpop.f32.mrb[66].mxu0  ;;  %1350 = vmax.xlane.f32.xlu1 %v1349_v33  ;;  %v3992_v7 = vpop.f32.mrb[74].mxu1  ;;  %v1864_v50 = vmax.f32 %v3982_v57, %v3988_v18  ;;  %v1352_v24 = vmax.f32 %v3984_v11, %v3986_v21 }
 0x2b6   : > { %5042 = vst [vmem:[#allocation95_spill] sm:$0xff] %v3990_v10  ;;  %v3998_v5 = vpop.f32.mrb[75].mxu1  ;;  %v4000_v8 = vpop.f32.mrb[67].mxu0 }
 0x2b7   : > { %5043 = vst [vmem:[#allocation96_spill] sm:$0xff] %v4000_v8  ;;  %1865 = vmax.xlane.f32.xlu0 %v1864_v50  ;;  %v1867_v62 = vmax.f32 %v3990_v10, %v4000_v8  ;;  %v1355_v27 = vmax.f32 %v3992_v7, %v3998_v5 }
 0x2b9   : > { %1868 = vmax.xlane.f32.xlu1 %v1867_v62 }
 0x2bb   : > { %1353 = vmax.xlane.f32.xlu0 %v1352_v24 }
 0x2bd   : > { %1356 = vmax.xlane.f32.xlu1 %v1355_v27 }
 0x2cc   : > { %v1776_v33 = vpop.xlane.xlu0 %1775 }
 0x2cd   : > { %v1870_v18 = vsub.f32 %v3624_v13, %v1776_v33  ;;  %v1871_v57 = vsub.f32 %v3628_v15, %v1776_v33 }
 0x2ce   : > { %v1779_v21 = vpop.xlane.xlu1 %1778 }
 0x2cf   : > { %v1934_v11 = vmul.f32 1.442695, %v1870_v18  ;;  %v1936_v31 = vmul.f32 1.442695, %v1871_v57  ;;  %v1872_v0 = vsub.f32 %v3632_v17, %v1779_v21  ;;  %v1873_v50 = vsub.f32 %v3640_v22, %v1779_v21 }
 0x2d0   : > { %v1264_v1 = vpop.xlane.xlu0 %1263 }
 0x2d1   : > { %2832 = vpow2.f32 %v1934_v11  ;;  %v1938_v8 = vmul.f32 1.442695, %v1872_v0  ;;  %v1940_v10 = vmul.f32 1.442695, %v1873_v50  ;;  %v1358_v62 = vsub.f32 %v3622_v12, %v1264_v1 }
 0x2d2   : > { %2834 = vpow2.f32 %v1936_v31  ;;  %v1359_v27 = vsub.f32 %v3626_v14, %v1264_v1  ;;  %v1267_v24 = vpop.xlane.xlu1 %1266 }
 0x2d3   : > { %2836 = vpow2.f32 %v1938_v8  ;;  %v1422_v13 = vmul.f32 1.442695, %v1358_v62  ;;  %v1360_v15 = vsub.f32 %v3630_v16, %v1267_v24  ;;  %v1361_v18 = vsub.f32 %v3638_v20, %v1267_v24 }
 0x2d4   : > { %2838 = vpow2.f32 %v1940_v10  ;;  %v1424_v17 = vmul.f32 1.442695, %v1359_v27  ;;  %v1782_v57 = vpop.xlane.xlu0 %1781 }
 0x2d5   : > { %2840 = vpow2.f32 %v1422_v13  ;;  %v1426_v21 = vmul.f32 1.442695, %v1360_v15  ;;  %v1428_v22 = vmul.f32 1.442695, %v1361_v18  ;;  %v1874_v0 = vsub.f32 %v3646_v25, %v1782_v57 }
 0x2d6   : > { %2842 = vpow2.f32 %v1424_v17  ;;  %v1875_v12 = vsub.f32 %v3652_v29, %v1782_v57  ;;  %v1785_v11 = vpop.xlane.xlu1 %1784 }
 0x2d7   : > { %2844 = vpow2.f32 %v1426_v21  ;;  %v1942_v14 = vmul.f32 1.442695, %v1874_v0  ;;  %v1876_v1 = vsub.f32 %v3654_v30, %v1785_v11  ;;  %v1877_v16 = vsub.f32 %v3664_v36, %v1785_v11 }
 0x2d8   : > { %2846 = vpow2.f32 %v1428_v22  ;;  %v1944_v20 = vmul.f32 1.442695, %v1875_v12  ;;  %v1270_v10 = vpop.xlane.xlu0 %1269 }
 0x2d9   : > { %2848 = vpow2.f32 %v1942_v14  ;;  %v1946_v31 = vmul.f32 1.442695, %v1876_v1  ;;  %v1948_v8 = vmul.f32 1.442695, %v1877_v16  ;;  %v1362_v33 = vsub.f32 %v3648_v26, %v1270_v10 }
 0x2da   : > { %2850 = vpow2.f32 %v1944_v20  ;;  %v1363_v25 = vsub.f32 %v3650_v28, %v1270_v10  ;;  %v1273_v50 = vpop.xlane.xlu1 %1272 }
 0x2db   : > { %v4020_v29 = vpop.eup %2832  ;;  %2852 = vpow2.f32 %v1946_v31  ;;  %v1430_v62 = vmul.f32 1.442695, %v1362_v33  ;;  %v1364_v30 = vsub.f32 %v3656_v32, %v1273_v50  ;;  %v1365_v36 = vsub.f32 %v3662_v35, %v1273_v50 }
 0x2dc   : > { %v4024_v27 = vpop.eup %2834  ;;  %2854 = vpow2.f32 %v1948_v8  ;;  %v1432_v24 = vmul.f32 1.442695, %v1363_v25  ;;  %v1788_v13 = vpop.xlane.xlu0 %1787 }
 0x2dd   : > { %v4026_v15 = vpop.eup %2836  ;;  %2856 = vpow2.f32 %v1430_v62  ;;  %v1434_v26 = vmul.f32 1.442695, %v1364_v30  ;;  %v1436_v18 = vmul.f32 1.442695, %v1365_v36  ;;  %v1878_v28 = vsub.f32 %v3670_v39, %v1788_v13 }
 0x2de   : > { %v4029_v17 = vpop.eup %2838  ;;  %2858 = vpow2.f32 %v1432_v24  ;;  %v1879_v57 = vsub.f32 %v3676_v42, %v1788_v13  ;;  %v1791_v32 = vpop.xlane.xlu1 %1790  ;;  %v2062_v35 = vadd.f32 %v4024_v27, %v4020_v29 }
 0x2df   : > { %v4034_v21 = vpop.eup %2840  ;;  %2860 = vpow2.f32 %v1434_v26  ;;  %v1950_v22 = vmul.f32 1.442695, %v1878_v28  ;;  %v1880_v0 = vsub.f32 %v3678_v43, %v1791_v32  ;;  %v1881_v12 = vsub.f32 %v3688_v48, %v1791_v32 }
 0x2e0   : > { %v4038_v11 = vpop.eup %2842  ;;  %2862 = vpow2.f32 %v1436_v18  ;;  %v1952_v39 = vmul.f32 1.442695, %v1879_v57  ;;  %2063 = vadd.xlane.f32.xlu0 %v2062_v35  ;;  %v1276_v14 = vpop.xlane.xlu0 %1275  ;;  %v2065_v42 = vadd.f32 %v4029_v17, %v4026_v15 }
 0x2e1   : > { %v4042_v1 = vpop.eup %2844  ;;  %2864 = vpow2.f32 %v1950_v22  ;;  %v1954_v16 = vmul.f32 1.442695, %v1880_v0  ;;  %v1956_v20 = vmul.f32 1.442695, %v1881_v12  ;;  %v1366_v10 = vsub.f32 %v3672_v40, %v1276_v14 }
 0x2e2   : > { %v4045_v31 = vpop.eup %2846  ;;  %2866 = vpow2.f32 %v1952_v39  ;;  %v1367_v43 = vsub.f32 %v3674_v41, %v1276_v14  ;;  %2066 = vadd.xlane.f32.xlu1 %v2065_v42  ;;  %v1279_v48 = vpop.xlane.xlu1 %1278  ;;  %v1550_v8 = vadd.f32 %v4038_v11, %v4034_v21 }
 0x2e3   : > { %v4050_v33 = vpop.eup %2848  ;;  %2868 = vpow2.f32 %v1954_v16  ;;  %v1438_v25 = vmul.f32 1.442695, %v1366_v10  ;;  %v1368_v50 = vsub.f32 %v3680_v44, %v1279_v48  ;;  %v1369_v62 = vsub.f32 %v3686_v47, %v1279_v48 }
 0x2e4   : > { %v4054_v30 = vpop.eup %2850  ;;  %2870 = vpow2.f32 %v1956_v20  ;;  %v1440_v40 = vmul.f32 1.442695, %v1367_v43  ;;  %1551 = vadd.xlane.f32.xlu0 %v1550_v8  ;;  %v1794_v36 = vpop.xlane.xlu0 %1793  ;;  %v1553_v41 = vadd.f32 %v4045_v31, %v4042_v1 }
 0x2e5   : > { %v4058_v24 = vpop.eup %2852  ;;  %2872 = vpow2.f32 %v1438_v25  ;;  %v1442_v13 = vmul.f32 1.442695, %v1368_v50  ;;  %v1444_v26 = vmul.f32 1.442695, %v1369_v62  ;;  %v1882_v18 = vsub.f32 %v3694_v51, %v1794_v36 }
 0x2e6   : > { %v4061_v28 = vpop.eup %2854  ;;  %2874 = vpow2.f32 %v1440_v40  ;;  %v1883_v44 = vsub.f32 %v3700_v54, %v1794_v36  ;;  %1554 = vadd.xlane.f32.xlu1 %v1553_v41  ;;  %v1797_v47 = vpop.xlane.xlu1 %1796  ;;  %v2068_v57 = vadd.f32 %v4054_v30, %v4050_v33 }
 0x2e7   : > { %v4066_v32 = vpop.eup %2856  ;;  %2876 = vpow2.f32 %v1442_v13  ;;  %v1958_v35 = vmul.f32 1.442695, %v1882_v18  ;;  %v1884_v22 = vsub.f32 %v3702_v55, %v1797_v47  ;;  %v1885_v0 = vsub.f32 %v3712_v60, %v1797_v47 }
 0x2e8   : > { %v4070_v12 = vpop.eup %2858  ;;  %2878 = vpow2.f32 %v1444_v26  ;;  %v1960_v51 = vmul.f32 1.442695, %v1883_v44  ;;  %2069 = vadd.xlane.f32.xlu0 %v2068_v57  ;;  %v1282_v39 = vpop.xlane.xlu0 %1281  ;;  %v2071_v54 = vadd.f32 %v4061_v28, %v4058_v24 }
 0x2e9   : > { %v4074_v14 = vpop.eup %2860  ;;  %2880 = vpow2.f32 %v1958_v35  ;;  %v1962_v42 = vmul.f32 1.442695, %v1884_v22  ;;  %v1964_v16 = vmul.f32 1.442695, %v1885_v0  ;;  %v1370_v20 = vsub.f32 %v3696_v52, %v1282_v39 }
 0x2ea   : > { %v4077_v10 = vpop.eup %2862  ;;  %2882 = vpow2.f32 %v1960_v51  ;;  %v1371_v55 = vsub.f32 %v3698_v53, %v1282_v39  ;;  %2072 = vadd.xlane.f32.xlu1 %v2071_v54  ;;  %v1285_v60 = vpop.xlane.xlu1 %1284  ;;  %v1556_v43 = vadd.f32 %v4070_v12, %v4066_v32 }
 0x2eb   : > { %v4082_v48 = vpop.eup %2864  ;;  %2884 = vpow2.f32 %v1962_v42  ;;  %v1446_v8 = vmul.f32 1.442695, %v1370_v20  ;;  %v1372_v25 = vsub.f32 %v3704_v56, %v1285_v60  ;;  %v1373_v50 = vsub.f32 %v3710_v59, %v1285_v60 }
 0x2ec   : > { %v4086_v62 = vpop.eup %2866  ;;  %2886 = vpow2.f32 %v1964_v16  ;;  %v1448_v52 = vmul.f32 1.442695, %v1371_v55  ;;  %1557 = vadd.xlane.f32.xlu0 %v1556_v43  ;;  %v1800_v40 = vpop.xlane.xlu0 %1799  ;;  %v1559_v53 = vadd.f32 %v4077_v10, %v4074_v14 }
 0x2ed   : > { %v4090_v36 = vpop.eup %2868  ;;  %2888 = vpow2.f32 %v1446_v8  ;;  %v1450_v41 = vmul.f32 1.442695, %v1372_v25  ;;  %v1452_v13 = vmul.f32 1.442695, %v1373_v50  ;;  %v1886_v26 = vsub.f32 %v3718_v63, %v1800_v40 }
 0x2ee   : > { %v4093_v18 = vpop.eup %2870  ;;  %2890 = vpow2.f32 %v1448_v52  ;;  %v1887_v56 = vsub.f32 %v3724_v4, %v1800_v40  ;;  %1560 = vadd.xlane.f32.xlu1 %v1559_v53  ;;  %v1803_v59 = vpop.xlane.xlu1 %1802  ;;  %v2074_v44 = vadd.f32 %v4086_v62, %v4082_v48 }
 0x2ef   : > { %v4098_v47 = vpop.eup %2872  ;;  %2892 = vpow2.f32 %v1450_v41  ;;  %v1966_v57 = vmul.f32 1.442695, %v1886_v26  ;;  %v1888_v35 = vsub.f32 %v3726_v6, %v1803_v59  ;;  %v1889_v22 = vsub.f32 %v3736_v23, %v1803_v59 }
 0x2f0   : > { %v4102_v0 = vpop.eup %2874  ;;  %2894 = vpow2.f32 %v1452_v13  ;;  %v1968_v63 = vmul.f32 1.442695, %v1887_v56  ;;  %2075 = vadd.xlane.f32.xlu0 %v2074_v44  ;;  %v1288_v51 = vpop.xlane.xlu0 %1287  ;;  %v2077_v4 = vadd.f32 %v4093_v18, %v4090_v36 }
 0x2f1   : > { %v4106_v39 = vpop.eup %2876  ;;  %2896 = vpow2.f32 %v1966_v57  ;;  %v1970_v54 = vmul.f32 1.442695, %v1888_v35  ;;  %v1972_v42 = vmul.f32 1.442695, %v1889_v22  ;;  %v1374_v16 = vsub.f32 %v3720_v2, %v1288_v51 }
 0x2f2   : > { %v4109_v20 = vpop.eup %2878  ;;  %2898 = vpow2.f32 %v1968_v63  ;;  %v1375_v6 = vsub.f32 %v3722_v3, %v1288_v51  ;;  %2078 = vadd.xlane.f32.xlu1 %v2077_v4  ;;  %v1291_v23 = vpop.xlane.xlu1 %1290  ;;  %v1562_v55 = vadd.f32 %v4102_v0, %v4098_v47 }
 0x2f3   : > { %v4114_v60 = vpop.eup %2880  ;;  %2900 = vpow2.f32 %v1970_v54  ;;  %v1454_v43 = vmul.f32 1.442695, %v1374_v16  ;;  %v1376_v8 = vsub.f32 %v3728_v9, %v1291_v23  ;;  %v1377_v25 = vsub.f32 %v3734_v19, %v1291_v23 }
 0x2f4   : > { %v4118_v50 = vpop.eup %2882  ;;  %2902 = vpow2.f32 %v1972_v42  ;;  %v1456_v2 = vmul.f32 1.442695, %v1375_v6  ;;  %1563 = vadd.xlane.f32.xlu0 %v1562_v55  ;;  %v1806_v52 = vpop.xlane.xlu0 %1805  ;;  %v1565_v3 = vadd.f32 %v4109_v20, %v4106_v39 }
 0x2f5   : > { %v4122_v40 = vpop.eup %2884  ;;  %2904 = vpow2.f32 %v1454_v43  ;;  %v1458_v53 = vmul.f32 1.442695, %v1376_v8  ;;  %v1460_v41 = vmul.f32 1.442695, %v1377_v25  ;;  %v1890_v13 = vsub.f32 %v3742_v34, %v1806_v52 }
 0x2f6   : > { %v4125_v26 = vpop.eup %2886  ;;  %2906 = vpow2.f32 %v1456_v2  ;;  %v1891_v9 = vsub.f32 %v3748_v45, %v1806_v52  ;;  %1566 = vadd.xlane.f32.xlu1 %v1565_v3  ;;  %v1809_v19 = vpop.xlane.xlu1 %1808  ;;  %v2080_v56 = vadd.f32 %v4118_v50, %v4114_v60 }
 0x2f7   : > { %v4130_v59 = vpop.eup %2888  ;;  %2908 = vpow2.f32 %v1458_v53  ;;  %v1974_v44 = vmul.f32 1.442695, %v1890_v13  ;;  %v1892_v57 = vsub.f32 %v3750_v46, %v1809_v19  ;;  %v1893_v35 = vsub.f32 %v3760_v61, %v1809_v19 }
 0x2f8   : > { %v4134_v22 = vpop.eup %2890  ;;  %2910 = vpow2.f32 %v1460_v41  ;;  %v1976_v34 = vmul.f32 1.442695, %v1891_v9  ;;  %2081 = vadd.xlane.f32.xlu0 %v2080_v56  ;;  %v1294_v63 = vpop.xlane.xlu0 %1293  ;;  %v2083_v45 = vadd.f32 %v4125_v26, %v4122_v40  ;;  %v5044_v41 = vld [vmem:[#allocation19_spill] sm:$0xff] }
 0x2f9   : > { %v4138_v51 = vpop.eup %2892  ;;  %2912 = vpow2.f32 %v1974_v44  ;;  %v1978_v4 = vmul.f32 1.442695, %v1892_v57  ;;  %v1980_v54 = vmul.f32 1.442695, %v1893_v35  ;;  %v1378_v42 = vsub.f32 %v3744_v37, %v1294_v63  ;;  %v5046_v35 = vld [vmem:[#allocation23_spill] sm:$0xff] }
 0x2fa   : > { %v4141_v16 = vpop.eup %2894  ;;  %2914 = vpow2.f32 %v1976_v34  ;;  %v1379_v46 = vsub.f32 %v3746_v38, %v1294_v63  ;;  %2084 = vadd.xlane.f32.xlu1 %v2083_v45  ;;  %v1297_v61 = vpop.xlane.xlu1 %1296  ;;  %v1568_v6 = vadd.f32 %v4134_v22, %v4130_v59  ;;  %v5047_v63 = vld [vmem:[#allocation26_spill] sm:$0xff] }
 0x2fb   : > { %v4146_v23 = vpop.eup %2896  ;;  %2916 = vpow2.f32 %v1978_v4  ;;  %v1462_v55 = vmul.f32 1.442695, %v1378_v42  ;;  %v1380_v43 = vsub.f32 %v3752_v49, %v1297_v61  ;;  %v1381_v8 = vsub.f32 %v3758_v58, %v1297_v61  ;;  %v5045_v49 = vld [vmem:[#allocation22_spill] sm:$0xff] }
 0x2fc   : > { %v4150_v25 = vpop.eup %2898  ;;  %2918 = vpow2.f32 %v1980_v54  ;;  %v1464_v37 = vmul.f32 1.442695, %v1379_v46  ;;  %1569 = vadd.xlane.f32.xlu0 %v1568_v6  ;;  %v1812_v2 = vpop.xlane.xlu0 %1811  ;;  %v1571_v38 = vadd.f32 %v4141_v16, %v4138_v51 }
 0x2fd   : > { %v4154_v52 = vpop.eup %2900  ;;  %2920 = vpow2.f32 %v1462_v55  ;;  %v1466_v3 = vmul.f32 1.442695, %v1380_v43  ;;  %v1468_v53 = vmul.f32 1.442695, %v1381_v8  ;;  %v1894_v13 = vsub.f32 %v5044_v41, %v1812_v2  ;;  %v5048_v43 = vld [vmem:[#allocation20_spill] sm:$0xff] }
 0x2fe   : > { %v4157_v9 = vpop.eup %2902  ;;  %2922 = vpow2.f32 %v1464_v37  ;;  %v1895_v58 = vsub.f32 %v5045_v49, %v1812_v2  ;;  %1572 = vadd.xlane.f32.xlu1 %v1571_v38  ;;  %v1815_v19 = vpop.xlane.xlu1 %1814  ;;  %v2086_v56 = vadd.f32 %v4150_v25, %v4146_v23  ;;  %v5049_v2 = vld [vmem:[#allocation21_spill] sm:$0xff]  ;;  %v5051_v49 = vld [vmem:[#allocation24_spill] sm:$0xff] }
 0x2ff   : > { %v4162_v44 = vpop.eup %2904  ;;  %2924 = vpow2.f32 %v1466_v3  ;;  %v1982_v57 = vmul.f32 1.442695, %v1894_v13  ;;  %v1896_v34 = vsub.f32 %v5046_v35, %v1815_v19  ;;  %v1897_v45 = vsub.f32 %v5047_v63, %v1815_v19  ;;  %v5052_v19 = vld [vmem:[#allocation25_spill] sm:$0xff] }
 0x300   : > { %v4166_v4 = vpop.eup %2906  ;;  %2926 = vpow2.f32 %v1468_v53  ;;  %v1984_v54 = vmul.f32 1.442695, %v1895_v58  ;;  %2087 = vadd.xlane.f32.xlu0 %v2086_v56  ;;  %v1300_v42 = vpop.xlane.xlu0 %1299  ;;  %v2089_v46 = vadd.f32 %v4157_v9, %v4154_v52 }
 0x301   : > { %v4170_v61 = vpop.eup %2908  ;;  %2928 = vpow2.f32 %v1982_v57  ;;  %v1986_v6 = vmul.f32 1.442695, %v1896_v34  ;;  %v1988_v55 = vmul.f32 1.442695, %v1897_v45  ;;  %v1382_v8 = vsub.f32 %v5048_v43, %v1300_v42 }
 0x302   : > { %v4173_v37 = vpop.eup %2910  ;;  %2930 = vpow2.f32 %v1984_v54  ;;  %v1383_v38 = vsub.f32 %v5049_v2, %v1300_v42  ;;  %2090 = vadd.xlane.f32.xlu1 %v2089_v46  ;;  %v1303_v3 = vpop.xlane.xlu1 %1302  ;;  %v1574_v53 = vadd.f32 %v4166_v4, %v4162_v44  ;;  %v5055_v46 = vld [vmem:[#allocation27_spill] sm:$0xff] }
 0x303   : > { %v4178_v41 = vpop.eup %2912  ;;  %2932 = vpow2.f32 %v1986_v6  ;;  %v1470_v13 = vmul.f32 1.442695, %v1382_v8  ;;  %v1384_v58 = vsub.f32 %v5051_v49, %v1303_v3  ;;  %v1385_v56 = vsub.f32 %v5052_v19, %v1303_v3  ;;  %v5057_v8 = vld [vmem:[#allocation30_spill] sm:$0xff]  ;;  %v5059_v49 = vld [vmem:[#allocation31_spill] sm:$0xff] }
 0x304   : > { %5050 = vst [vmem:[#allocation19_spill] sm:$0xff] %v4178_v41  ;;  %v4182_v57 = vpop.eup %2914  ;;  %2934 = vpow2.f32 %v1988_v55  ;;  %v1472_v35 = vmul.f32 1.442695, %v1383_v38  ;;  %1575 = vadd.xlane.f32.xlu0 %v1574_v53  ;;  %v1818_v34 = vpop.xlane.xlu0 %1817  ;;  %v1577_v63 = vadd.f32 %v4173_v37, %v4170_v61 }
 0x305   : > { %5053 = vst [vmem:[#allocation22_spill] sm:$0xff] %v4182_v57  ;;  %v4186_v45 = vpop.eup %2916  ;;  %2936 = vpow2.f32 %v1470_v13  ;;  %v1474_v54 = vmul.f32 1.442695, %v1384_v58  ;;  %v1476_v42 = vmul.f32 1.442695, %v1385_v56  ;;  %v1898_v6 = vsub.f32 %v5055_v46, %v1818_v34  ;;  %v5060_v58 = vld [vmem:[#allocation34_spill] sm:$0xff] }
 0x306   : > { %5054 = vst [vmem:[#allocation23_spill] sm:$0xff] %v4186_v45  ;;  %v4189_v43 = vpop.eup %2918  ;;  %2938 = vpow2.f32 %v1472_v35  ;;  %v1899_v2 = vsub.f32 %v5057_v8, %v1818_v34  ;;  %1578 = vadd.xlane.f32.xlu1 %v1577_v63  ;;  %v1821_v55 = vpop.xlane.xlu1 %1820  ;;  %v2092_v38 = vadd.f32 %v4182_v57, %v4178_v41 }
 0x307   : > { %5056 = vst [vmem:[#allocation26_spill] sm:$0xff] %v4189_v43  ;;  %v4194_v3 = vpop.eup %2920  ;;  %2940 = vpow2.f32 %v1474_v54  ;;  %v1990_v53 = vmul.f32 1.442695, %v1898_v6  ;;  %v1900_v13 = vsub.f32 %v5059_v49, %v1821_v55  ;;  %v1901_v19 = vsub.f32 %v5060_v58, %v1821_v55  ;;  %v5063_v54 = vld [vmem:[#allocation28_spill] sm:$0xff]  ;;  %v5065_v55 = vld [vmem:[#allocation29_spill] sm:$0xff] }
 0x308   : > { %5058 = vst [vmem:[#allocation20_spill] sm:$0xff] %v4194_v3  ;;  %v4198_v56 = vpop.eup %2922  ;;  %2942 = vpow2.f32 %v1476_v42  ;;  %v1992_v46 = vmul.f32 1.442695, %v1899_v2  ;;  %2093 = vadd.xlane.f32.xlu0 %v2092_v38  ;;  %v1306_v35 = vpop.xlane.xlu0 %1305  ;;  %v2095_v34 = vadd.f32 %v4189_v43, %v4186_v45  ;;  %v5067_v45 = vld [vmem:[#allocation32_spill] sm:$0xff] }
 0x309   : > { %5061 = vst [vmem:[#allocation21_spill] sm:$0xff] %v4198_v56  ;;  %v4202_v63 = vpop.eup %2924  ;;  %2944 = vpow2.f32 %v1990_v53  ;;  %v1994_v8 = vmul.f32 1.442695, %v1900_v13  ;;  %v1996_v41 = vmul.f32 1.442695, %v1901_v19  ;;  %v1386_v6 = vsub.f32 %v5063_v54, %v1306_v35  ;;  %v5068_v13 = vld [vmem:[#allocation33_spill] sm:$0xff] }
 0x30a   : > { %5062 = vst [vmem:[#allocation24_spill] sm:$0xff] %v4202_v63  ;;  %v4205_v57 = vpop.eup %2926  ;;  %2946 = vpow2.f32 %v1992_v46  ;;  %v1387_v49 = vsub.f32 %v5065_v55, %v1306_v35  ;;  %2096 = vadd.xlane.f32.xlu1 %v2095_v34  ;;  %v1309_v42 = vpop.xlane.xlu1 %1308  ;;  %v1580_v2 = vadd.f32 %v4198_v56, %v4194_v3 }
 0x30b   : > { %5064 = vst [vmem:[#allocation25_spill] sm:$0xff] %v4205_v57  ;;  %v4210_v38 = vpop.eup %2928  ;;  %2948 = vpow2.f32 %v1994_v8  ;;  %v1478_v58 = vmul.f32 1.442695, %v1386_v6  ;;  %v1388_v53 = vsub.f32 %v5067_v45, %v1309_v42  ;;  %v1389_v19 = vsub.f32 %v5068_v13, %v1309_v42  ;;  %v5071_v8 = vld [vmem:[#allocation35_spill] sm:$0xff]  ;;  %v5073_v45 = vld [vmem:[#allocation38_spill] sm:$0xff] }
 0x30c   : > { %5066 = vst [vmem:[#allocation27_spill] sm:$0xff] %v4210_v38  ;;  %v4214_v43 = vpop.eup %2930  ;;  %2950 = vpow2.f32 %v1996_v41  ;;  %v1480_v54 = vmul.f32 1.442695, %v1387_v49  ;;  %1581 = vadd.xlane.f32.xlu0 %v1580_v2  ;;  %v1824_v46 = vpop.xlane.xlu0 %1823  ;;  %v1583_v35 = vadd.f32 %v4205_v57, %v4202_v63  ;;  %v5075_v63 = vld [vmem:[#allocation39_spill] sm:$0xff] }
 0x30d   : > { %5069 = vst [vmem:[#allocation30_spill] sm:$0xff] %v4214_v43  ;;  %v4218_v34 = vpop.eup %2932  ;;  %2952 = vpow2.f32 %v1478_v58  ;;  %v1482_v55 = vmul.f32 1.442695, %v1388_v53  ;;  %v1484_v3 = vmul.f32 1.442695, %v1389_v19  ;;  %v1902_v6 = vsub.f32 %v5071_v8, %v1824_v46  ;;  %v5076_v53 = vld [vmem:[#allocation42_spill] sm:$0xff] }
 0x30e   : > { %5070 = vst [vmem:[#allocation31_spill] sm:$0xff] %v4218_v34  ;;  %v4221_v56 = vpop.eup %2934  ;;  %2954 = vpow2.f32 %v1480_v54  ;;  %v1903_v42 = vsub.f32 %v5073_v45, %v1824_v46  ;;  %1584 = vadd.xlane.f32.xlu1 %v1583_v35  ;;  %v1827_v41 = vpop.xlane.xlu1 %1826  ;;  %v2098_v49 = vadd.f32 %v4214_v43, %v4210_v38 }
 0x30f   : > { %5072 = vst [vmem:[#allocation34_spill] sm:$0xff] %v4221_v56  ;;  %v4226_v2 = vpop.eup %2936  ;;  %2956 = vpow2.f32 %v1482_v55  ;;  %v1998_v13 = vmul.f32 1.442695, %v1902_v6  ;;  %v1904_v58 = vsub.f32 %v5075_v63, %v1827_v41  ;;  %v1905_v19 = vsub.f32 %v5076_v53, %v1827_v41  ;;  %v5079_v55 = vld [vmem:[#allocation36_spill] sm:$0xff]  ;;  %v5081_v63 = vld [vmem:[#allocation37_spill] sm:$0xff] }
 0x310   : > { %5074 = vst [vmem:[#allocation28_spill] sm:$0xff] %v4226_v2  ;;  %v4230_v57 = vpop.eup %2938  ;;  %2958 = vpow2.f32 %v1484_v3  ;;  %v2000_v8 = vmul.f32 1.442695, %v1903_v42  ;;  %2099 = vadd.xlane.f32.xlu0 %v2098_v49  ;;  %v1312_v54 = vpop.xlane.xlu0 %1311  ;;  %v2101_v46 = vadd.f32 %v4221_v56, %v4218_v34  ;;  %v5083_v34 = vld [vmem:[#allocation40_spill] sm:$0xff] }
 0x311   : > { %5077 = vst [vmem:[#allocation29_spill] sm:$0xff] %v4230_v57  ;;  %v4234_v35 = vpop.eup %2940  ;;  %2960 = vpow2.f32 %v1998_v13  ;;  %v2002_v45 = vmul.f32 1.442695, %v1904_v58  ;;  %v2004_v38 = vmul.f32 1.442695, %v1905_v19  ;;  %v1390_v6 = vsub.f32 %v5079_v55, %v1312_v54  ;;  %v5084_v58 = vld [vmem:[#allocation41_spill] sm:$0xff] }
 0x312   : > { %5078 = vst [vmem:[#allocation32_spill] sm:$0xff] %v4234_v35  ;;  %v4237_v43 = vpop.eup %2942  ;;  %2962 = vpow2.f32 %v2000_v8  ;;  %v1391_v41 = vsub.f32 %v5081_v63, %v1312_v54  ;;  %2102 = vadd.xlane.f32.xlu1 %v2101_v46  ;;  %v1315_v3 = vpop.xlane.xlu1 %1314  ;;  %v1586_v42 = vadd.f32 %v4230_v57, %v4226_v2 }
 0x313   : > { %5080 = vst [vmem:[#allocation33_spill] sm:$0xff] %v4237_v43  ;;  %v4242_v49 = vpop.eup %2944  ;;  %2964 = vpow2.f32 %v2002_v45  ;;  %v1486_v53 = vmul.f32 1.442695, %v1390_v6  ;;  %v1392_v13 = vsub.f32 %v5083_v34, %v1315_v3  ;;  %v1393_v19 = vsub.f32 %v5084_v58, %v1315_v3  ;;  %v5087_v45 = vld [vmem:[#allocation43_spill] sm:$0xff]  ;;  %v5089_v34 = vld [vmem:[#allocation46_spill] sm:$0xff] }
 0x314   : > { %5082 = vst [vmem:[#allocation35_spill] sm:$0xff] %v4242_v49  ;;  %v4246_v56 = vpop.eup %2946  ;;  %2966 = vpow2.f32 %v2004_v38  ;;  %v1488_v55 = vmul.f32 1.442695, %v1391_v41  ;;  %1587 = vadd.xlane.f32.xlu0 %v1586_v42  ;;  %v1830_v8 = vpop.xlane.xlu0 %1829  ;;  %v1589_v54 = vadd.f32 %v4237_v43, %v4234_v35  ;;  %v5091_v35 = vld [vmem:[#allocation47_spill] sm:$0xff] }
 0x315   : > { %5085 = vst [vmem:[#allocation38_spill] sm:$0xff] %v4246_v56  ;;  %v4250_v46 = vpop.eup %2948  ;;  %2968 = vpow2.f32 %v1486_v53  ;;  %v1490_v63 = vmul.f32 1.442695, %v1392_v13  ;;  %v1492_v2 = vmul.f32 1.442695, %v1393_v19  ;;  %v1906_v6 = vsub.f32 %v5087_v45, %v1830_v8  ;;  %v5092_v13 = vld [vmem:[#allocation50_spill] sm:$0xff] }
 0x316   : > { %5086 = vst [vmem:[#allocation39_spill] sm:$0xff] %v4250_v46  ;;  %v4253_v57 = vpop.eup %2950  ;;  %2970 = vpow2.f32 %v1488_v55  ;;  %v1907_v3 = vsub.f32 %v5089_v34, %v1830_v8  ;;  %1590 = vadd.xlane.f32.xlu1 %v1589_v54  ;;  %v1833_v38 = vpop.xlane.xlu1 %1832  ;;  %v2104_v41 = vadd.f32 %v4246_v56, %v4242_v49 }
 0x317   : > { %5088 = vst [vmem:[#allocation42_spill] sm:$0xff] %v4253_v57  ;;  %v4258_v42 = vpop.eup %2952  ;;  %2972 = vpow2.f32 %v1490_v63  ;;  %v2006_v58 = vmul.f32 1.442695, %v1906_v6  ;;  %v1908_v53 = vsub.f32 %v5091_v35, %v1833_v38  ;;  %v1909_v19 = vsub.f32 %v5092_v13, %v1833_v38  ;;  %v5095_v63 = vld [vmem:[#allocation44_spill] sm:$0xff]  ;;  %v5097_v35 = vld [vmem:[#allocation45_spill] sm:$0xff] }
 0x318   : > { %5090 = vst [vmem:[#allocation36_spill] sm:$0xff] %v4258_v42  ;;  %v4262_v43 = vpop.eup %2954  ;;  %2974 = vpow2.f32 %v1492_v2  ;;  %v2008_v45 = vmul.f32 1.442695, %v1907_v3  ;;  %2105 = vadd.xlane.f32.xlu0 %v2104_v41  ;;  %v1318_v55 = vpop.xlane.xlu0 %1317  ;;  %v2107_v8 = vadd.f32 %v4253_v57, %v4250_v46  ;;  %v5099_v46 = vld [vmem:[#allocation48_spill] sm:$0xff] }
 0x319   : > { %5093 = vst [vmem:[#allocation37_spill] sm:$0xff] %v4262_v43  ;;  %v4266_v54 = vpop.eup %2956  ;;  %2976 = vpow2.f32 %v2006_v58  ;;  %v2010_v34 = vmul.f32 1.442695, %v1908_v53  ;;  %v2012_v49 = vmul.f32 1.442695, %v1909_v19  ;;  %v1394_v6 = vsub.f32 %v5095_v63, %v1318_v55  ;;  %v5100_v53 = vld [vmem:[#allocation49_spill] sm:$0xff] }
 0x31a   : > { %5094 = vst [vmem:[#allocation40_spill] sm:$0xff] %v4266_v54  ;;  %v4269_v56 = vpop.eup %2958  ;;  %2978 = vpow2.f32 %v2008_v45  ;;  %v1395_v38 = vsub.f32 %v5097_v35, %v1318_v55  ;;  %2108 = vadd.xlane.f32.xlu1 %v2107_v8  ;;  %v1321_v2 = vpop.xlane.xlu1 %1320  ;;  %v1592_v3 = vadd.f32 %v4262_v43, %v4258_v42 }
 0x31b   : > { %5096 = vst [vmem:[#allocation41_spill] sm:$0xff] %v4269_v56  ;;  %v4274_v41 = vpop.eup %2960  ;;  %2980 = vpow2.f32 %v2010_v34  ;;  %v1494_v13 = vmul.f32 1.442695, %v1394_v6  ;;  %v1396_v58 = vsub.f32 %v5099_v46, %v1321_v2  ;;  %v1397_v19 = vsub.f32 %v5100_v53, %v1321_v2  ;;  %v5103_v34 = vld [vmem:[#allocation51_spill] sm:$0xff]  ;;  %v5105_v46 = vld [vmem:[#allocation54_spill] sm:$0xff] }
 0x31c   : > { %5098 = vst [vmem:[#allocation43_spill] sm:$0xff] %v4274_v41  ;;  %v4278_v57 = vpop.eup %2962  ;;  %2982 = vpow2.f32 %v2012_v49  ;;  %v1496_v63 = vmul.f32 1.442695, %v1395_v38  ;;  %1593 = vadd.xlane.f32.xlu0 %v1592_v3  ;;  %v1836_v45 = vpop.xlane.xlu0 %1835  ;;  %v1595_v55 = vadd.f32 %v4269_v56, %v4266_v54  ;;  %v5107_v54 = vld [vmem:[#allocation55_spill] sm:$0xff] }
 0x31d   : > { %5101 = vst [vmem:[#allocation46_spill] sm:$0xff] %v4278_v57  ;;  %v4282_v8 = vpop.eup %2964  ;;  %2984 = vpow2.f32 %v1494_v13  ;;  %v1498_v35 = vmul.f32 1.442695, %v1396_v58  ;;  %v1500_v42 = vmul.f32 1.442695, %v1397_v19  ;;  %v1910_v6 = vsub.f32 %v5103_v34, %v1836_v45  ;;  %v5108_v58 = vld [vmem:[#allocation58_spill] sm:$0xff] }
 0x31e   : > { %5102 = vst [vmem:[#allocation47_spill] sm:$0xff] %v4282_v8  ;;  %v4285_v43 = vpop.eup %2966  ;;  %2986 = vpow2.f32 %v1496_v63  ;;  %v1911_v2 = vsub.f32 %v5105_v46, %v1836_v45  ;;  %1596 = vadd.xlane.f32.xlu1 %v1595_v55  ;;  %v1839_v49 = vpop.xlane.xlu1 %1838  ;;  %v2110_v38 = vadd.f32 %v4278_v57, %v4274_v41 }
 0x31f   : > { %5104 = vst [vmem:[#allocation50_spill] sm:$0xff] %v4285_v43  ;;  %v4290_v3 = vpop.eup %2968  ;;  %2988 = vpow2.f32 %v1498_v35  ;;  %v2014_v53 = vmul.f32 1.442695, %v1910_v6  ;;  %v1912_v13 = vsub.f32 %v5107_v54, %v1839_v49  ;;  %v1913_v19 = vsub.f32 %v5108_v58, %v1839_v49  ;;  %v5111_v35 = vld [vmem:[#allocation52_spill] sm:$0xff]  ;;  %v5113_v54 = vld [vmem:[#allocation53_spill] sm:$0xff] }
 0x320   : > { %5106 = vst [vmem:[#allocation44_spill] sm:$0xff] %v4290_v3  ;;  %v4294_v56 = vpop.eup %2970  ;;  %2990 = vpow2.f32 %v1500_v42  ;;  %v2016_v34 = vmul.f32 1.442695, %v1911_v2  ;;  %2111 = vadd.xlane.f32.xlu0 %v2110_v38  ;;  %v1324_v63 = vpop.xlane.xlu0 %1323  ;;  %v2113_v45 = vadd.f32 %v4285_v43, %v4282_v8  ;;  %v5115_v8 = vld [vmem:[#allocation56_spill] sm:$0xff] }
 0x321   : > { %5109 = vst [vmem:[#allocation45_spill] sm:$0xff] %v4294_v56  ;;  %v4298_v55 = vpop.eup %2972  ;;  %2992 = vpow2.f32 %v2014_v53  ;;  %v2018_v46 = vmul.f32 1.442695, %v1912_v13  ;;  %v2020_v41 = vmul.f32 1.442695, %v1913_v19  ;;  %v1398_v6 = vsub.f32 %v5111_v35, %v1324_v63  ;;  %v5116_v13 = vld [vmem:[#allocation57_spill] sm:$0xff] }
 0x322   : > { %5110 = vst [vmem:[#allocation48_spill] sm:$0xff] %v4298_v55  ;;  %v4301_v57 = vpop.eup %2974  ;;  %2994 = vpow2.f32 %v2016_v34  ;;  %v1399_v49 = vsub.f32 %v5113_v54, %v1324_v63  ;;  %2114 = vadd.xlane.f32.xlu1 %v2113_v45  ;;  %v1327_v42 = vpop.xlane.xlu1 %1326  ;;  %v1598_v2 = vadd.f32 %v4294_v56, %v4290_v3 }
 0x323   : > { %5112 = vst [vmem:[#allocation49_spill] sm:$0xff] %v4301_v57  ;;  %v4306_v38 = vpop.eup %2976  ;;  %2996 = vpow2.f32 %v2018_v46  ;;  %v1502_v58 = vmul.f32 1.442695, %v1398_v6  ;;  %v1400_v53 = vsub.f32 %v5115_v8, %v1327_v42  ;;  %v1401_v19 = vsub.f32 %v5116_v13, %v1327_v42  ;;  %v5119_v46 = vld [vmem:[#allocation59_spill] sm:$0xff]  ;;  %v5121_v8 = vld [vmem:[#allocation62_spill] sm:$0xff] }
 0x324   : > { %5114 = vst [vmem:[#allocation51_spill] sm:$0xff] %v4306_v38  ;;  %v4310_v43 = vpop.eup %2978  ;;  %2998 = vpow2.f32 %v2020_v41  ;;  %v1504_v35 = vmul.f32 1.442695, %v1399_v49  ;;  %1599 = vadd.xlane.f32.xlu0 %v1598_v2  ;;  %v1842_v34 = vpop.xlane.xlu0 %1841  ;;  %v1601_v63 = vadd.f32 %v4301_v57, %v4298_v55  ;;  %v5123_v55 = vld [vmem:[#allocation63_spill] sm:$0xff] }
 0x325   : > { %5117 = vst [vmem:[#allocation54_spill] sm:$0xff] %v4310_v43  ;;  %v4314_v45 = vpop.eup %2980  ;;  %3000 = vpow2.f32 %v1502_v58  ;;  %v1506_v54 = vmul.f32 1.442695, %v1400_v53  ;;  %v1508_v3 = vmul.f32 1.442695, %v1401_v19  ;;  %v1914_v6 = vsub.f32 %v5119_v46, %v1842_v34  ;;  %v5124_v53 = vld [vmem:[#allocation66_spill] sm:$0xff] }
 0x326   : > { %5118 = vst [vmem:[#allocation55_spill] sm:$0xff] %v4314_v45  ;;  %v4317_v56 = vpop.eup %2982  ;;  %3002 = vpow2.f32 %v1504_v35  ;;  %v1915_v42 = vsub.f32 %v5121_v8, %v1842_v34  ;;  %1602 = vadd.xlane.f32.xlu1 %v1601_v63  ;;  %v1845_v41 = vpop.xlane.xlu1 %1844  ;;  %v2116_v49 = vadd.f32 %v4310_v43, %v4306_v38 }
 0x327   : > { %5120 = vst [vmem:[#allocation58_spill] sm:$0xff] %v4317_v56  ;;  %v4322_v2 = vpop.eup %2984  ;;  %3004 = vpow2.f32 %v1506_v54  ;;  %v2022_v13 = vmul.f32 1.442695, %v1914_v6  ;;  %v1916_v58 = vsub.f32 %v5123_v55, %v1845_v41  ;;  %v1917_v19 = vsub.f32 %v5124_v53, %v1845_v41  ;;  %v5127_v54 = vld [vmem:[#allocation60_spill] sm:$0xff]  ;;  %v5129_v55 = vld [vmem:[#allocation61_spill] sm:$0xff] }
 0x328   : > { %5122 = vst [vmem:[#allocation52_spill] sm:$0xff] %v4322_v2  ;;  %v4326_v57 = vpop.eup %2986  ;;  %3006 = vpow2.f32 %v1508_v3  ;;  %v2024_v46 = vmul.f32 1.442695, %v1915_v42  ;;  %2117 = vadd.xlane.f32.xlu0 %v2116_v49  ;;  %v1330_v35 = vpop.xlane.xlu0 %1329  ;;  %v2119_v34 = vadd.f32 %v4317_v56, %v4314_v45  ;;  %v5131_v45 = vld [vmem:[#allocation64_spill] sm:$0xff] }
 0x329   : > { %5125 = vst [vmem:[#allocation53_spill] sm:$0xff] %v4326_v57  ;;  %v4330_v63 = vpop.eup %2988  ;;  %3008 = vpow2.f32 %v2022_v13  ;;  %v2026_v8 = vmul.f32 1.442695, %v1916_v58  ;;  %v2028_v38 = vmul.f32 1.442695, %v1917_v19  ;;  %v1402_v6 = vsub.f32 %v5127_v54, %v1330_v35  ;;  %v5132_v58 = vld [vmem:[#allocation65_spill] sm:$0xff] }
 0x32a   : > { %5126 = vst [vmem:[#allocation56_spill] sm:$0xff] %v4330_v63  ;;  %v4333_v43 = vpop.eup %2990  ;;  %3010 = vpow2.f32 %v2024_v46  ;;  %v1403_v41 = vsub.f32 %v5129_v55, %v1330_v35  ;;  %2120 = vadd.xlane.f32.xlu1 %v2119_v34  ;;  %v1333_v3 = vpop.xlane.xlu1 %1332  ;;  %v1604_v42 = vadd.f32 %v4326_v57, %v4322_v2 }
 0x32b   : > { %5128 = vst [vmem:[#allocation57_spill] sm:$0xff] %v4333_v43  ;;  %v4338_v49 = vpop.eup %2992  ;;  %3012 = vpow2.f32 %v2026_v8  ;;  %v1510_v53 = vmul.f32 1.442695, %v1402_v6  ;;  %v1404_v13 = vsub.f32 %v5131_v45, %v1333_v3  ;;  %v1405_v19 = vsub.f32 %v5132_v58, %v1333_v3  ;;  %v5135_v8 = vld [vmem:[#allocation67_spill] sm:$0xff]  ;;  %v5137_v45 = vld [vmem:[#allocation70_spill] sm:$0xff] }
 0x32c   : > { %5130 = vst [vmem:[#allocation59_spill] sm:$0xff] %v4338_v49  ;;  %v4342_v56 = vpop.eup %2994  ;;  %3014 = vpow2.f32 %v2028_v38  ;;  %v1512_v54 = vmul.f32 1.442695, %v1403_v41  ;;  %1605 = vadd.xlane.f32.xlu0 %v1604_v42  ;;  %v1848_v46 = vpop.xlane.xlu0 %1847  ;;  %v1607_v35 = vadd.f32 %v4333_v43, %v4330_v63  ;;  %v5139_v63 = vld [vmem:[#allocation71_spill] sm:$0xff] }
 0x32d   : > { %5133 = vst [vmem:[#allocation62_spill] sm:$0xff] %v4342_v56  ;;  %v4346_v34 = vpop.eup %2996  ;;  %3016 = vpow2.f32 %v1510_v53  ;;  %v1514_v55 = vmul.f32 1.442695, %v1404_v13  ;;  %v1516_v2 = vmul.f32 1.442695, %v1405_v19  ;;  %v1918_v6 = vsub.f32 %v5135_v8, %v1848_v46  ;;  %v5140_v13 = vld [vmem:[#allocation74_spill] sm:$0xff] }
 0x32e   : > { %5134 = vst [vmem:[#allocation63_spill] sm:$0xff] %v4346_v34  ;;  %v4349_v57 = vpop.eup %2998  ;;  %3018 = vpow2.f32 %v1512_v54  ;;  %v1919_v3 = vsub.f32 %v5137_v45, %v1848_v46  ;;  %1608 = vadd.xlane.f32.xlu1 %v1607_v35  ;;  %v1851_v38 = vpop.xlane.xlu1 %1850  ;;  %v2122_v41 = vadd.f32 %v4342_v56, %v4338_v49 }
 0x32f   : > { %5136 = vst [vmem:[#allocation66_spill] sm:$0xff] %v4349_v57  ;;  %v4354_v42 = vpop.eup %3000  ;;  %3020 = vpow2.f32 %v1514_v55  ;;  %v2030_v58 = vmul.f32 1.442695, %v1918_v6  ;;  %v1920_v53 = vsub.f32 %v5139_v63, %v1851_v38  ;;  %v1921_v19 = vsub.f32 %v5140_v13, %v1851_v38  ;;  %v5143_v55 = vld [vmem:[#allocation68_spill] sm:$0xff]  ;;  %v5145_v63 = vld [vmem:[#allocation69_spill] sm:$0xff] }
 0x330   : > { %5138 = vst [vmem:[#allocation60_spill] sm:$0xff] %v4354_v42  ;;  %v4358_v43 = vpop.eup %3002  ;;  %3022 = vpow2.f32 %v1516_v2  ;;  %v2032_v8 = vmul.f32 1.442695, %v1919_v3  ;;  %2123 = vadd.xlane.f32.xlu0 %v2122_v41  ;;  %v1336_v54 = vpop.xlane.xlu0 %1335  ;;  %v2125_v46 = vadd.f32 %v4349_v57, %v4346_v34  ;;  %v5147_v34 = vld [vmem:[#allocation72_spill] sm:$0xff] }
 0x331   : > { %5141 = vst [vmem:[#allocation61_spill] sm:$0xff] %v4358_v43  ;;  %v4362_v35 = vpop.eup %3004  ;;  %3024 = vpow2.f32 %v2030_v58  ;;  %v2034_v45 = vmul.f32 1.442695, %v1920_v53  ;;  %v2036_v49 = vmul.f32 1.442695, %v1921_v19  ;;  %v1406_v6 = vsub.f32 %v5143_v55, %v1336_v54  ;;  %v5148_v53 = vld [vmem:[#allocation73_spill] sm:$0xff] }
 0x332   : > { %5142 = vst [vmem:[#allocation64_spill] sm:$0xff] %v4362_v35  ;;  %v4365_v56 = vpop.eup %3006  ;;  %3026 = vpow2.f32 %v2032_v8  ;;  %v1407_v38 = vsub.f32 %v5145_v63, %v1336_v54  ;;  %2126 = vadd.xlane.f32.xlu1 %v2125_v46  ;;  %v1339_v2 = vpop.xlane.xlu1 %1338  ;;  %v1610_v3 = vadd.f32 %v4358_v43, %v4354_v42 }
 0x333   : > { %5144 = vst [vmem:[#allocation65_spill] sm:$0xff] %v4365_v56  ;;  %v4370_v41 = vpop.eup %3008  ;;  %3028 = vpow2.f32 %v2034_v45  ;;  %v1518_v13 = vmul.f32 1.442695, %v1406_v6  ;;  %v1408_v58 = vsub.f32 %v5147_v34, %v1339_v2  ;;  %v1409_v19 = vsub.f32 %v5148_v53, %v1339_v2  ;;  %v5151_v45 = vld [vmem:[#allocation75_spill] sm:$0xff]  ;;  %v5153_v34 = vld [vmem:[#allocation78_spill] sm:$0xff] }
 0x334   : > { %5146 = vst [vmem:[#allocation67_spill] sm:$0xff] %v4370_v41  ;;  %v4374_v57 = vpop.eup %3010  ;;  %3030 = vpow2.f32 %v2036_v49  ;;  %v1520_v55 = vmul.f32 1.442695, %v1407_v38  ;;  %1611 = vadd.xlane.f32.xlu0 %v1610_v3  ;;  %v1854_v8 = vpop.xlane.xlu0 %1853  ;;  %v1613_v54 = vadd.f32 %v4365_v56, %v4362_v35  ;;  %v5155_v35 = vld [vmem:[#allocation79_spill] sm:$0xff] }
 0x335   : > { %5149 = vst [vmem:[#allocation70_spill] sm:$0xff] %v4374_v57  ;;  %v4378_v46 = vpop.eup %3012  ;;  %3032 = vpow2.f32 %v1518_v13  ;;  %v1522_v63 = vmul.f32 1.442695, %v1408_v58  ;;  %v1524_v42 = vmul.f32 1.442695, %v1409_v19  ;;  %v1922_v6 = vsub.f32 %v5151_v45, %v1854_v8  ;;  %v5156_v58 = vld [vmem:[#allocation82_spill] sm:$0xff] }
 0x336   : > { %5150 = vst [vmem:[#allocation71_spill] sm:$0xff] %v4378_v46  ;;  %v4381_v43 = vpop.eup %3014  ;;  %3034 = vpow2.f32 %v1520_v55  ;;  %v1923_v2 = vsub.f32 %v5153_v34, %v1854_v8  ;;  %1614 = vadd.xlane.f32.xlu1 %v1613_v54  ;;  %v1857_v49 = vpop.xlane.xlu1 %1856  ;;  %v2128_v38 = vadd.f32 %v4374_v57, %v4370_v41 }
 0x337   : > { %5152 = vst [vmem:[#allocation74_spill] sm:$0xff] %v4381_v43  ;;  %v4386_v3 = vpop.eup %3016  ;;  %3036 = vpow2.f32 %v1522_v63  ;;  %v2038_v53 = vmul.f32 1.442695, %v1922_v6  ;;  %v1924_v13 = vsub.f32 %v5155_v35, %v1857_v49  ;;  %v1925_v19 = vsub.f32 %v5156_v58, %v1857_v49  ;;  %v5159_v63 = vld [vmem:[#allocation76_spill] sm:$0xff]  ;;  %v5161_v35 = vld [vmem:[#allocation77_spill] sm:$0xff] }
 0x338   : > { %5154 = vst [vmem:[#allocation68_spill] sm:$0xff] %v4386_v3  ;;  %v4390_v56 = vpop.eup %3018  ;;  %3038 = vpow2.f32 %v1524_v42  ;;  %v2040_v45 = vmul.f32 1.442695, %v1923_v2  ;;  %2129 = vadd.xlane.f32.xlu0 %v2128_v38  ;;  %v1342_v55 = vpop.xlane.xlu0 %1341  ;;  %v2131_v8 = vadd.f32 %v4381_v43, %v4378_v46  ;;  %v5163_v46 = vld [vmem:[#allocation80_spill] sm:$0xff] }
 0x339   : > { %5157 = vst [vmem:[#allocation69_spill] sm:$0xff] %v4390_v56  ;;  %v4394_v54 = vpop.eup %3020  ;;  %3040 = vpow2.f32 %v2038_v53  ;;  %v2042_v34 = vmul.f32 1.442695, %v1924_v13  ;;  %v2044_v41 = vmul.f32 1.442695, %v1925_v19  ;;  %v1410_v6 = vsub.f32 %v5159_v63, %v1342_v55  ;;  %v5164_v13 = vld [vmem:[#allocation81_spill] sm:$0xff] }
 0x33a   : > { %5158 = vst [vmem:[#allocation72_spill] sm:$0xff] %v4394_v54  ;;  %v4397_v57 = vpop.eup %3022  ;;  %3042 = vpow2.f32 %v2040_v45  ;;  %v1411_v49 = vsub.f32 %v5161_v35, %v1342_v55  ;;  %2132 = vadd.xlane.f32.xlu1 %v2131_v8  ;;  %v1345_v42 = vpop.xlane.xlu1 %1344  ;;  %v1616_v2 = vadd.f32 %v4390_v56, %v4386_v3 }
 0x33b   : > { %5160 = vst [vmem:[#allocation73_spill] sm:$0xff] %v4397_v57  ;;  %v4402_v38 = vpop.eup %3024  ;;  %3044 = vpow2.f32 %v2042_v34  ;;  %v1526_v58 = vmul.f32 1.442695, %v1410_v6  ;;  %v1412_v53 = vsub.f32 %v5163_v46, %v1345_v42  ;;  %v1413_v19 = vsub.f32 %v5164_v13, %v1345_v42  ;;  %v5167_v34 = vld [vmem:[#allocation83_spill] sm:$0xff]  ;;  %v5169_v46 = vld [vmem:[#allocation86_spill] sm:$0xff] }
 0x33c   : > { %5162 = vst [vmem:[#allocation75_spill] sm:$0xff] %v4402_v38  ;;  %v4406_v43 = vpop.eup %3026  ;;  %3046 = vpow2.f32 %v2044_v41  ;;  %v1528_v63 = vmul.f32 1.442695, %v1411_v49  ;;  %1617 = vadd.xlane.f32.xlu0 %v1616_v2  ;;  %v1860_v45 = vpop.xlane.xlu0 %1859  ;;  %v1619_v55 = vadd.f32 %v4397_v57, %v4394_v54  ;;  %v5171_v54 = vld [vmem:[#allocation87_spill] sm:$0xff] }
 0x33d   : > { %5165 = vst [vmem:[#allocation78_spill] sm:$0xff] %v4406_v43  ;;  %v4410_v8 = vpop.eup %3028  ;;  %3048 = vpow2.f32 %v1526_v58  ;;  %v1530_v35 = vmul.f32 1.442695, %v1412_v53  ;;  %v1532_v3 = vmul.f32 1.442695, %v1413_v19  ;;  %v1926_v6 = vsub.f32 %v5167_v34, %v1860_v45  ;;  %v5172_v53 = vld [vmem:[#allocation90_spill] sm:$0xff] }
 0x33e   : > { %5166 = vst [vmem:[#allocation79_spill] sm:$0xff] %v4410_v8  ;;  %v4413_v56 = vpop.eup %3030  ;;  %3050 = vpow2.f32 %v1528_v63  ;;  %v1927_v42 = vsub.f32 %v5169_v46, %v1860_v45  ;;  %1620 = vadd.xlane.f32.xlu1 %v1619_v55  ;;  %v1863_v41 = vpop.xlane.xlu1 %1862  ;;  %v2134_v49 = vadd.f32 %v4406_v43, %v4402_v38 }
 0x33f   : > { %5168 = vst [vmem:[#allocation82_spill] sm:$0xff] %v4413_v56  ;;  %v4418_v2 = vpop.eup %3032  ;;  %3052 = vpow2.f32 %v1530_v35  ;;  %v2046_v13 = vmul.f32 1.442695, %v1926_v6  ;;  %v1928_v58 = vsub.f32 %v5171_v54, %v1863_v41  ;;  %v1929_v19 = vsub.f32 %v5172_v53, %v1863_v41  ;;  %v5175_v35 = vld [vmem:[#allocation84_spill] sm:$0xff]  ;;  %v5177_v54 = vld [vmem:[#allocation85_spill] sm:$0xff] }
 0x340   : > { %5170 = vst [vmem:[#allocation76_spill] sm:$0xff] %v4418_v2  ;;  %v4422_v57 = vpop.eup %3034  ;;  %3054 = vpow2.f32 %v1532_v3  ;;  %v2048_v34 = vmul.f32 1.442695, %v1927_v42  ;;  %2135 = vadd.xlane.f32.xlu0 %v2134_v49  ;;  %v1348_v63 = vpop.xlane.xlu0 %1347  ;;  %v2137_v45 = vadd.f32 %v4413_v56, %v4410_v8  ;;  %v5179_v8 = vld [vmem:[#allocation88_spill] sm:$0xff] }
 0x341   : > { %5173 = vst [vmem:[#allocation77_spill] sm:$0xff] %v4422_v57  ;;  %v4426_v55 = vpop.eup %3036  ;;  %3056 = vpow2.f32 %v2046_v13  ;;  %v2050_v46 = vmul.f32 1.442695, %v1928_v58  ;;  %v2052_v38 = vmul.f32 1.442695, %v1929_v19  ;;  %v1414_v6 = vsub.f32 %v5175_v35, %v1348_v63  ;;  %v5180_v58 = vld [vmem:[#allocation89_spill] sm:$0xff] }
 0x342   : > { %5174 = vst [vmem:[#allocation80_spill] sm:$0xff] %v4426_v55  ;;  %v4429_v43 = vpop.eup %3038  ;;  %3058 = vpow2.f32 %v2048_v34  ;;  %v1415_v41 = vsub.f32 %v5177_v54, %v1348_v63  ;;  %2138 = vadd.xlane.f32.xlu1 %v2137_v45  ;;  %v1351_v3 = vpop.xlane.xlu1 %1350  ;;  %v1622_v42 = vadd.f32 %v4422_v57, %v4418_v2 }
 0x343   : > { %5176 = vst [vmem:[#allocation81_spill] sm:$0xff] %v4429_v43  ;;  %v4434_v49 = vpop.eup %3040  ;;  %3060 = vpow2.f32 %v2050_v46  ;;  %v1534_v53 = vmul.f32 1.442695, %v1414_v6  ;;  %v1416_v13 = vsub.f32 %v5179_v8, %v1351_v3  ;;  %v1417_v19 = vsub.f32 %v5180_v58, %v1351_v3  ;;  %v5182_v46 = vld [vmem:[#allocation91_spill] sm:$0xff]  ;;  %v5183_v8 = vld [vmem:[#allocation94_spill] sm:$0xff] }
 0x344   : > { %5178 = vst [vmem:[#allocation83_spill] sm:$0xff] %v4434_v49  ;;  %v4438_v56 = vpop.eup %3042  ;;  %3062 = vpow2.f32 %v2052_v38  ;;  %v1536_v35 = vmul.f32 1.442695, %v1415_v41  ;;  %1623 = vadd.xlane.f32.xlu0 %v1622_v42  ;;  %v1866_v34 = vpop.xlane.xlu0 %1865  ;;  %v1625_v63 = vadd.f32 %v4429_v43, %v4426_v55  ;;  %v5184_v55 = vld [vmem:[#allocation95_spill] sm:$0xff] }
 0x345   : > { %5181 = vst [vmem:[#allocation86_spill] sm:$0xff] %v4438_v56  ;;  %v4442_v45 = vpop.eup %3044  ;;  %3064 = vpow2.f32 %v1534_v53  ;;  %v1538_v54 = vmul.f32 1.442695, %v1416_v13  ;;  %v1540_v2 = vmul.f32 1.442695, %v1417_v19  ;;  %v1930_v6 = vsub.f32 %v5182_v46, %v1866_v34  ;;  %v5185_v13 = vld [vmem:[#allocation96_spill] sm:$0xff] }
 0x346   : > { %v4445_v57 = vpop.eup %3046  ;;  %3066 = vpow2.f32 %v1536_v35  ;;  %v1931_v3 = vsub.f32 %v5183_v8, %v1866_v34  ;;  %1626 = vadd.xlane.f32.xlu1 %v1625_v63  ;;  %v1869_v38 = vpop.xlane.xlu1 %1868  ;;  %v2140_v41 = vadd.f32 %v4438_v56, %v4434_v49 }
 0x347   : > { %v4450_v42 = vpop.eup %3048  ;;  %3068 = vpow2.f32 %v1538_v54  ;;  %v2054_v58 = vmul.f32 1.442695, %v1930_v6  ;;  %v1932_v53 = vsub.f32 %v5184_v55, %v1869_v38  ;;  %v1933_v19 = vsub.f32 %v5185_v13, %v1869_v38  ;;  %v5186_v54 = vld [vmem:[#allocation92_spill] sm:$0xff]  ;;  %v5187_v55 = vld [vmem:[#allocation93_spill] sm:$0xff] }
 0x348   : > { %v4454_v43 = vpop.eup %3050  ;;  %3070 = vpow2.f32 %v1540_v2  ;;  %v2056_v46 = vmul.f32 1.442695, %v1931_v3  ;;  %2141 = vadd.xlane.f32.xlu0 %v2140_v41  ;;  %v1354_v35 = vpop.xlane.xlu0 %1353  ;;  %v2143_v34 = vadd.f32 %v4445_v57, %v4442_v45 }
 0x349   : > { %v4458_v63 = vpop.eup %3052  ;;  %3072 = vpow2.f32 %v2054_v58  ;;  %v2058_v8 = vmul.f32 1.442695, %v1932_v53  ;;  %v2060_v49 = vmul.f32 1.442695, %v1933_v19  ;;  %v1418_v6 = vsub.f32 %v5186_v54, %v1354_v35 }
 0x34a   : > { %v4461_v56 = vpop.eup %3054  ;;  %3074 = vpow2.f32 %v2056_v46  ;;  %v1419_v38 = vsub.f32 %v5187_v55, %v1354_v35  ;;  %2144 = vadd.xlane.f32.xlu1 %v2143_v34  ;;  %v1628_v2 = vadd.f32 %v4454_v43, %v4450_v42  ;;  %v1357_v3 = vpop.xlane.xlu1 %1356 }
 0x34b   : > { %v4466_v41 = vpop.eup %3056  ;;  %3076 = vpow2.f32 %v2058_v8  ;;  %v1542_v13 = vmul.f32 1.442695, %v1418_v6  ;;  %v1420_v58 = vsub.f32 %v3992_v7, %v1357_v3  ;;  %v1421_v53 = vsub.f32 %v3998_v5, %v1357_v3 }
 0x34c   : > { %v4470_v19 = vpop.eup %3058  ;;  %3078 = vpow2.f32 %v2060_v49  ;;  %v1544_v54 = vmul.f32 1.442695, %v1419_v38  ;;  %1629 = vadd.xlane.f32.xlu0 %v1628_v2  ;;  %v1631_v46 = vadd.f32 %v4461_v56, %v4458_v63 }
 0x34d   : > { %v4474_v35 = vpop.eup %3060  ;;  %3080 = vpow2.f32 %v1542_v13  ;;  %v1546_v34 = vmul.f32 1.442695, %v1420_v58  ;;  %v1548_v55 = vmul.f32 1.442695, %v1421_v53  ;;  %v2146_v8 = vadd.f32 %v4470_v19, %v4466_v41 }
 0x34e   : > { %5188 = vst [vmem:[#allocation87_spill] sm:$0xff] %v4474_v35  ;;  %v4478_v6 = vpop.eup %3062  ;;  %3082 = vpow2.f32 %v1544_v54  ;;  %1632 = vadd.xlane.f32.xlu1 %v1631_v46 }
 0x34f   : > { %v4480_v5 = vpop.eup %3064  ;;  %3084 = vpow2.f32 %v1546_v34  ;;  %v2149_v7 = vadd.f32 %v4478_v6, %v4474_v35 }
 0x350   : > { %5189 = vst [vmem:[#allocation90_spill] sm:$0xff] %v4480_v5  ;;  %v4484_v49 = vpop.eup %3066  ;;  %3086 = vpow2.f32 %v1548_v55  ;;  %2147 = vadd.xlane.f32.xlu0 %v2146_v8 }
 0x351   : > { %5190 = vst [vmem:[#allocation84_spill] sm:$0xff] %v4484_v49  ;;  %v4486_v38 = vpop.eup %3068  ;;  %v1634_v2 = vadd.f32 %v4484_v49, %v4480_v5 }
 0x352   : > { %5191 = vst [vmem:[#allocation85_spill] sm:$0xff] %v4486_v38  ;;  %v4490_v3 = vpop.eup %3070  ;;  %2150 = vadd.xlane.f32.xlu1 %v2149_v7 }
 0x353   : > { %5192 = vst [vmem:[#allocation88_spill] sm:$0xff] %v4490_v3  ;;  %v4492_v13 = vpop.eup %3072  ;;  %v1637_v58 = vadd.f32 %v4490_v3, %v4486_v38 }
 0x354   : > { %5193 = vst [vmem:[#allocation89_spill] sm:$0xff] %v4492_v13  ;;  %v4496_v53 = vpop.eup %3074  ;;  %1635 = vadd.xlane.f32.xlu0 %v1634_v2 }
 0x355   : > { %5194 = vst [vmem:[#allocation91_spill] sm:$0xff] %v4496_v53  ;;  %v4498_v54 = vpop.eup %3076  ;;  %v2152_v46 = vadd.f32 %v4496_v53, %v4492_v13 }
 0x356   : > { %5195 = vst [vmem:[#allocation94_spill] sm:$0xff] %v4498_v54  ;;  %v4502_v34 = vpop.eup %3078  ;;  %1638 = vadd.xlane.f32.xlu1 %v1637_v58  ;;  %v450_v58 = vld [vmem:[%s4780_s5 + $0x8] sm:$0xff] }
 0x357   : > { %5196 = vst [vmem:[#allocation95_spill] sm:$0xff] %v4502_v34  ;;  %v4504_v55 = vpop.eup %3080  ;;  %v2155_v8 = vadd.f32 %v4502_v34, %v4498_v54 }
 0x358   : > { %5197 = vst [vmem:[#allocation96_spill] sm:$0xff] %v4504_v55  ;;  %v4508_v7 = vpop.eup %3082  ;;  %2153 = vadd.xlane.f32.xlu0 %v2152_v46 }
 0x359   : > { %5198 = vst [vmem:[#allocation92_spill] sm:$0xff] %v4508_v7  ;;  %v4510_v38 = vpop.eup %3084  ;;  %v1640_v2 = vadd.f32 %v4508_v7, %v4504_v55  ;;  %v451_v55 = vld [vmem:[%s4780_s5 + $0x10] sm:$0xff] }
 0x35a   : > { %5199 = vst [vmem:[#allocation93_spill] sm:$0xff] %v4510_v38  ;;  %v4514_v5 = vpop.eup %3086  ;;  %2156 = vadd.xlane.f32.xlu1 %v2155_v8  ;;  %v2461_v8 = vld [vmem:[%s4784_s9] sm:$0xff] }
 0x35b   : > { %5200 = vst [vmem:[#allocation97_spill] sm:$0xff] %v4514_v5  ;;  %v1643_v13 = vadd.f32 %v4514_v5, %v4510_v38 }
 0x35c   : > { %1641 = vadd.xlane.f32.xlu0 %v1640_v2 }
 0x35e   : > { %1644 = vadd.xlane.f32.xlu1 %v1643_v13 }
 0x36d   : > { %v2064_v54 = vpop.xlane.xlu0 %2063 }
 0x36e   : > { %3088 = vrcp.f32 %v2064_v54  ;;  %v2462_v54 = vld [vmem:[%s4784_s9 + $0x8] sm:$0xff] }
 0x36f   : > { %459 = vperm.xlu1 %2828, %v450_v58   ;;  %v2067_v46 = vpop.xlane.xlu1 %2066 }
 0x370   : > { %3090 = vrcp.f32 %v2067_v46 }
 0x371   : > { %v1552_v38 = vpop.xlane.xlu0 %1551 }
 0x372   : > { %3092 = vrcp.f32 %v1552_v38  ;;  %464 = vperm.xlu0 %2827, %v451_v55  }
 0x373   : > { %2465 = vperm.xlu1 %2828, %v2461_v8   ;;  %v1555_v13 = vpop.xlane.xlu1 %1554 }
 0x374   : > { %3094 = vrcp.f32 %v1555_v13 }
 0x375   : > { %v2070_v2 = vpop.xlane.xlu0 %2069 }
 0x376   : > { %3096 = vrcp.f32 %v2070_v2  ;;  %2470 = vperm.xlu0 %2827, %v2462_v54  }
 0x377   : > { %v2073_v58 = vpop.xlane.xlu1 %2072 }
 0x378   : > { %v3089_v5 = vpop.eup %3088  ;;  %3098 = vrcp.f32 %v2073_v58 }
 0x379   : > { %v1558_v46 = vpop.xlane.xlu0 %1557  ;;  %v2191_v38 = vmul.f32 %v3089_v5, %v4024_v27  ;;  %v2190_v8 = vmul.f32 %v3089_v5, %v4020_v29 }
 0x37a   : > { %v3091_v7 = vpop.eup %3090  ;;  %3100 = vrcp.f32 %v1558_v46 }
 0x37b   : > { %v1561_v34 = vpop.xlane.xlu1 %1560  ;;  %v2193_v55 = vmul.f32 %v3091_v7, %v4029_v17  ;;  %v2192_v53 = vmul.f32 %v3091_v7, %v4026_v15 }
 0x37c   : > { %v3093_v3 = vpop.eup %3092  ;;  %3102 = vrcp.f32 %v1561_v34 }
 0x37d   : > { %v2076_v13 = vpop.xlane.xlu0 %2075  ;;  %v2255_v2 = vpack.c.bf16 %v2193_v55, %v2191_v38  ;;  %v2254_v54 = vpack.c.bf16 %v2192_v53, %v2190_v8  ;;  %v1679_v46 = vmul.f32 %v3093_v3, %v4038_v11  ;;  %v1678_v27 = vmul.f32 %v3093_v3, %v4034_v21 }
 0x37e   : > { %v3095_v49 = vpop.eup %3094  ;;  %3104 = vrcp.f32 %v2076_v13 }
 0x37f   : > { %2286 = vmatprep.subr.bf16.mxu0 %v2255_v2  ;;  %v2079_v58 = vpop.xlane.xlu1 %2078  ;;  %v1681_v35 = vmul.f32 %v3095_v49, %v4045_v31  ;;  %v1680_v17 = vmul.f32 %v3095_v49, %v4042_v1 }
 0x380   : > { %v3097_v29 = vpop.eup %3096  ;;  %3106 = vrcp.f32 %v2079_v58  ;;  %2287 = vmatpush1.bf16.xpose.msra.mxu0 %v2254_v54 }
 0x381   : > { %v1564_v15 = vpop.xlane.xlu0 %1563  ;;  %v1743_v5 = vpack.c.bf16 %v1681_v35, %v1679_v46  ;;  %v1742_v34 = vpack.c.bf16 %v1680_v17, %v1678_v27  ;;  %v2195_v38 = vmul.f32 %v3097_v29, %v4054_v30  ;;  %v2194_v31 = vmul.f32 %v3097_v29, %v4050_v33 }
 0x382   : > { %v3099_v7 = vpop.eup %3098  ;;  %3108 = vrcp.f32 %v1564_v15 }
 0x383   : > { %2329 = vmatprep.subr.bf16.mxu1 %v1743_v5  ;;  %v1567_v53 = vpop.xlane.xlu1 %1566  ;;  %v2197_v11 = vmul.f32 %v3099_v7, %v4061_v28  ;;  %v2196_v21 = vmul.f32 %v3099_v7, %v4058_v24 }
 0x384   : > { %v3101_v3 = vpop.eup %3100  ;;  %3110 = vrcp.f32 %v1567_v53  ;;  %2330 = vmatpush1.bf16.xpose.msra.mxu1 %v1742_v34 }
 0x385   : > { %v2082_v1 = vpop.xlane.xlu0 %2081  ;;  %v2257_v49 = vpack.c.bf16 %v2197_v11, %v2195_v38  ;;  %v2256_v55 = vpack.c.bf16 %v2196_v21, %v2194_v31  ;;  %v1683_v13 = vmul.f32 %v3101_v3, %v4070_v12  ;;  %v1682_v28 = vmul.f32 %v3101_v3, %v4066_v32 }
 0x386   : > { %v3103_v35 = vpop.eup %3102  ;;  %3112 = vrcp.f32 %v2082_v1 }
 0x387   : > { %2288 = vmatprep.subr.bf16.mxu0 %v2257_v49  ;;  %v2085_v8 = vpop.xlane.xlu1 %2084  ;;  %v1685_v30 = vmul.f32 %v3103_v35, %v4077_v10  ;;  %v1684_v33 = vmul.f32 %v3103_v35, %v4074_v14 }
 0x388   : > { %v3105_v2 = vpop.eup %3104  ;;  %3114 = vrcp.f32 %v2085_v8  ;;  %2289 = vmatpush1.bf16.xpose.msra.mxu0 %v2256_v55 }
 0x389   : > { %v1570_v24 = vpop.xlane.xlu0 %1569  ;;  %v1745_v54 = vpack.c.bf16 %v1685_v30, %v1683_v13  ;;  %v1744_v58 = vpack.c.bf16 %v1684_v33, %v1682_v28  ;;  %v2199_v17 = vmul.f32 %v3105_v2, %v4086_v62  ;;  %v2198_v10 = vmul.f32 %v3105_v2, %v4082_v48 }
 0x38a   : > { %v3107_v46 = vpop.eup %3106  ;;  %3116 = vrcp.f32 %v1570_v24 }
 0x38b   : > { %2331 = vmatprep.subr.bf16.mxu1 %v1745_v54  ;;  %v1573_v27 = vpop.xlane.xlu1 %1572  ;;  %v2201_v12 = vmul.f32 %v3107_v46, %v4093_v18  ;;  %v2200_v32 = vmul.f32 %v3107_v46, %v4090_v36 }
 0x38c   : > { %v3109_v29 = vpop.eup %3108  ;;  %3118 = vrcp.f32 %v1573_v27  ;;  %2332 = vmatpush1.bf16.xpose.msra.mxu1 %v1744_v58 }
 0x38d   : > { %v2088_v14 = vpop.xlane.xlu0 %2087  ;;  %v2259_v15 = vpack.c.bf16 %v2201_v12, %v2199_v17  ;;  %v2258_v5 = vpack.c.bf16 %v2200_v32, %v2198_v10  ;;  %v1687_v53 = vmul.f32 %v3109_v29, %v4102_v0  ;;  %v1686_v18 = vmul.f32 %v3109_v29, %v4098_v47 }
 0x38e   : > { %v3111_v34 = vpop.eup %3110  ;;  %3120 = vrcp.f32 %v2088_v14 }
 0x38f   : > { %2290 = vmatprep.subr.bf16.mxu0 %v2259_v15  ;;  %v2091_v7 = vpop.xlane.xlu1 %2090  ;;  %v1689_v62 = vmul.f32 %v3111_v34, %v4109_v20  ;;  %v1688_v48 = vmul.f32 %v3111_v34, %v4106_v39 }
 0x390   : > { %v3113_v38 = vpop.eup %3112  ;;  %3122 = vrcp.f32 %v2091_v7  ;;  %2291 = vmatpush1.bf16.xpose.msra.mxu0 %v2258_v5  ;;  %v5201_v7 = vld [vmem:[#allocation22_spill] sm:$0xff] }
 0x391   : > { %v1576_v36 = vpop.xlane.xlu0 %1575  ;;  %v1747_v11 = vpack.c.bf16 %v1689_v62, %v1687_v53  ;;  %v1746_v31 = vpack.c.bf16 %v1688_v48, %v1686_v18  ;;  %v2203_v1 = vmul.f32 %v3113_v38, %v4118_v50  ;;  %v2202_v20 = vmul.f32 %v3113_v38, %v4114_v60  ;;  %v5202_v62 = vld [vmem:[#allocation26_spill] sm:$0xff]  ;;  %v5203_v18 = vld [vmem:[#allocation19_spill] sm:$0xff] }
 0x392   : > { %v3115_v21 = vpop.eup %3114  ;;  %3124 = vrcp.f32 %v1576_v36  ;;  %v5204_v48 = vld [vmem:[#allocation23_spill] sm:$0xff] }
 0x393   : > { %2333 = vmatprep.subr.bf16.mxu1 %v1747_v11  ;;  %v1579_v3 = vpop.xlane.xlu1 %1578  ;;  %v2205_v0 = vmul.f32 %v3115_v21, %v4125_v26  ;;  %v2204_v47 = vmul.f32 %v3115_v21, %v4122_v40 }
 0x394   : > { %v3117_v49 = vpop.eup %3116  ;;  %3126 = vrcp.f32 %v1579_v3  ;;  %2334 = vmatpush1.bf16.xpose.msra.mxu1 %v1746_v31  ;;  %v5205_v3 = vld [vmem:[#allocation21_spill] sm:$0xff] }
 0x395   : > { %v2094_v39 = vpop.xlane.xlu0 %2093  ;;  %v2261_v55 = vpack.c.bf16 %v2205_v0, %v2203_v1  ;;  %v2260_v35 = vpack.c.bf16 %v2204_v47, %v2202_v20  ;;  %v1691_v30 = vmul.f32 %v3117_v49, %v4134_v22  ;;  %v1690_v26 = vmul.f32 %v3117_v49, %v4130_v59  ;;  %v5206_v0 = vld [vmem:[#allocation25_spill] sm:$0xff]  ;;  %v5207_v47 = vld [vmem:[#allocation20_spill] sm:$0xff] }
 0x396   : > { %v3119_v8 = vpop.eup %3118  ;;  %3128 = vrcp.f32 %v2094_v39  ;;  %v5208_v39 = vld [vmem:[#allocation24_spill] sm:$0xff] }
 0x397   : > { %2292 = vmatprep.subr.bf16.mxu0 %v2261_v55  ;;  %v2097_v13 = vpop.xlane.xlu1 %2096  ;;  %v1693_v50 = vmul.f32 %v3119_v8, %v4141_v16  ;;  %v1692_v60 = vmul.f32 %v3119_v8, %v4138_v51 }
 0x398   : > { %v3121_v28 = vpop.eup %3120  ;;  %3130 = vrcp.f32 %v2097_v13  ;;  %2293 = vmatpush1.bf16.xpose.msra.mxu0 %v2260_v35 }
 0x399   : > { %v1582_v40 = vpop.xlane.xlu0 %1581  ;;  %v1749_v33 = vpack.c.bf16 %v1693_v50, %v1691_v30  ;;  %v1748_v2 = vpack.c.bf16 %v1692_v60, %v1690_v26  ;;  %v2207_v58 = vmul.f32 %v3121_v28, %v4150_v25  ;;  %v2206_v16 = vmul.f32 %v3121_v28, %v4146_v23  ;;  %v5209_v60 = vld [vmem:[#allocation30_spill] sm:$0xff] }
 0x39a   : > { %v3123_v24 = vpop.eup %3122  ;;  %3132 = vrcp.f32 %v1582_v40  ;;  %v5210_v40 = vld [vmem:[#allocation34_spill] sm:$0xff] }
 0x39b   : > { %2335 = vmatprep.subr.bf16.mxu1 %v1749_v33  ;;  %v1585_v54 = vpop.xlane.xlu1 %1584  ;;  %v2209_v22 = vmul.f32 %v3123_v24, %v4157_v9  ;;  %v2208_v59 = vmul.f32 %v3123_v24, %v4154_v52 }
 0x39c   : > { %v3125_v46 = vpop.eup %3124  ;;  %3134 = vrcp.f32 %v1585_v54  ;;  %2336 = vmatpush1.bf16.xpose.msra.mxu1 %v1748_v2  ;;  %v5211_v2 = vld [vmem:[#allocation27_spill] sm:$0xff] }
 0x39d   : > { %v2100_v51 = vpop.xlane.xlu0 %2099  ;;  %v2263_v27 = vpack.c.bf16 %v2209_v22, %v2207_v58  ;;  %v2262_v17 = vpack.c.bf16 %v2208_v59, %v2206_v16  ;;  %v1695_v32 = vmul.f32 %v3125_v46, %v4166_v4  ;;  %v1694_v9 = vmul.f32 %v3125_v46, %v4162_v44  ;;  %v5212_v54 = vld [vmem:[#allocation31_spill] sm:$0xff] }
 0x39e   : > { %v3127_v12 = vpop.eup %3126  ;;  %3136 = vrcp.f32 %v2100_v51 }
 0x39f   : > { %2294 = vmatprep.subr.bf16.mxu0 %v2263_v27  ;;  %v2103_v10 = vpop.xlane.xlu1 %2102  ;;  %v1697_v25 = vmul.f32 %v3127_v12, %v4173_v37  ;;  %v1696_v23 = vmul.f32 %v3127_v12, %v4170_v61 }
 0x3a0   : > { %v3129_v29 = vpop.eup %3128  ;;  %3138 = vrcp.f32 %v2103_v10  ;;  %2295 = vmatpush1.bf16.xpose.msra.mxu0 %v2262_v17  ;;  %v5213_v17 = vld [vmem:[#allocation29_spill] sm:$0xff] }
 0x3a1   : > { %v1588_v52 = vpop.xlane.xlu0 %1587  ;;  %v1751_v14 = vpack.c.bf16 %v1697_v25, %v1695_v32  ;;  %v1750_v15 = vpack.c.bf16 %v1696_v23, %v1694_v9  ;;  %v2211_v53 = vmul.f32 %v3129_v29, %v5201_v7  ;;  %v2210_v37 = vmul.f32 %v3129_v29, %v5203_v18  ;;  %v5214_v10 = vld [vmem:[#allocation33_spill] sm:$0xff]  ;;  %v5215_v25 = vld [vmem:[#allocation28_spill] sm:$0xff] }
 0x3a2   : > { %v3131_v5 = vpop.eup %3130  ;;  %3140 = vrcp.f32 %v1588_v52  ;;  %v5216_v23 = vld [vmem:[#allocation32_spill] sm:$0xff] }
 0x3a3   : > { %2337 = vmatprep.subr.bf16.mxu1 %v1751_v14  ;;  %v1591_v34 = vpop.xlane.xlu1 %1590  ;;  %v2213_v4 = vmul.f32 %v3131_v5, %v5202_v62  ;;  %v2212_v44 = vmul.f32 %v3131_v5, %v5204_v48 }
 0x3a4   : > { %v3133_v38 = vpop.eup %3132  ;;  %3142 = vrcp.f32 %v1591_v34  ;;  %2338 = vmatpush1.bf16.xpose.msra.mxu1 %v1750_v15 }
 0x3a5   : > { %v2106_v61 = vpop.xlane.xlu0 %2105  ;;  %v2265_v36 = vpack.c.bf16 %v2213_v4, %v2211_v53  ;;  %v2264_v11 = vpack.c.bf16 %v2212_v44, %v2210_v37  ;;  %v1699_v1 = vmul.f32 %v3133_v38, %v5205_v3  ;;  %v1698_v49 = vmul.f32 %v3133_v38, %v5207_v47  ;;  %v5217_v53 = vld [vmem:[#allocation38_spill] sm:$0xff]  ;;  %v5219_v37 = vld [vmem:[#allocation35_spill] sm:$0xff] }
 0x3a6   : > { %v3135_v31 = vpop.eup %3134  ;;  %3144 = vrcp.f32 %v2106_v61  ;;  %v5218_v4 = vld [vmem:[#allocation42_spill] sm:$0xff]  ;;  %v5220_v44 = vld [vmem:[#allocation39_spill] sm:$0xff] }
 0x3a7   : > { %2296 = vmatprep.subr.bf16.mxu0 %v2265_v36  ;;  %v2109_v21 = vpop.xlane.xlu1 %2108  ;;  %v1701_v20 = vmul.f32 %v3135_v31, %v5206_v0  ;;  %v1700_v55 = vmul.f32 %v3135_v31, %v5208_v39 }
 0x3a8   : > { %v3137_v35 = vpop.eup %3136  ;;  %3146 = vrcp.f32 %v2109_v21  ;;  %2297 = vmatpush1.bf16.xpose.msra.mxu0 %v2264_v11 }
 0x3a9   : > { %v1594_v8 = vpop.xlane.xlu0 %1593  ;;  %v1753_v13 = vpack.c.bf16 %v1701_v20, %v1699_v1  ;;  %v1752_v30 = vpack.c.bf16 %v1700_v55, %v1698_v49  ;;  %v2215_v28 = vmul.f32 %v3137_v35, %v5209_v60  ;;  %v2214_v24 = vmul.f32 %v3137_v35, %v5211_v2  ;;  %v5221_v1 = vld [vmem:[#allocation37_spill] sm:$0xff]  ;;  %v5223_v49 = vld [vmem:[#allocation36_spill] sm:$0xff] }
 0x3aa   : > { %v3139_v50 = vpop.eup %3138  ;;  %3148 = vrcp.f32 %v1594_v8  ;;  %v5222_v20 = vld [vmem:[#allocation41_spill] sm:$0xff]  ;;  %v5224_v55 = vld [vmem:[#allocation40_spill] sm:$0xff] }
 0x3ab   : > { %2339 = vmatprep.subr.bf16.mxu1 %v1753_v13  ;;  %v1597_v26 = vpop.xlane.xlu1 %1596  ;;  %v2217_v33 = vmul.f32 %v3139_v50, %v5210_v40  ;;  %v2216_v58 = vmul.f32 %v3139_v50, %v5212_v54 }
 0x3ac   : > { %v3141_v22 = vpop.eup %3140  ;;  %3150 = vrcp.f32 %v1597_v26  ;;  %2340 = vmatpush1.bf16.xpose.msra.mxu1 %v1752_v30 }
 0x3ad   : > { %v2112_v16 = vpop.xlane.xlu0 %2111  ;;  %v2267_v59 = vpack.c.bf16 %v2217_v33, %v2215_v28  ;;  %v2266_v46 = vpack.c.bf16 %v2216_v58, %v2214_v24  ;;  %v1703_v12 = vmul.f32 %v3141_v22, %v5213_v17  ;;  %v1702_v9 = vmul.f32 %v3141_v22, %v5215_v25  ;;  %v5225_v28 = vld [vmem:[#allocation46_spill] sm:$0xff]  ;;  %v5227_v24 = vld [vmem:[#allocation43_spill] sm:$0xff] }
 0x3ae   : > { %v3143_v51 = vpop.eup %3142  ;;  %3152 = vrcp.f32 %v2112_v16  ;;  %v5226_v33 = vld [vmem:[#allocation50_spill] sm:$0xff]  ;;  %v5228_v58 = vld [vmem:[#allocation47_spill] sm:$0xff] }
 0x3af   : > { %2298 = vmatprep.subr.bf16.mxu0 %v2267_v59  ;;  %v2115_v27 = vpop.xlane.xlu1 %2114  ;;  %v1705_v32 = vmul.f32 %v3143_v51, %v5214_v10  ;;  %v1704_v29 = vmul.f32 %v3143_v51, %v5216_v23 }
 0x3b0   : > { %v3145_v52 = vpop.eup %3144  ;;  %3154 = vrcp.f32 %v2115_v27  ;;  %2299 = vmatpush1.bf16.xpose.msra.mxu0 %v2266_v46 }
 0x3b1   : > { %v1600_v14 = vpop.xlane.xlu0 %1599  ;;  %v1755_v15 = vpack.c.bf16 %v1705_v32, %v1703_v12  ;;  %v1754_v5 = vpack.c.bf16 %v1704_v29, %v1702_v9  ;;  %v2219_v62 = vmul.f32 %v3145_v52, %v5217_v53  ;;  %v2218_v48 = vmul.f32 %v3145_v52, %v5219_v37  ;;  %v5229_v12 = vld [vmem:[#allocation45_spill] sm:$0xff]  ;;  %v5231_v9 = vld [vmem:[#allocation44_spill] sm:$0xff] }
 0x3b2   : > { %v3147_v34 = vpop.eup %3146  ;;  %3156 = vrcp.f32 %v1600_v14  ;;  %v5230_v32 = vld [vmem:[#allocation49_spill] sm:$0xff]  ;;  %v5232_v29 = vld [vmem:[#allocation48_spill] sm:$0xff] }
 0x3b3   : > { %2341 = vmatprep.subr.bf16.mxu1 %v1755_v15  ;;  %v1603_v7 = vpop.xlane.xlu1 %1602  ;;  %v2221_v18 = vmul.f32 %v3147_v34, %v5218_v4  ;;  %v2220_v38 = vmul.f32 %v3147_v34, %v5220_v44 }
 0x3b4   : > { %v3149_v61 = vpop.eup %3148  ;;  %3158 = vrcp.f32 %v1603_v7  ;;  %2342 = vmatpush1.bf16.xpose.msra.mxu1 %v1754_v5 }
 0x3b5   : > { %v2118_v36 = vpop.xlane.xlu0 %2117  ;;  %v2269_v11 = vpack.c.bf16 %v2221_v18, %v2219_v62  ;;  %v2268_v31 = vpack.c.bf16 %v2220_v38, %v2218_v48  ;;  %v1707_v0 = vmul.f32 %v3149_v61, %v5221_v1  ;;  %v1706_v39 = vmul.f32 %v3149_v61, %v5223_v49  ;;  %v5233_v62 = vld [vmem:[#allocation54_spill] sm:$0xff]  ;;  %v5235_v48 = vld [vmem:[#allocation51_spill] sm:$0xff] }
 0x3b6   : > { %v3151_v21 = vpop.eup %3150  ;;  %3160 = vrcp.f32 %v2118_v36  ;;  %v5234_v18 = vld [vmem:[#allocation58_spill] sm:$0xff]  ;;  %v5236_v38 = vld [vmem:[#allocation55_spill] sm:$0xff] }
 0x3b7   : > { %2300 = vmatprep.subr.bf16.mxu0 %v2269_v11  ;;  %v2121_v3 = vpop.xlane.xlu1 %2120  ;;  %v1709_v47 = vmul.f32 %v3151_v21, %v5222_v20  ;;  %v1708_v35 = vmul.f32 %v3151_v21, %v5224_v55 }
 0x3b8   : > { %v3153_v8 = vpop.eup %3152  ;;  %3162 = vrcp.f32 %v2121_v3  ;;  %2301 = vmatpush1.bf16.xpose.msra.mxu0 %v2268_v31 }
 0x3b9   : > { %v1606_v13 = vpop.xlane.xlu0 %1605  ;;  %v1757_v30 = vpack.c.bf16 %v1709_v47, %v1707_v0  ;;  %v1756_v50 = vpack.c.bf16 %v1708_v35, %v1706_v39  ;;  %v2223_v40 = vmul.f32 %v3153_v8, %v5225_v28  ;;  %v2222_v54 = vmul.f32 %v3153_v8, %v5227_v24  ;;  %v5237_v0 = vld [vmem:[#allocation53_spill] sm:$0xff]  ;;  %v5239_v39 = vld [vmem:[#allocation52_spill] sm:$0xff] }
 0x3ba   : > { %v3155_v26 = vpop.eup %3154  ;;  %3164 = vrcp.f32 %v1606_v13  ;;  %v5238_v47 = vld [vmem:[#allocation57_spill] sm:$0xff]  ;;  %v5240_v35 = vld [vmem:[#allocation56_spill] sm:$0xff] }
 0x3bb   : > { %2343 = vmatprep.subr.bf16.mxu1 %v1757_v30  ;;  %v1609_v60 = vpop.xlane.xlu1 %1608  ;;  %v2225_v2 = vmul.f32 %v3155_v26, %v5226_v33  ;;  %v2224_v22 = vmul.f32 %v3155_v26, %v5228_v58 }
 0x3bc   : > { %v3157_v16 = vpop.eup %3156  ;;  %3166 = vrcp.f32 %v1609_v60  ;;  %2344 = vmatpush1.bf16.xpose.msra.mxu1 %v1756_v50 }
 0x3bd   : > { %v2124_v59 = vpop.xlane.xlu0 %2123  ;;  %v2271_v46 = vpack.c.bf16 %v2225_v2, %v2223_v40  ;;  %v2270_v51 = vpack.c.bf16 %v2224_v22, %v2222_v54  ;;  %v1711_v10 = vmul.f32 %v3157_v16, %v5229_v12  ;;  %v1710_v23 = vmul.f32 %v3157_v16, %v5231_v9  ;;  %v5241_v40 = vld [vmem:[#allocation62_spill] sm:$0xff]  ;;  %v5243_v54 = vld [vmem:[#allocation59_spill] sm:$0xff] }
 0x3be   : > { %v3159_v27 = vpop.eup %3158  ;;  %3168 = vrcp.f32 %v2124_v59  ;;  %v5242_v2 = vld [vmem:[#allocation66_spill] sm:$0xff]  ;;  %v5244_v22 = vld [vmem:[#allocation63_spill] sm:$0xff] }
 0x3bf   : > { %2302 = vmatprep.subr.bf16.mxu0 %v2271_v46  ;;  %v2127_v17 = vpop.xlane.xlu1 %2126  ;;  %v1713_v25 = vmul.f32 %v3159_v27, %v5230_v32  ;;  %v1712_v52 = vmul.f32 %v3159_v27, %v5232_v29 }
 0x3c0   : > { %v3161_v14 = vpop.eup %3160  ;;  %3170 = vrcp.f32 %v2127_v17  ;;  %2303 = vmatpush1.bf16.xpose.msra.mxu0 %v2270_v51 }
 0x3c1   : > { %v1612_v15 = vpop.xlane.xlu0 %1611  ;;  %v1759_v5 = vpack.c.bf16 %v1713_v25, %v1711_v10  ;;  %v1758_v34 = vpack.c.bf16 %v1712_v52, %v1710_v23  ;;  %v2227_v4 = vmul.f32 %v3161_v14, %v5233_v62  ;;  %v2226_v44 = vmul.f32 %v3161_v14, %v5235_v48  ;;  %v5245_v10 = vld [vmem:[#allocation61_spill] sm:$0xff]  ;;  %v5247_v23 = vld [vmem:[#allocation60_spill] sm:$0xff] }
 0x3c2   : > { %v3163_v7 = vpop.eup %3162  ;;  %3172 = vrcp.f32 %v1612_v15  ;;  %v5246_v25 = vld [vmem:[#allocation65_spill] sm:$0xff]  ;;  %v5248_v52 = vld [vmem:[#allocation64_spill] sm:$0xff] }
 0x3c3   : > { %2345 = vmatprep.subr.bf16.mxu1 %v1759_v5  ;;  %v1615_v53 = vpop.xlane.xlu1 %1614  ;;  %v2229_v37 = vmul.f32 %v3163_v7, %v5234_v18  ;;  %v2228_v61 = vmul.f32 %v3163_v7, %v5236_v38 }
 0x3c4   : > { %v3165_v36 = vpop.eup %3164  ;;  %3174 = vrcp.f32 %v1615_v53  ;;  %2346 = vmatpush1.bf16.xpose.msra.mxu1 %v1758_v34 }
 0x3c5   : > { %v2130_v11 = vpop.xlane.xlu0 %2129  ;;  %v2273_v31 = vpack.c.bf16 %v2229_v37, %v2227_v4  ;;  %v2272_v21 = vpack.c.bf16 %v2228_v61, %v2226_v44  ;;  %v1715_v20 = vmul.f32 %v3165_v36, %v5237_v0  ;;  %v1714_v55 = vmul.f32 %v3165_v36, %v5239_v39  ;;  %v5249_v4 = vld [vmem:[#allocation70_spill] sm:$0xff]  ;;  %v5251_v44 = vld [vmem:[#allocation67_spill] sm:$0xff] }
 0x3c6   : > { %v3167_v3 = vpop.eup %3166  ;;  %3176 = vrcp.f32 %v2130_v11  ;;  %v5250_v37 = vld [vmem:[#allocation74_spill] sm:$0xff]  ;;  %v5252_v61 = vld [vmem:[#allocation71_spill] sm:$0xff] }
 0x3c7   : > { %2304 = vmatprep.subr.bf16.mxu0 %v2273_v31  ;;  %v2133_v1 = vpop.xlane.xlu1 %2132  ;;  %v1717_v49 = vmul.f32 %v3167_v3, %v5238_v47  ;;  %v1716_v8 = vmul.f32 %v3167_v3, %v5240_v35 }
 0x3c8   : > { %v3169_v13 = vpop.eup %3168  ;;  %3178 = vrcp.f32 %v2133_v1  ;;  %2305 = vmatpush1.bf16.xpose.msra.mxu0 %v2272_v21 }
 0x3c9   : > { %v1618_v30 = vpop.xlane.xlu0 %1617  ;;  %v1761_v50 = vpack.c.bf16 %v1717_v49, %v1715_v20  ;;  %v1760_v26 = vpack.c.bf16 %v1716_v8, %v1714_v55  ;;  %v2231_v33 = vmul.f32 %v3169_v13, %v5241_v40  ;;  %v2230_v58 = vmul.f32 %v3169_v13, %v5243_v54  ;;  %v5253_v20 = vld [vmem:[#allocation69_spill] sm:$0xff]  ;;  %v5255_v55 = vld [vmem:[#allocation68_spill] sm:$0xff] }
 0x3ca   : > { %v3171_v60 = vpop.eup %3170  ;;  %3180 = vrcp.f32 %v1618_v30  ;;  %v5254_v49 = vld [vmem:[#allocation73_spill] sm:$0xff]  ;;  %v5256_v8 = vld [vmem:[#allocation72_spill] sm:$0xff] }
 0x3cb   : > { %2347 = vmatprep.subr.bf16.mxu1 %v1761_v50  ;;  %v1621_v28 = vpop.xlane.xlu1 %1620  ;;  %v2233_v24 = vmul.f32 %v3171_v60, %v5242_v2  ;;  %v2232_v16 = vmul.f32 %v3171_v60, %v5244_v22 }
 0x3cc   : > { %v3173_v59 = vpop.eup %3172  ;;  %3182 = vrcp.f32 %v1621_v28  ;;  %2348 = vmatpush1.bf16.xpose.msra.mxu1 %v1760_v26 }
 0x3cd   : > { %v2136_v46 = vpop.xlane.xlu0 %2135  ;;  %v2275_v51 = vpack.c.bf16 %v2233_v24, %v2231_v33  ;;  %v2274_v27 = vpack.c.bf16 %v2232_v16, %v2230_v58  ;;  %v1719_v32 = vmul.f32 %v3173_v59, %v5245_v10  ;;  %v1718_v29 = vmul.f32 %v3173_v59, %v5247_v23  ;;  %v5257_v33 = vld [vmem:[#allocation78_spill] sm:$0xff]  ;;  %v5259_v58 = vld [vmem:[#allocation75_spill] sm:$0xff] }
 0x3ce   : > { %v3175_v17 = vpop.eup %3174  ;;  %3184 = vrcp.f32 %v2136_v46  ;;  %v5258_v24 = vld [vmem:[#allocation82_spill] sm:$0xff]  ;;  %v5260_v16 = vld [vmem:[#allocation79_spill] sm:$0xff] }
 0x3cf   : > { %2306 = vmatprep.subr.bf16.mxu0 %v2275_v51  ;;  %v2139_v12 = vpop.xlane.xlu1 %2138  ;;  %v1721_v9 = vmul.f32 %v3175_v17, %v5246_v25  ;;  %v1720_v14 = vmul.f32 %v3175_v17, %v5248_v52 }
 0x3d0   : > { %v3177_v15 = vpop.eup %3176  ;;  %3186 = vrcp.f32 %v2139_v12  ;;  %2307 = vmatpush1.bf16.xpose.msra.mxu0 %v2274_v27 }
 0x3d1   : > { %v1624_v5 = vpop.xlane.xlu0 %1623  ;;  %v1763_v34 = vpack.c.bf16 %v1721_v9, %v1719_v32  ;;  %v1762_v7 = vpack.c.bf16 %v1720_v14, %v1718_v29  ;;  %v2235_v18 = vmul.f32 %v3177_v15, %v5249_v4  ;;  %v2234_v38 = vmul.f32 %v3177_v15, %v5251_v44  ;;  %v5261_v32 = vld [vmem:[#allocation77_spill] sm:$0xff]  ;;  %v5263_v29 = vld [vmem:[#allocation76_spill] sm:$0xff]  ;;  %v5266_v44 = vld [vmem:[#allocation83_spill] sm:$0xff] }
 0x3d2   : > { %v3179_v53 = vpop.eup %3178  ;;  %3188 = vrcp.f32 %v1624_v5  ;;  %v5262_v9 = vld [vmem:[#allocation81_spill] sm:$0xff]  ;;  %v5264_v14 = vld [vmem:[#allocation80_spill] sm:$0xff] }
 0x3d3   : > { %2349 = vmatprep.subr.bf16.mxu1 %v1763_v34  ;;  %v1627_v62 = vpop.xlane.xlu1 %1626  ;;  %v2237_v48 = vmul.f32 %v3179_v53, %v5250_v37  ;;  %v2236_v36 = vmul.f32 %v3179_v53, %v5252_v61 }
 0x3d4   : > { %v3181_v11 = vpop.eup %3180  ;;  %3190 = vrcp.f32 %v1627_v62  ;;  %2350 = vmatpush1.bf16.xpose.msra.mxu1 %v1762_v7 }
 0x3d5   : > { %v2142_v31 = vpop.xlane.xlu0 %2141  ;;  %v2277_v21 = vpack.c.bf16 %v2237_v48, %v2235_v18  ;;  %v2276_v3 = vpack.c.bf16 %v2236_v36, %v2234_v38  ;;  %v1723_v47 = vmul.f32 %v3181_v11, %v5253_v20  ;;  %v1722_v35 = vmul.f32 %v3181_v11, %v5255_v55  ;;  %v5265_v18 = vld [vmem:[#allocation86_spill] sm:$0xff] }
 0x3d6   : > { %v3183_v1 = vpop.eup %3182  ;;  %3192 = vrcp.f32 %v2142_v31 }
 0x3d7   : > { %2308 = vmatprep.subr.bf16.mxu0 %v2277_v21  ;;  %v2145_v0 = vpop.xlane.xlu1 %2144  ;;  %v1725_v39 = vmul.f32 %v3183_v1, %v5254_v49  ;;  %v1724_v13 = vmul.f32 %v3183_v1, %v5256_v8 }
 0x3d8   : > { %v3185_v30 = vpop.eup %3184  ;;  %3194 = vrcp.f32 %v2145_v0  ;;  %2309 = vmatpush1.bf16.xpose.msra.mxu0 %v2276_v3 }
 0x3d9   : > { %v1630_v50 = vpop.xlane.xlu0 %1629  ;;  %v1765_v26 = vpack.c.bf16 %v1725_v39, %v1723_v47  ;;  %v1764_v60 = vpack.c.bf16 %v1724_v13, %v1722_v35  ;;  %v2239_v2 = vmul.f32 %v3185_v30, %v5257_v33  ;;  %v2238_v22 = vmul.f32 %v3185_v30, %v5259_v58  ;;  %v5267_v30 = vld [vmem:[#allocation87_spill] sm:$0xff]  ;;  %v5271_v58 = vld [vmem:[#allocation85_spill] sm:$0xff] }
 0x3da   : > { %v3187_v28 = vpop.eup %3186  ;;  %3196 = vrcp.f32 %v1630_v50 }
 0x3db   : > { %2351 = vmatprep.subr.bf16.mxu1 %v1765_v26  ;;  %v1633_v40 = vpop.xlane.xlu1 %1632  ;;  %v2241_v54 = vmul.f32 %v3187_v28, %v5258_v24  ;;  %v2240_v59 = vmul.f32 %v3187_v28, %v5260_v16 }
 0x3dc   : > { %v3189_v46 = vpop.eup %3188  ;;  %3198 = vrcp.f32 %v1633_v40  ;;  %2352 = vmatpush1.bf16.xpose.msra.mxu1 %v1764_v60  ;;  %v5268_v40 = vld [vmem:[#allocation84_spill] sm:$0xff] }
 0x3dd   : > { %v2148_v51 = vpop.xlane.xlu0 %2147  ;;  %v2279_v27 = vpack.c.bf16 %v2241_v54, %v2239_v2  ;;  %v2278_v17 = vpack.c.bf16 %v2240_v59, %v2238_v22  ;;  %v1727_v25 = vmul.f32 %v3189_v46, %v5261_v32  ;;  %v1726_v52 = vmul.f32 %v3189_v46, %v5263_v29  ;;  %v5269_v2 = vld [vmem:[#allocation88_spill] sm:$0xff]  ;;  %v5270_v54 = vld [vmem:[#allocation90_spill] sm:$0xff] }
 0x3de   : > { %v3191_v12 = vpop.eup %3190  ;;  %3200 = vrcp.f32 %v2148_v51  ;;  %v5272_v51 = vld [vmem:[#allocation13_spill] sm:$0xff] }
 0x3df   : > { %2310 = vmatprep.subr.bf16.mxu0 %v2279_v27  ;;  %v2151_v10 = vpop.xlane.xlu1 %2150  ;;  %v1729_v23 = vmul.f32 %v3191_v12, %v5262_v9  ;;  %v1728_v15 = vmul.f32 %v3191_v12, %v5264_v14 }
 0x3e0   : > { %v3193_v5 = vpop.eup %3192  ;;  %3202 = vrcp.f32 %v2151_v10  ;;  %2311 = vmatpush1.bf16.xpose.msra.mxu0 %v2278_v17  ;;  %v5273_v17 = vld [vmem:[#allocation14_spill] sm:$0xff]  ;;  %v5274_v10 = vld [vmem:[#allocation15_spill] sm:$0xff] }
 0x3e1   : > { %v1636_v34 = vpop.xlane.xlu0 %1635  ;;  %v1767_v7 = vpack.c.bf16 %v1729_v23, %v1727_v25  ;;  %v1766_v53 = vpack.c.bf16 %v1728_v15, %v1726_v52  ;;  %v2243_v37 = vmul.f32 %v3193_v5, %v5265_v18  ;;  %v2242_v38 = vmul.f32 %v3193_v5, %v5266_v44  ;;  %v5275_v25 = vld [vmem:[#allocation16_spill] sm:$0xff]  ;;  %v5276_v23 = vld [vmem:[#allocation91_spill] sm:$0xff]  ;;  %v5278_v15 = vld [vmem:[#allocation89_spill] sm:$0xff] }
 0x3e2   : > { %v3195_v62 = vpop.eup %3194  ;;  %3204 = vrcp.f32 %v1636_v34  ;;  %v5277_v52 = vld [vmem:[#allocation95_spill] sm:$0xff]  ;;  %v5279_v34 = vld [vmem:[#allocation94_spill] sm:$0xff]  ;;  %v5280_v44 = vld [vmem:[#allocation92_spill] sm:$0xff] }
 0x3e3   : > { %2353 = vmatprep.subr.bf16.mxu1 %v1767_v7  ;;  %v1639_v4 = vpop.xlane.xlu1 %1638  ;;  %v2245_v48 = vmul.f32 %v3195_v62, %v4445_v57  ;;  %v2244_v61 = vmul.f32 %v3195_v62, %v4442_v45 }
 0x3e4   : > { %v3197_v36 = vpop.eup %3196  ;;  %3206 = vrcp.f32 %v1639_v4  ;;  %2354 = vmatpush1.bf16.xpose.msra.mxu1 %v1766_v53 }
 0x3e5   : > { %v2154_v11 = vpop.xlane.xlu0 %2153  ;;  %v2281_v31 = vpack.c.bf16 %v2245_v48, %v2243_v37  ;;  %v2280_v21 = vpack.c.bf16 %v2244_v61, %v2242_v38  ;;  %v1731_v0 = vmul.f32 %v3197_v36, %v4454_v43  ;;  %v1730_v57 = vmul.f32 %v3197_v36, %v4450_v42  ;;  %v5281_v61 = vld [vmem:[#allocation97_spill] sm:$0xff] }
 0x3e6   : > { %v3199_v3 = vpop.eup %3198  ;;  %3208 = vrcp.f32 %v2154_v11  ;;  %v5282_v11 = vld [vmem:[#allocation96_spill] sm:$0xff] }
 0x3e7   : > { %2312 = vmatprep.subr.bf16.mxu0 %v2281_v31  ;;  %v2157_v1 = vpop.xlane.xlu1 %2156  ;;  %v1733_v20 = vmul.f32 %v3199_v3, %v4461_v56  ;;  %v1732_v47 = vmul.f32 %v3199_v3, %v4458_v63 }
 0x3e8   : > { %v3201_v49 = vpop.eup %3200  ;;  %3210 = vrcp.f32 %v2157_v1  ;;  %2313 = vmatpush1.bf16.xpose.msra.mxu0 %v2280_v21  ;;  %v5283_v21 = vld [vmem:[#allocation93_spill] sm:$0xff] }
 0x3e9   : > { %v1642_v45 = vpop.xlane.xlu0 %1641  ;;  %v1769_v39 = vpack.c.bf16 %v1733_v20, %v1731_v0  ;;  %v1768_v55 = vpack.c.bf16 %v1732_v47, %v1730_v57  ;;  %v2247_v13 = vmul.f32 %v3201_v49, %v4470_v19  ;;  %v2246_v56 = vmul.f32 %v3201_v49, %v4466_v41  ;;  %v5284_v20 = vld [vmem:[#allocation12_spill] sm:$0xff]  ;;  %v5285_v57 = vld [vmem:[#allocation17_spill] sm:$0xff]  ;;  %v5286_v47 = vld [vmem:[#allocation18_spill] sm:$0xff] }
 0x3ea   : > { %v3203_v35 = vpop.eup %3202  ;;  %3212 = vrcp.f32 %v1642_v45  ;;  %v5287_v49 = vpack.c.bf16 %v5285_v57, %v5286_v47  ;;  %v3228_v45 = vld [vmem:[%s3479_s21] sm:$0xff]  ;;  %s4680_s21 = sand.u32 1, %s3324_s18  }
 0x3eb   : > { %2355 = vmatprep.subr.bf16.mxu1 %v1769_v39  ;;  %v1645_v8 = vpop.xlane.xlu1 %1644  ;;  %v2249_v43 = vmul.f32 %v3203_v35, %v4478_v6  ;;  %v2248_v42 = vmul.f32 %v3203_v35, %v5267_v30  ;;  %v5288_v39 = vmov 0.0   ;;  %v2373_v35 = vld [vmem:[%s4783_s8 + $0x8] sm:$0xff]  ;;  %s2688_s24 = sshll.u32 %s4680_s21, 3  ;;  %s2530_s30 = scalar_lea.sflag [#allocation5], %s4680_s21 }
 0x3ec   : > { %v3205_v50 = vpop.eup %3204  ;;  %3214 = vrcp.f32 %v1645_v8  ;;  %2356 = vmatpush1.bf16.xpose.msra.mxu1 %v1768_v55  ;;  %v2372_v55 = vld [vmem:[%s4783_s8] sm:$0xff]  ;;  %s421_s28 = scalar_lea.vmem [#allocation4], %s2688_s24  ;;  %s4694_s15 = scalar_lea.vmem [#allocation2], %s2688_s24 }
 0x3ed   : > { %v2283_v63 = vpack.c.bf16 %v2249_v43, %v2247_v13  ;;  %v2282_v26 = vpack.c.bf16 %v2248_v42, %v2246_v56  ;;  %v1735_v33 = vmul.f32 %v3205_v50, %v5268_v40  ;;  %v1734_v19 = vmul.f32 %v3205_v50, %v5270_v54  ;;  %s2562_s12 = sshll.u32 %s421_s28, 4  ;;  %s4692_s12 = int_to_ptr.vmem [resolvable:$true] %s2562_s12 }
 0x3ee   : > { %v3207_v60 = vpop.eup %3206  ;;  %s3230_s16 = scalar_lea.vmem %s4692_s12, 128 }
 0x3ef   : > { %2314 = vmatprep.subr.bf16.mxu0 %v2283_v63  ;;  %v460_v28 = vpop.permute.xlu1 %459  ;;  %v1737_v24 = vmul.f32 %v3207_v60, %v5269_v2  ;;  %v1736_v6 = vmul.f32 %v3207_v60, %v5271_v58  ;;  %p3231_p12 = scmp.ne.s32.totalorder %s4692_s12, %s3230_s16 }
 0x3f0   : > { %v3209_v22 = vpop.eup %3208  ;;  %2315 = vmatpush1.bf16.xpose.msra.mxu0 %v2282_v26  ;;  %v557_v27 = vadd.f32 %v5272_v51, %v460_v28  ;;  %v559_v12 = vadd.f32 %v5273_v17, %v460_v28 }
 0x3f1   : > { %v465_v41 = vpop.permute.xlu0 %464  ;;  %v1771_v16 = vpack.c.bf16 %v1737_v24, %v1735_v33  ;;  %v1770_v59 = vpack.c.bf16 %v1736_v6, %v1734_v19  ;;  %v2251_v29 = vmul.f32 %v3209_v22, %v5276_v23  ;;  %v2250_v5 = vmul.f32 %v3209_v22, %v5278_v15  ;;  %p3232_p13 = pnand %p3231_p12, %p3446_p4 }
 0x3f2   : > { %v3211_v46 = vpop.eup %3210  ;;  %v563_v32 = vadd.f32 %v5274_v10, %v465_v41  ;;  %v565_v9 = vadd.f32 %v5275_v25, %v465_v41 }
 0x3f3   : > { %2357 = vmatprep.subr.bf16.mxu1 %v1771_v16  ;;  %v2253_v14 = vmul.f32 %v3211_v46, %v5277_v52  ;;  %v2252_v7 = vmul.f32 %v3211_v46, %v5279_v34  ;;  %v2466_v54 = vpop.permute.xlu1 %2465  ;;  %v3229_v52 = vld [vmem:[%s3484_s13] sm:$0xff]  ;;  %p3233_p0 = pneg %p3232_p13  ;;  %s3234_s13 = sshll.u32 %s3344_s23, 4  ;;  %s3235_s13 = int_to_ptr.vmem [resolvable:$false] %s3234_s13 }
 0x3f4   : > { %v3213_v53 = vpop.eup %3212  ;;  %v777_v62 = vpack.c.bf16 %v563_v32, %v557_v27  ;;  %v778_v4 = vpack.c.bf16 %v565_v9, %v559_v12  ;;  %2358 = vmatpush1.bf16.xpose.msra.mxu1 %v1770_v59  ;;  %s3236_s14 = scalar_lea.vmem %s3235_s13, 256  ;;  %p3237_p1 = scmp.lt.s32.totalorder %s4692_s12, %s3235_s13 }
 0x3f5   : > { %v2285_v18 = vpack.c.bf16 %v2253_v14, %v2251_v29  ;;  %v2284_v37 = vpack.c.bf16 %v2252_v7, %v2250_v5  ;;  %v1739_v38 = vmul.f32 %v3213_v53, %v5280_v44  ;;  %v1738_v31 = vmul.f32 %v3213_v53, %v5282_v11  ;;  %v2471_v27 = vpop.permute.xlu0 %2470  ;;  %p3238_p2 = scmp.lt.s32.totalorder %s3236_s14, %s3230_s16 }
 0x3f6   : > { %v3215_v48 = vpop.eup %3214  ;;  %2361 = vmatprep.mubr.bf16.mxu1 %v778_v4  ;;  %v2494_v14 = vcombine.low %v3229_v52, %v3229_v52 }
 0x3f7   : > { %2316 = vmatprep.subr.bf16.mxu0 %v2285_v18  ;;  %v1741_v36 = vmul.f32 %v3215_v48, %v5281_v61  ;;  %v1740_v3 = vmul.f32 %v3215_v48, %v5283_v21  ;;  %p3239_p3 = por %p3238_p2, %p3237_p1 }
 0x3f8   : > { %2317 = vmatpush1.bf16.xpose.msra.mxu0 %v2284_v37 }
 0x3f9   : > { %v1773_v1 = vpack.c.bf16 %v1741_v36, %v1739_v38  ;;  %v1772_v0 = vpack.c.bf16 %v1740_v3, %v1738_v31  ;;  %2741 = vmatprep.subr.msk.mxu0 %vm479_vm0, %v5284_v20  ;;  %p3240_p5 = pnand %p3239_p3, %p3233_p0 }
 0x3fb   : > { %2359 = vmatprep.subr.bf16.mxu1 %v1773_v1 }
 0x3fc   : > { %2360 = vmatpush1.bf16.xpose.msra.mxu1 %v1772_v0 }
 0x3ff   : > { %2319 = vmatmul.mubr.bf16.vlgmr.msra.gmra.mrb[68].mxu0 %v5287_v49 }
 0x400   : > { %2742 = vmatpush1.msk.msra.mxu0 %vm479_vm0, %v3228_v45  ;;  %2444 = vmatprep.mubr.f32.mxu0 %v5288_v39 }
 0x403   : > { %2362 = vmatmul.mubr.bf16.vlgmr.msra.gmra.mrb[76].mxu1 %v777_v62 }
 0x407   : > { %2743 = vmatmul.mubr.msk.f32.vlgmr.msra.gmra.mrb[72].mxu0 %vm469_vm1, %v2372_v55 }
 0x408   : > { %2450 = vmatprep.mubr.f32.mxu0 %v5288_v39 }
 0x40b   : > { %2744 = vmatmul.mubr.msk.f32.gmra.mrb[74].mxu0 %vm469_vm1, %v2373_v35 }
 0x4d2   : > { %v2320_v8 = vpop.f32.mrb[68].mxu0 }
 0x4d3   : > { %v2322_v13 = vpop.f32.mrb[69].mxu0 }
 0x4d4   : > { %v2324_v43 = vpop.f32.mrb[70].mxu0 }
 0x4d5   : > { %v2326_v56 = vpop.f32.mrb[71].mxu0 }
 0x4d6   : > { %v2363_v30 = vpop.f32.mrb[76].mxu1 }
 0x4d7   : > { %v2364_v42 = vadd.f32 %v2363_v30, %v2320_v8  ;;  %v2365_v50 = vpop.f32.mrb[77].mxu1 }
 0x4d8   : > { %v2366_v63 = vadd.f32 %v2365_v50, %v2322_v13  ;;  %v2367_v26 = vpop.f32.mrb[78].mxu1 }
 0x4d9   : > { %v2368_v60 = vadd.f32 %v2367_v26, %v2324_v43  ;;  %v2369_v28 = vpop.f32.mrb[79].mxu1 }
 0x4da   : > { %v2370_v40 = vadd.f32 %v2369_v28, %v2326_v56  ;;  %v2446_v33 = vpop.f32.mrb[72].mxu0 }
 0x4db   : > { %v2457_v2 = vadd.f32 %v2446_v33, %v2364_v42  ;;  %v2448_v24 = vpop.f32.mrb[73].mxu0 }
 0x4dc   : > { %v2458_v19 = vadd.f32 %v2448_v24, %v2366_v63 }
 0x4dd   : > { %v2473_v58 = vadd.f32 %v2466_v54, %v2457_v2 }
 0x4de   : > { %v2474_v6 = vadd.f32 %v2466_v54, %v2458_v19  ;;  %v2452_v22 = vpop.f32.mrb[74].mxu0 }
 0x4df   : > { %v2745_v41 = vmul.f32 -1.442695, %v2473_v58  ;;  %v2459_v16 = vadd.f32 %v2452_v22, %v2368_v60  ;;  %v2454_v59 = vpop.f32.mrb[75].mxu0 }
 0x4e0   : > { %v2746_v46 = vmul.f32 -1.442695, %v2474_v6  ;;  %v2460_v51 = vadd.f32 %v2454_v59, %v2370_v40 }
 0x4e1   : > { %3216 = vpow2.f32 %v2745_v41  ;;  %v2475_v17 = vadd.f32 %v2471_v27, %v2459_v16 }
 0x4e2   : > { %3218 = vpow2.f32 %v2746_v46  ;;  %v2476_v12 = vadd.f32 %v2471_v27, %v2460_v51 }
 0x4e3   : > { %3220 = vtanh.f32 %v2475_v17 }
 0x4e4   : > { %3222 = vtanh.f32 %v2476_v12 }
 0x4eb   : > { %v3217_v10 = vpop.eup %3216 }
 0x4ec   : > { %v3219_v32 = vpop.eup %3218  ;;  %v2483_v25 = vadd.f32 1.0, %v3217_v10 }
 0x4ed   : > { %v2484_v9 = vadd.f32 1.0, %v3219_v32  ;;  %v3221_v23 = vpop.eup %3220 }
 0x4ee   : > { %3224 = vrcp.f32 %v2483_v25  ;;  %v3223_v29 = vpop.eup %3222  ;;  %v2500_v15 = vrot.slane %v3221_v23, 4 }
 0x4ef   : > { %3226 = vrcp.f32 %v2484_v9  ;;  %v2501_v34 = vrot.slane %v3223_v29, 4 }
 0x4f8   : > { %v3225_v5 = vpop.eup %3224 }
 0x4f9   : > { %v3227_v7 = vpop.eup %3226  ;;  %v2491_v53 = vsub.f32 1.0, %v3225_v5  ;;  %v2504_v62 = vmul.f32 %v3225_v5, %v2500_v15 }
 0x4fa   : > { %v2492_v4 = vsub.f32 1.0, %v3227_v7  ;;  %v2505_v18 = vmul.f32 %v3227_v7, %v2501_v34 }
 0x4fb   : > { %v2496_v37 = vmul.f32 %v2494_v14, %v2491_v53 }
 0x4fc   : > { %v2497_v48 = vmul.f32 %v3229_v52, %v2492_v4 }
 0x4fd   : > { %v2506_v44 = vadd.f32 %v2504_v62, %v2496_v37 }
 0x4fe   : > { %v2507_v38 = vadd.f32 %v2505_v18, %v2497_v48 }
 0x4ff   : > { %v2510_v61 = vrot.slane %v2506_v44, 4 }
 0x500   : > { %v2511_v36 = vrot.slane %v2507_v38, 4  ;;  %v2521_v11 = vcombine.high %v2506_v44, %v2507_v38 }
 0x501   : > { %v2514_v31 = vmul.f32 %v3225_v5, %v2510_v61 }
 0x502   : > { %v2515_v21 = vmul.f32 %v3227_v7, %v2511_v36  ;;  %2523 = vst [vmem:[%s421_s28] sm:$0xff] %v2521_v11 }
 0x503   : > { %3243 = shalt.err (!%p3240_p5)
}
 0x504   : > { %s3244_s24 = scalar_lea.hbm %s4690_s25, 128  ;;  %s3248_s23 = scalar_lea.hbm %s4786_s11, 256 }
 0x505   : > { %p3245_p6 = scmp.ne.s32.totalorder %s4690_s25, %s3244_s24  ;;  %p3249_p10 = scmp.lt.u32.totalorder %s4690_s25, %s4786_s11 }
 0x506   : > { %p3250_p11 = scmp.lt.u32.totalorder %s3248_s23, %s3244_s24  ;;  %p3252_p13 = scmp.lt.u32.totalorder %s3244_s24, %s4690_s25 }
 0x507   : > { %p3246_p7 = pnand %p3245_p6, %p3446_p4 }
 0x508   : > { %p3251_p12 = por %p3250_p11, %p3249_p10 }
 0x509   : > { %p3247_p9 = pneg %p3246_p7 }
 0x50a   : > { %p3253_p0 = por %p3252_p13, %p3251_p12 }
 0x50c   : > { %p3254_p1 = pnand %p3253_p0, %p3247_p9 }
 0x50e   : > { %3257 = shalt.err (!%p3254_p1)
}
 0x50f   : > { %2766 = dma.vmem_to_hbm [thread:$0]  (%p3446_p4), %s4692_s12, 128, %s4690_s25, %s2530_s30   ;;  %v2518_v3 = vcombine.low %v2514_v31, %v2515_v21 }
 0x510   : > { %s5289_s19 = sshll.u32 %s3332_s20, 7  ;;  %s5290_s24 = sshll.u32 %s4694_s15, 4  ;;  %s4728_s24 = int_to_ptr.vmem [resolvable:$true] %s5290_s24 }
 0x511   : > { %s4724_s14 = scalar_lea.hbm %s4785_s10, %s5289_s19  ;;  %2520 = vst [vmem:[%s4694_s15] sm:$0xff] %v2518_v3  ;;  %s2525_s28 = scalar_lea.sflag [#allocation3], %s4680_s21 }
 0x512   : > { %s3258_s23 = scalar_lea.vmem %s4728_s24, 128  ;;  %s3345_s12 = smov [#allocation2]  }
 0x513   : > { %p3259_p2 = scmp.ne.s32.totalorder %s4728_s24, %s3258_s23  ;;  %s3262_s20 = sshll.u32 %s3345_s12, 4  ;;  %s3263_s20 = int_to_ptr.vmem [resolvable:$false] %s3262_s20 }
 0x514   : > { %s3264_s25 = scalar_lea.vmem %s3263_s20, 256  ;;  %p3265_p6 = scmp.lt.s32.totalorder %s4728_s24, %s3263_s20 }
 0x515   : > { %p3260_p3 = pnand %p3259_p2, %p3446_p4  ;;  %p3266_p7 = scmp.lt.s32.totalorder %s3264_s25, %s3258_s23 }
 0x517   : > { %p3261_p5 = pneg %p3260_p3  ;;  %p3267_p9 = por %p3266_p7, %p3265_p6 }
 0x519   : > { %p3268_p10 = pnand %p3267_p9, %p3261_p5 }
 0x51b   : > { %3271 = shalt.err (!%p3268_p10)
}
 0x51c   : > { %s3272_s21 = scalar_lea.hbm %s4724_s14, 128  ;;  %s3276_s13 = scalar_lea.hbm %s4785_s10, 256 }
 0x51d   : > { %p3273_p11 = scmp.ne.s32.totalorder %s4724_s14, %s3272_s21  ;;  %p3277_p0 = scmp.lt.u32.totalorder %s4724_s14, %s4785_s10 }
 0x51e   : > { %p3278_p1 = scmp.lt.u32.totalorder %s3276_s13, %s3272_s21  ;;  %p3280_p3 = scmp.lt.u32.totalorder %s3272_s21, %s4724_s14 }
 0x51f   : > { %p3274_p12 = pnand %p3273_p11, %p3446_p4 }
 0x520   : > { %p3279_p2 = por %p3278_p1, %p3277_p0 }
 0x521   : > { %p3275_p13 = pneg %p3274_p12 }
 0x522   : > { %p3281_p5 = por %p3280_p3, %p3279_p2 }
 0x524   : > { %p3282_p6 = pnand %p3281_p5, %p3275_p13 }
 0x526   : > { %3285 = shalt.err (!%p3282_p6)
}
 0x527   : > { %2765 = dma.vmem_to_hbm [thread:$0]  (%p3446_p4), %s4728_s24, 128, %s4724_s14, %s2525_s28  }
 0x528 PF: > { %p2776_p7 = scmp.ge.s32.totalorder %s3340_s22, 2  ;;  %s2574_s16 = sand.u32 1, %s3320_s17  }
 0x529   : > { %s2575_s23 = scalar_lea.sflag [#allocation3], %s2574_s16 }
 0x52a   : > { %p2770_p9 = pnand %p2776_p7, %p3453_p8 }
 0x52c   : > { %3311 = dma.done.wait (!%p2770_p9), %s2575_s23, 128  }
 0x52d   : > { %3313 = vsyncadd (!%p2770_p9), %s2575_s23, 4294967168  ;;  %s2584_s12 = scalar_lea.sflag [#allocation5], %s2574_s16 }
 0x52e   : > { %3315 = dma.done.wait (!%p2770_p9), %s2584_s12, 128  }
 0x52f   : > { %3317 = vsyncadd (!%p2770_p9), %s2584_s12, 4294967168  ;;  %s28_s22 = sadd.s32 1, %s3340_s22   ;;  %s5291_s27 = sld [smem:[#allocation8_spill]] }
 0x530   : > { %p25_p10 = scmp.ge.s32.totalorder %s28_s22, 4   ;;  %s5292_s19 = sld [smem:[#allocation11_spill]] }
 0x531   : > { %s5293_s20 = sld [smem:[#allocation9_spill]]  ;;  %s5294_s21 = sld [smem:[#allocation10_spill]] }
 0x532   : > { %s5295_s17 = smov %s3324_s18  ;;  %27 = sbr.rel (!%p25_p10) target bundleno = 6 (0x6), region = 117 }
 0x535   : > { %s5296_s18 = smov %s5291_s27 }
 0x539   :  { %2589 = vsyncpa [#allocation3], 1 }
 0x53a   :  { %2591 = vsyncpa [#allocation3 + $0x1], 1 }
 0x53b   :  { %2592 = vsyncpa [#allocation5], 1 }
 0x53c   :  { %2594 = vsyncpa [#allocation5 + $0x1], 1 }

</bundles_post_ra>
